<compile_context>
chip_gen: v7x
topology: tpu7x:2x2x1
jax: 0.10.0
libtpu: 0.0.40
codegen_flags: <defaults>
</compile_context>

<pallas_src>
import functools

import jax
import jax.numpy as jnp
from jax.experimental import pallas as pl
from jax.experimental.pallas import tpu as pltpu


# ----------------------------------------------------------------------------- helpers / JAX glue

def _round_up(v, m):
    return ((v + m - 1) // m) * m


def im2col3x3_nchw(x):
    """x: (B, C, H, W) -> (B, 9*C, (H-2)*(W-2)); k index = (ky*3+kx)*C + ci."""
    B, C, H, W = x.shape
    Ho, Wo = H - 2, W - 2
    cols = [x[:, :, dy:dy + Ho, dx:dx + Wo] for dy in range(3) for dx in range(3)]
    p = jnp.stack(cols, axis=1)                      # (B, 9, C, Ho, Wo)
    return p.reshape(B, 9 * C, Ho * Wo)


def tent_cdf(t):
    """Antiderivative (CDF-like) of the bilinear tent basis max(0, 1-|s|)."""
    t = jnp.clip(t, -1.0, 1.0)
    return jnp.where(t <= 0.0, 0.5 * (t + 1.0) ** 2, 1.0 - 0.5 * (1.0 - t) ** 2)


def prroi_pool_weights(template_box, Hk, Wk, spatial_scale=1.0 / 8.0):
    """PrRoIPool2D(1,1,scale): exact integral of bilinear interp == weighted spatial sum."""
    roi = template_box.astype(jnp.float32) * spatial_scale        # (B, 4): x1, y1, x2, y2
    x1, y1, x2, y2 = roi[:, 0], roi[:, 1], roi[:, 2], roi[:, 3]
    ws = jnp.arange(Wk, dtype=jnp.float32)
    hs = jnp.arange(Hk, dtype=jnp.float32)
    Wx = tent_cdf(x2[:, None] - ws[None, :]) - tent_cdf(x1[:, None] - ws[None, :])   # (B, Wk)
    Wy = tent_cdf(y2[:, None] - hs[None, :]) - tent_cdf(y1[:, None] - hs[None, :])   # (B, Hk)
    area = jnp.maximum(x2 - x1, 0.0) * jnp.maximum(y2 - y1, 0.0)
    inv_area = jnp.where(area > 0.0, 1.0 / jnp.maximum(area, 1e-12), 0.0)
    w2 = Wy[:, :, None] * Wx[:, None, :] * inv_area[:, None, None]                   # (B, Hk, Wk)
    return w2.reshape(-1, 1, Hk * Wk)                                                # (B, 1, Hk*Wk)


# ----------------------------------------------------------------------------- Pallas kernel

def _matchcat_kernel(rhs_ref, wcat_ref, scat_ref, bcat_ref, w2_ref, kc_ref,
                     o_ref, pad_ref, *, C, Ws, P, Pz_pad, P_pad, Bt, pad_front):
    # rhs_ref : (1, K, Bt*Wtot) bf16  fused [template | search] im2col patches, Bt elements
    # wcat    : (2C, K) bf16          [conv_diff ; conv_search] weights
    # scat/bcat: (2C, 1) f32          folded BN scale / shift (same row split)
    # w2_ref  : (Bt, 1, Pz_pad) f32   PrRoIPool weights (zero in padded lanes)
    # kc_ref  : (Bt, C, 25) f32       per-element depthwise 5x5 kernel taps (kernel_corr)
    # o_ref   : (Bt, 3C, P_pad) f32   [ |search_diff - kv| ; search_diff ; xcorr ]
    # pad_ref : (C, pad_front + P_pad + halo) f32 scratch (zero-haloed flat search_corr)
    Wtot = Pz_pad + P_pad
    pad_len = pad_ref.shape[1]

    # --- single fused MXU matmul + BN/ReLU epilogue for ALL conv work of this step ---
    conv = jnp.dot(wcat_ref[...], rhs_ref[0], preferred_element_type=jnp.float32)
    conv = jnp.maximum(conv * scat_ref[...] + bcat_ref[...], 0.0)        # (2C, Bt*Wtot)

    # --- lane-index masks built in-kernel (no HBM DMA); float math only (safe lowering) ---
    lane_i = jax.lax.broadcasted_iota(jnp.int32, (1, P_pad), 1)
    lane_f = lane_i.astype(jnp.float32)
    row = jnp.floor(lane_f / jnp.float32(Ws))
    xi = lane_f - row * jnp.float32(Ws)                                  # column within a row
    valid = (lane_i < P).astype(jnp.float32)                             # real (unpadded) lanes
    xmask = [((xi + (dx - 2) >= 0.0) & (xi + (dx - 2) <= float(Ws - 1))).astype(jnp.float32)
             for dx in range(5)]

    # --- zero ONLY the halos (128-lane aligned); bulk is overwritten every element below ---
    pad_ref[:, 0:pad_front] = jnp.zeros((C, pad_front), jnp.float32)
    pad_ref[:, pad_front + P_pad:] = jnp.zeros((C, pad_len - pad_front - P_pad), jnp.float32)

    for bi in range(Bt):
        base = bi * Wtot
        kd = conv[0:C, base:base + Pz_pad]                   # conv_diff(template)  (C, Pz_pad)
        s_diff = conv[0:C, base + Pz_pad:base + Wtot]        # conv_diff(search)    (C, P_pad)
        s_corr = conv[C:2 * C, base + Pz_pad:base + Wtot]    # conv_search(search)  (C, P_pad)

        # PrRoIPool2D(1,1,1/8): exact bilinear integral == weighted spatial sum
        kv = jnp.sum(kd * w2_ref[bi], axis=1, keepdims=True)             # (C, 1)

        # lane-dense, unmasked sublane-slice stores (no in-kernel concat)
        o_ref[bi, 0:C, :] = jnp.abs(s_diff - kv)
        o_ref[bi, C:2 * C, :] = s_diff

        # --- depthwise 5x5 cross-correlation on the lane-flattened layout ---
        # Zero-haloed flat buffer with row stride Ws; tap (dy, dx) is a static lane-shifted
        # slice; x-boundary (row wraparound) handled by the 5 per-dx column masks; the
        # padded tail [P, P_pad) is zeroed via `valid` so +dy taps see a correct y-halo.
        pad_ref[:, pad_front:pad_front + P_pad] = s_corr * valid
        kc = kc_ref[bi]                                                  # (C, 25)
        acc = jnp.zeros((C, P_pad), jnp.float32)
        for dx in range(5):
            acc_dx = jnp.zeros((C, P_pad), jnp.float32)
            for dy in range(5):
                t = dy * 5 + dx
                s = pad_front + (dy - 2) * Ws + (dx - 2)
                acc_dx = acc_dx + pad_ref[:, s:s + P_pad] * kc[:, t:t + 1]
            acc = acc + acc_dx * xmask[dx]
        o_ref[bi, 2 * C:3 * C, :] = acc


# ----------------------------------------------------------------------------- wrapper

def match_cat_net_forward(z, x, template_box, params, center_size=7, batch_tile=None):
    """z, x: NCHW (f32). Returns NCHW feature (B, 3*hidden, Hx-2, Wx-2)."""
    B, Cin, Hz, Wz = z.shape
    _, _, Hx, Wx = x.shape
    C = params["w_diff_t"].shape[0]          # hidden
    K = 9 * Cin
    Hk, Wk = Hz - 2, Wz - 2
    Hs, Ws = Hx - 2, Wx - 2
    Pz, P = Hk * Wk, Hs * Ws
    Pz_pad, P_pad = _round_up(Pz, 128), _round_up(P, 128)
    Wtot = Pz_pad + P_pad

    # Bt elements per grid step; keep >= 2 grid steps so both v7x TCs get work.
    if batch_tile is None:
        batch_tile = B // 2 if (B >= 4 and B % 2 == 0) else 1
    Bt = batch_tile
    assert B % Bt == 0, (B, Bt)
    G = B // Bt

    # Halo / data-start derived from Ws (the dy=-2 tap reaches 2*Ws+2 lanes back).
    halo = _round_up(2 * Ws + 2, 128)
    pad_front = halo
    pad_len = pad_front + P_pad + halo

    # im2col, pad lanes to 128 multiples, fuse template|search along the lane axis,
    # interleave Bt batch elements per grid step -> one lane-dense MXU RHS per step.
    pz = im2col3x3_nchw(z)                                               # (B, K, Pz)
    px = im2col3x3_nchw(x)                                               # (B, K, P)
    pz = jnp.pad(pz, ((0, 0), (0, 0), (0, Pz_pad - Pz)))
    px = jnp.pad(px, ((0, 0), (0, 0), (0, P_pad - P)))
    rhs = jnp.concatenate([pz, px], axis=2).astype(jnp.bfloat16)         # (B, K, Wtot)
    rhs = rhs.reshape(G, Bt, K, Wtot).transpose(0, 2, 1, 3).reshape(G, K, Bt * Wtot)

    # PrRoIPool2D(1,1,1/8) weights; zero-padded lanes ignore the padded template columns.
    w2 = prroi_pool_weights(template_box, Hk, Wk)                        # (B, 1, Pz)
    w2 = jnp.pad(w2, ((0, 0), (0, 0), (0, Pz_pad - Pz)))

    # conv_kernel on the cropped 7x7 template (25 output px): tiny -> plain XLA, no launch.
    l = (Wz - center_size) // 2
    z_crop = z[:, :, l:l + center_size, l:l + center_size]
    pzc = im2col3x3_nchw(z_crop)                                         # (B, K, 25)
    kc = jnp.einsum("ok,bkp->bop", params["w_ker_t"], pzc)
    kc = jnp.maximum(kc * params["s_ker"][None] + params["b_ker"][None], 0.0)   # (B, C, 25)

    # conv_diff / conv_search fused along Cout; bf16 operands, f32 accumulation in-kernel.
    w_cat = jnp.concatenate([params["w_diff_t"], params["w_sea_t"]], axis=0).astype(jnp.bfloat16)
    s_cat = jnp.concatenate([params["s_diff"], params["s_sea"]], axis=0)        # (2C, 1)
    b_cat = jnp.concatenate([params["b_diff"], params["b_sea"]], axis=0)        # (2C, 1)

    kernel = functools.partial(_matchcat_kernel, C=C, Ws=Ws, P=P,
                               Pz_pad=Pz_pad, P_pad=P_pad, Bt=Bt, pad_front=pad_front)

    # Per-step VMEM: 2x bf16 (K, Bt*Wtot) + 2x f32 (Bt, 3C, P_pad) + f32 (C, pad_len)
    # (~a few hundred KB here).  For production shapes derive Bt from the v7x 64 MiB budget
    # first and raise vmem_limit_bytes in CompilerParams if the scoped default is exceeded.
    feat = pl.pallas_call(
        kernel,
        out_shape=jax.ShapeDtypeStruct((B, 3 * C, P_pad), jnp.float32),
        grid_spec=pltpu.PrefetchScalarGridSpec(
            num_scalar_prefetch=0,
            grid=(G,),
            in_specs=[
                pl.BlockSpec((1, K, Bt * Wtot), lambda g: (g, 0, 0)),   # fused patches
                pl.BlockSpec((2 * C, K), lambda g: (0, 0)),             # [w_diff; w_sea]^T
                pl.BlockSpec((2 * C, 1), lambda g: (0, 0)),             # BN scale (cat)
                pl.BlockSpec((2 * C, 1), lambda g: (0, 0)),             # BN shift (cat)
                pl.BlockSpec((Bt, 1, Pz_pad), lambda g: (g, 0, 0)),     # PrRoIPool weights
                pl.BlockSpec((Bt, C, 25), lambda g: (g, 0, 0)),         # kernel_corr taps
            ],
            out_specs=pl.BlockSpec((Bt, 3 * C, P_pad), lambda g: (g, 0, 0)),
            scratch_shapes=[pltpu.VMEM((C, pad_len), jnp.float32)],
        ),
        compiler_params=pltpu.CompilerParams(dimension_semantics=("parallel",)),
    )(rhs, w_cat, s_cat, b_cat, w2, kc)

    # crop the 128-padding lanes, reshape to NCHW (free: no transpose)
    return feat[:, :, :P].reshape(B, 3 * C, Hs, Ws)


# ----------------------------------------------------------------------------- pure-JAX reference

def reference_forward(z, x, template_box, params, center_size=7):
    B, Cin, Hz, Wz = z.shape
    _, _, Hx, Wx = x.shape
    C = params["w_diff_t"].shape[0]
    Hk, Wk = Hz - 2, Wz - 2
    Hs, Ws = Hx - 2, Wx - 2

    def conv_bn_relu(inp, wt, s, b, bf16=True):
        p = im2col3x3_nchw(inp)
        if bf16:
            p, wt = p.astype(jnp.bfloat16), wt.astype(jnp.bfloat16)
        y = jnp.einsum("ok,bkp->bop", wt, p, preferred_element_type=jnp.float32)
        return jnp.maximum(y * s[None] + b[None], 0.0)

    kernel_diff = conv_bn_relu(z, params["w_diff_t"], params["s_diff"], params["b_diff"])
    search_diff = conv_bn_relu(x, params["w_diff_t"], params["s_diff"], params["b_diff"])
    search_corr = conv_bn_relu(x, params["w_sea_t"], params["s_sea"], params["b_sea"])
    l = (Wz - center_size) // 2
    z_crop = z[:, :, l:l + center_size, l:l + center_size]
    kernel_corr = conv_bn_relu(z_crop, params["w_ker_t"], params["s_ker"], params["b_ker"], bf16=False)

    w2 = prroi_pool_weights(template_box, Hk, Wk)
    kv = jnp.sum(kernel_diff * w2, axis=2)                                # (B, C)

    sc = search_corr.reshape(B, C, Hs, Ws)
    kc = kernel_corr.reshape(B, C, 5, 5)
    scp = jnp.pad(sc, ((0, 0), (0, 0), (2, 2), (2, 2)))
    corr = jnp.zeros((B, C, Hs, Ws), jnp.float32)
    for dy in range(5):
        for dx in range(5):
            corr = corr + scp[:, :, dy:dy + Hs, dx:dx + Ws] * kc[:, :, dy:dy + 1, dx:dx + 1]

    diff = jnp.abs(search_diff.reshape(B, C, Hs, Ws) - kv[:, :, None, None])
    return jnp.concatenate([diff, search_diff.reshape(B, C, Hs, Ws), corr], axis=1)


# ----------------------------------------------------------------------------- params

def make_conv_bn_params(key, cin, cout, eps=1e-5):
    k1, k2, k3, k4, k5 = jax.random.split(key, 5)
    # Flat transposed conv weight (cout, 9*cin) with k index = (ky*3+kx)*cin + ci.
    # (A PyTorch OIHW weight maps via w.permute(0, 2, 3, 1).reshape(cout, 9*cin).)
    w_t = 0.1 * jax.random.normal(k1, (cout, 9 * cin), jnp.float32)
    gamma = 1.0 + 0.1 * jax.random.normal(k2, (cout,), jnp.float32)
    beta = 0.1 * jax.random.normal(k3, (cout,), jnp.float32)
    mean = 0.1 * jax.random.normal(k4, (cout,), jnp.float32)
    var = 1.0 + 0.1 * jax.random.uniform(k5, (cout,), jnp.float32)
    scale = gamma / jnp.sqrt(var + eps)               # BN folded to inference-mode scale/shift
    shift = beta - mean * scale
    return w_t, scale.reshape(cout, 1), shift.reshape(cout, 1)


# ----------------------------------------------------------------------------- main

if __name__ == "__main__":
    B, C_in, hidden = 4, 4, 8
    Hz = Wz = 16        # template spatial
    Hx = Wx = 24        # search spatial

    key = jax.random.PRNGKey(0)
    kz, kx, kd, kk, ks = jax.random.split(key, 5)

    z = jax.random.normal(kz, (B, C_in, Hz, Wz), jnp.float32)     # NCHW template
    x = jax.random.normal(kx, (B, C_in, Hx, Wx), jnp.float32)     # NCHW search
    template_box = jnp.array([[24.0, 24.0, 96.0, 96.0],
                              [16.0, 32.0, 104.0, 88.0],
                              [8.0, 8.0, 120.0, 120.0],
                              [40.0, 24.0, 88.0, 104.0]], jnp.float32)

    wd, sd, bd = make_conv_bn_params(kd, C_in, hidden)
    wk, sk, bk = make_conv_bn_params(kk, C_in, hidden)
    wse, sse, bse = make_conv_bn_params(ks, C_in, hidden)
    params = dict(w_diff_t=wd, s_diff=sd, b_diff=bd,
                  w_ker_t=wk, s_ker=sk, b_ker=bk,
                  w_sea_t=wse, s_sea=sse, b_sea=bse)

    fwd = jax.jit(match_cat_net_forward, static_argnames=("center_size", "batch_tile"))

    # default path: B=4 -> Bt=2 elements per grid step, grid=(2,) "parallel"
    feature = fwd(z, x, template_box, params)
    jax.block_until_ready(feature)

    expected_shape = (B, 3 * hidden, Hx - 2, Wx - 2)
    assert feature.shape == expected_shape, (feature.shape, expected_shape)

    ref = reference_forward(z, x, template_box, params)
    max_err = float(jnp.max(jnp.abs(feature - ref)))
    assert max_err < 5e-3, f"mismatch vs reference (Bt=2): max abs err {max_err}"

    # also exercise the Bt=1 fallback path (what B<4 or odd B uses)
    feature1 = fwd(z, x, template_box, params, batch_tile=1)
    jax.block_until_ready(feature1)
    max_err1 = float(jnp.max(jnp.abs(feature1 - ref)))
    assert max_err1 < 5e-3, f"mismatch vs reference (Bt=1): max abs err {max_err1}"

    print("KERNEL_OK")
</pallas_src>

<mosaic_0001>
module attributes {stable_mosaic.version = 11 : i64} {
  func.func @_matchcat_kernel(%arg0: i32, %arg1: memref<1x36x1536xbf16, #tpu.memory_space<vmem>>, %arg2: memref<16x36xbf16, #tpu.memory_space<vmem>>, %arg3: memref<16x1xf32, #tpu.memory_space<vmem>>, %arg4: memref<16x1xf32, #tpu.memory_space<vmem>>, %arg5: memref<2x1x256xf32, #tpu.memory_space<vmem>>, %arg6: memref<2x8x25xf32, #tpu.memory_space<vmem>>, %arg7: memref<2x24x512xf32, #tpu.memory_space<vmem>>, %arg8: memref<8x768xf32, #tpu.memory_space<vmem>>) attributes {dimension_semantics = [#tpu.dimension_semantics<parallel>], iteration_bounds = array<i64: 2>, scalar_prefetch = 0 : i64, scratch_operands = 1 : i64, tpu.core_type = #tpu.core_type<tc>, window_params = [{transform_indices = @transform_0, window_bounds = array<i64: 1, 36, 1536>}, {pipeline_mode = #tpu.pipeline_mode<synchronous>, transform_indices = @transform_1, window_bounds = array<i64: 16, 36>}, {pipeline_mode = #tpu.pipeline_mode<synchronous>, transform_indices = @transform_2, window_bounds = array<i64: 16, 1>}, {pipeline_mode = #tpu.pipeline_mode<synchronous>, transform_indices = @transform_3, window_bounds = array<i64: 16, 1>}, {transform_indices = @transform_4, window_bounds = array<i64: 2, 1, 256>}, {transform_indices = @transform_5, window_bounds = array<i64: 2, 8, 25>}, {transform_indices = @transform_6, window_bounds = array<i64: 2, 24, 512>}]} {
    %c0 = arith.constant 0 : index
    %c0_0 = arith.constant 0 : index
    %0 = vector.load %arg2[%c0, %c0_0] : memref<16x36xbf16, #tpu.memory_space<vmem>>, vector<16x36xbf16>
    %c0_1 = arith.constant 0 : index
    %c0_2 = arith.constant 0 : index
    %c0_3 = arith.constant 0 : index
    %1 = vector.load %arg1[%c0_1, %c0_2, %c0_3] : memref<1x36x1536xbf16, #tpu.memory_space<vmem>>, vector<1x36x1536xbf16>
    %2 = vector.shape_cast %1 : vector<1x36x1536xbf16> to vector<36x1536xbf16>
    %cst = arith.constant dense<0.000000e+00> : vector<16x1536xf32>
    %3 = tpu.matmul %0, %2, %cst {dimension_numbers = #tpu.dot_dimension_numbers<[1], [0], [0], [1], [0, 0, 1, 1], [], []>} : vector<16x36xbf16>, vector<36x1536xbf16>, vector<16x1536xf32> -> vector<16x1536xf32>
    %c0_4 = arith.constant 0 : index
    %c0_5 = arith.constant 0 : index
    %4 = vector.load %arg3[%c0_4, %c0_5] : memref<16x1xf32, #tpu.memory_space<vmem>>, vector<16x1xf32>
    %5 = vector.broadcast %4 : vector<16x1xf32> to vector<16x1536xf32>
    %6 = arith.mulf %3, %5 : vector<16x1536xf32>
    %c0_6 = arith.constant 0 : index
    %c0_7 = arith.constant 0 : index
    %7 = vector.load %arg4[%c0_6, %c0_7] : memref<16x1xf32, #tpu.memory_space<vmem>>, vector<16x1xf32>
    %8 = vector.broadcast %7 : vector<16x1xf32> to vector<16x1536xf32>
    %9 = arith.addf %6, %8 : vector<16x1536xf32>
    %cst_8 = arith.constant 0.000000e+00 : f32
    %10 = vector.broadcast %cst_8 : f32 to vector<16x1536xf32>
    %11 = arith.maximumf %9, %10 : vector<16x1536xf32>
    %12 = tpu.iota {dimensions = array<i32: 1>} : vector<1x512xi32>
    %13 = arith.sitofp %12 : vector<1x512xi32> to vector<1x512xf32>
    %cst_9 = arith.constant 2.200000e+01 : f32
    %14 = vector.broadcast %cst_9 : f32 to vector<1x512xf32>
    %15 = arith.divf %13, %14 : vector<1x512xf32>
    %16 = math.floor %15 : vector<1x512xf32>
    %cst_10 = arith.constant 2.200000e+01 : f32
    %17 = vector.broadcast %cst_10 : f32 to vector<1x512xf32>
    %18 = arith.mulf %16, %17 : vector<1x512xf32>
    %19 = arith.subf %13, %18 : vector<1x512xf32>
    %c484_i32 = arith.constant 484 : i32
    %20 = vector.broadcast %c484_i32 : i32 to vector<1x512xi32>
    %21 = arith.cmpi slt, %12, %20 : vector<1x512xi32>
    %22 = arith.extui %21 : vector<1x512xi1> to vector<1x512xi32>
    %23 = arith.sitofp %22 : vector<1x512xi32> to vector<1x512xf32>
    %cst_11 = arith.constant -2.000000e+00 : f32
    %24 = vector.broadcast %cst_11 : f32 to vector<1x512xf32>
    %25 = arith.addf %19, %24 : vector<1x512xf32>
    %cst_12 = arith.constant 0.000000e+00 : f32
    %26 = vector.broadcast %cst_12 : f32 to vector<1x512xf32>
    %27 = arith.cmpf oge, %25, %26 : vector<1x512xf32>
    %cst_13 = arith.constant -2.000000e+00 : f32
    %28 = vector.broadcast %cst_13 : f32 to vector<1x512xf32>
    %29 = arith.addf %19, %28 : vector<1x512xf32>
    %cst_14 = arith.constant 2.100000e+01 : f32
    %30 = vector.broadcast %cst_14 : f32 to vector<1x512xf32>
    %31 = arith.cmpf ole, %29, %30 : vector<1x512xf32>
    %32 = arith.andi %27, %31 : vector<1x512xi1>
    %33 = arith.extui %32 : vector<1x512xi1> to vector<1x512xi32>
    %34 = arith.sitofp %33 : vector<1x512xi32> to vector<1x512xf32>
    %cst_15 = arith.constant -1.000000e+00 : f32
    %35 = vector.broadcast %cst_15 : f32 to vector<1x512xf32>
    %36 = arith.addf %19, %35 : vector<1x512xf32>
    %cst_16 = arith.constant 0.000000e+00 : f32
    %37 = vector.broadcast %cst_16 : f32 to vector<1x512xf32>
    %38 = arith.cmpf oge, %36, %37 : vector<1x512xf32>
    %cst_17 = arith.constant -1.000000e+00 : f32
    %39 = vector.broadcast %cst_17 : f32 to vector<1x512xf32>
    %40 = arith.addf %19, %39 : vector<1x512xf32>
    %cst_18 = arith.constant 2.100000e+01 : f32
    %41 = vector.broadcast %cst_18 : f32 to vector<1x512xf32>
    %42 = arith.cmpf ole, %40, %41 : vector<1x512xf32>
    %43 = arith.andi %38, %42 : vector<1x512xi1>
    %44 = arith.extui %43 : vector<1x512xi1> to vector<1x512xi32>
    %45 = arith.sitofp %44 : vector<1x512xi32> to vector<1x512xf32>
    %cst_19 = arith.constant 0.000000e+00 : f32
    %46 = vector.broadcast %cst_19 : f32 to vector<1x512xf32>
    %47 = arith.addf %19, %46 : vector<1x512xf32>
    %cst_20 = arith.constant 0.000000e+00 : f32
    %48 = vector.broadcast %cst_20 : f32 to vector<1x512xf32>
    %49 = arith.cmpf oge, %47, %48 : vector<1x512xf32>
    %cst_21 = arith.constant 0.000000e+00 : f32
    %50 = vector.broadcast %cst_21 : f32 to vector<1x512xf32>
    %51 = arith.addf %19, %50 : vector<1x512xf32>
    %cst_22 = arith.constant 2.100000e+01 : f32
    %52 = vector.broadcast %cst_22 : f32 to vector<1x512xf32>
    %53 = arith.cmpf ole, %51, %52 : vector<1x512xf32>
    %54 = arith.andi %49, %53 : vector<1x512xi1>
    %55 = arith.extui %54 : vector<1x512xi1> to vector<1x512xi32>
    %56 = arith.sitofp %55 : vector<1x512xi32> to vector<1x512xf32>
    %cst_23 = arith.constant 1.000000e+00 : f32
    %57 = vector.broadcast %cst_23 : f32 to vector<1x512xf32>
    %58 = arith.addf %19, %57 : vector<1x512xf32>
    %cst_24 = arith.constant 0.000000e+00 : f32
    %59 = vector.broadcast %cst_24 : f32 to vector<1x512xf32>
    %60 = arith.cmpf oge, %58, %59 : vector<1x512xf32>
    %cst_25 = arith.constant 1.000000e+00 : f32
    %61 = vector.broadcast %cst_25 : f32 to vector<1x512xf32>
    %62 = arith.addf %19, %61 : vector<1x512xf32>
    %cst_26 = arith.constant 2.100000e+01 : f32
    %63 = vector.broadcast %cst_26 : f32 to vector<1x512xf32>
    %64 = arith.cmpf ole, %62, %63 : vector<1x512xf32>
    %65 = arith.andi %60, %64 : vector<1x512xi1>
    %66 = arith.extui %65 : vector<1x512xi1> to vector<1x512xi32>
    %67 = arith.sitofp %66 : vector<1x512xi32> to vector<1x512xf32>
    %cst_27 = arith.constant 2.000000e+00 : f32
    %68 = vector.broadcast %cst_27 : f32 to vector<1x512xf32>
    %69 = arith.addf %19, %68 : vector<1x512xf32>
    %cst_28 = arith.constant 0.000000e+00 : f32
    %70 = vector.broadcast %cst_28 : f32 to vector<1x512xf32>
    %71 = arith.cmpf oge, %69, %70 : vector<1x512xf32>
    %cst_29 = arith.constant 2.000000e+00 : f32
    %72 = vector.broadcast %cst_29 : f32 to vector<1x512xf32>
    %73 = arith.addf %19, %72 : vector<1x512xf32>
    %cst_30 = arith.constant 2.100000e+01 : f32
    %74 = vector.broadcast %cst_30 : f32 to vector<1x512xf32>
    %75 = arith.cmpf ole, %73, %74 : vector<1x512xf32>
    %76 = arith.andi %71, %75 : vector<1x512xi1>
    %77 = arith.extui %76 : vector<1x512xi1> to vector<1x512xi32>
    %78 = arith.sitofp %77 : vector<1x512xi32> to vector<1x512xf32>
    %cst_31 = arith.constant 0.000000e+00 : f32
    %79 = vector.broadcast %cst_31 : f32 to vector<8x128xf32>
    %c0_32 = arith.constant 0 : index
    %c0_33 = arith.constant 0 : index
    %80 = vector.load %arg8[%c0_32, %c0_33] : memref<8x768xf32, #tpu.memory_space<vmem>>, vector<8x128xf32>
    tpu.vector_store %arg8[%c0_32, %c0_33], %79 {strides = array<i32>} : memref<8x768xf32, #tpu.memory_space<vmem>>, vector<8x128xf32>,
    %cst_34 = arith.constant 0.000000e+00 : f32
    %81 = vector.broadcast %cst_34 : f32 to vector<8x128xf32>
    %c0_35 = arith.constant 0 : index
    %c640 = arith.constant 640 : index
    %82 = vector.load %arg8[%c0_35, %c640] : memref<8x768xf32, #tpu.memory_space<vmem>>, vector<8x128xf32>
    tpu.vector_store %arg8[%c0_35, %c640], %81 {strides = array<i32>} : memref<8x768xf32, #tpu.memory_space<vmem>>, vector<8x128xf32>,
    %83 = vector.extract_strided_slice %11 {offsets = [0, 0], sizes = [8, 256], strides = [1, 1]} : vector<16x1536xf32> to vector<8x256xf32>
    %84 = vector.extract_strided_slice %11 {offsets = [0, 256], sizes = [8, 512], strides = [1, 1]} : vector<16x1536xf32> to vector<8x512xf32>
    %85 = vector.extract_strided_slice %11 {offsets = [8, 256], sizes = [8, 512], strides = [1, 1]} : vector<16x1536xf32> to vector<8x512xf32>
    %c0_36 = arith.constant 0 : index
    %c0_37 = arith.constant 0 : index
    %c0_38 = arith.constant 0 : index
    %86 = vector.load %arg5[%c0_36, %c0_37, %c0_38] : memref<2x1x256xf32, #tpu.memory_space<vmem>>, vector<1x1x256xf32>
    %87 = vector.shape_cast %86 : vector<1x1x256xf32> to vector<1x256xf32>
    %88 = vector.broadcast %87 : vector<1x256xf32> to vector<8x256xf32>
    %89 = arith.mulf %83, %88 : vector<8x256xf32>
    %cst_39 = arith.constant dense<0.000000e+00> : vector<8xf32>
    %90 = vector.multi_reduction <add>, %89, %cst_39 [1] : vector<8x256xf32> to vector<8xf32>
    %91 = vector.shape_cast %90 : vector<8xf32> to vector<8x1xf32>
    %92 = vector.broadcast %91 : vector<8x1xf32> to vector<8x512xf32>
    %93 = arith.subf %84, %92 : vector<8x512xf32>
    %94 = math.absf %93 : vector<8x512xf32>
    %c0_40 = arith.constant 0 : index
    %c0_41 = arith.constant 0 : index
    %c0_42 = arith.constant 0 : index
    %95 = vector.load %arg7[%c0_40, %c0_41, %c0_42] : memref<2x24x512xf32, #tpu.memory_space<vmem>>, vector<1x8x512xf32>
    %96 = vector.shape_cast %95 : vector<1x8x512xf32> to vector<8x512xf32>
    %97 = vector.shape_cast %94 : vector<8x512xf32> to vector<1x8x512xf32>
    tpu.vector_store %arg7[%c0_40, %c0_41, %c0_42], %97 {strides = array<i32>} : memref<2x24x512xf32, #tpu.memory_space<vmem>>, vector<1x8x512xf32>,
    %c0_43 = arith.constant 0 : index
    %c8 = arith.constant 8 : index
    %c0_44 = arith.constant 0 : index
    %98 = vector.load %arg7[%c0_43, %c8, %c0_44] : memref<2x24x512xf32, #tpu.memory_space<vmem>>, vector<1x8x512xf32>
    %99 = vector.shape_cast %98 : vector<1x8x512xf32> to vector<8x512xf32>
    %100 = vector.shape_cast %84 : vector<8x512xf32> to vector<1x8x512xf32>
    tpu.vector_store %arg7[%c0_43, %c8, %c0_44], %100 {strides = array<i32>} : memref<2x24x512xf32, #tpu.memory_space<vmem>>, vector<1x8x512xf32>,
    %101 = vector.broadcast %23 : vector<1x512xf32> to vector<8x512xf32>
    %102 = arith.mulf %85, %101 : vector<8x512xf32>
    %c0_45 = arith.constant 0 : index
    %c128 = arith.constant 128 : index
    %103 = vector.load %arg8[%c0_45, %c128] : memref<8x768xf32, #tpu.memory_space<vmem>>, vector<8x512xf32>
    tpu.vector_store %arg8[%c0_45, %c128], %102 {strides = array<i32>} : memref<8x768xf32, #tpu.memory_space<vmem>>, vector<8x512xf32>,
    %c0_46 = arith.constant 0 : index
    %c0_47 = arith.constant 0 : index
    %c0_48 = arith.constant 0 : index
    %104 = vector.load %arg6[%c0_46, %c0_47, %c0_48] : memref<2x8x25xf32, #tpu.memory_space<vmem>>, vector<1x8x25xf32>
    %105 = vector.shape_cast %104 : vector<1x8x25xf32> to vector<8x25xf32>
    %cst_49 = arith.constant 0.000000e+00 : f32
    %106 = vector.broadcast %cst_49 : f32 to vector<8x512xf32>
    %cst_50 = arith.constant 0.000000e+00 : f32
    %107 = vector.broadcast %cst_50 : f32 to vector<8x512xf32>
    %c0_51 = arith.constant 0 : index
    %c82 = arith.constant 82 : index
    %108 = vector.load %arg8[%c0_51, %c82] : memref<8x768xf32, #tpu.memory_space<vmem>>, vector<8x512xf32>
    %109 = vector.extract_strided_slice %105 {offsets = [0, 0], sizes = [8, 1], strides = [1, 1]} : vector<8x25xf32> to vector<8x1xf32>
    %110 = vector.broadcast %109 : vector<8x1xf32> to vector<8x512xf32>
    %111 = arith.mulf %108, %110 : vector<8x512xf32>
    %112 = arith.addf %107, %111 : vector<8x512xf32>
    %c0_52 = arith.constant 0 : index
    %c104 = arith.constant 104 : index
    %113 = vector.load %arg8[%c0_52, %c104] : memref<8x768xf32, #tpu.memory_space<vmem>>, vector<8x512xf32>
    %114 = vector.extract_strided_slice %105 {offsets = [0, 5], sizes = [8, 1], strides = [1, 1]} : vector<8x25xf32> to vector<8x1xf32>
    %115 = vector.broadcast %114 : vector<8x1xf32> to vector<8x512xf32>
    %116 = arith.mulf %113, %115 : vector<8x512xf32>
    %117 = arith.addf %112, %116 : vector<8x512xf32>
    %c0_53 = arith.constant 0 : index
    %c126 = arith.constant 126 : index
    %118 = vector.load %arg8[%c0_53, %c126] : memref<8x768xf32, #tpu.memory_space<vmem>>, vector<8x512xf32>
    %119 = vector.extract_strided_slice %105 {offsets = [0, 10], sizes = [8, 1], strides = [1, 1]} : vector<8x25xf32> to vector<8x1xf32>
    %120 = vector.broadcast %119 : vector<8x1xf32> to vector<8x512xf32>
    %121 = arith.mulf %118, %120 : vector<8x512xf32>
    %122 = arith.addf %117, %121 : vector<8x512xf32>
    %c0_54 = arith.constant 0 : index
    %c148 = arith.constant 148 : index
    %123 = vector.load %arg8[%c0_54, %c148] : memref<8x768xf32, #tpu.memory_space<vmem>>, vector<8x512xf32>
    %124 = vector.extract_strided_slice %105 {offsets = [0, 15], sizes = [8, 1], strides = [1, 1]} : vector<8x25xf32> to vector<8x1xf32>
    %125 = vector.broadcast %124 : vector<8x1xf32> to vector<8x512xf32>
    %126 = arith.mulf %123, %125 : vector<8x512xf32>
    %127 = arith.addf %122, %126 : vector<8x512xf32>
    %c0_55 = arith.constant 0 : index
    %c170 = arith.constant 170 : index
    %128 = vector.load %arg8[%c0_55, %c170] : memref<8x768xf32, #tpu.memory_space<vmem>>, vector<8x512xf32>
    %129 = vector.extract_strided_slice %105 {offsets = [0, 20], sizes = [8, 1], strides = [1, 1]} : vector<8x25xf32> to vector<8x1xf32>
    %130 = vector.broadcast %129 : vector<8x1xf32> to vector<8x512xf32>
    %131 = arith.mulf %128, %130 : vector<8x512xf32>
    %132 = arith.addf %127, %131 : vector<8x512xf32>
    %133 = vector.broadcast %34 : vector<1x512xf32> to vector<8x512xf32>
    %134 = arith.mulf %132, %133 : vector<8x512xf32>
    %135 = arith.addf %106, %134 : vector<8x512xf32>
    %cst_56 = arith.constant 0.000000e+00 : f32
    %136 = vector.broadcast %cst_56 : f32 to vector<8x512xf32>
    %c0_57 = arith.constant 0 : index
    %c83 = arith.constant 83 : index
    %137 = vector.load %arg8[%c0_57, %c83] : memref<8x768xf32, #tpu.memory_space<vmem>>, vector<8x512xf32>
    %138 = vector.extract_strided_slice %105 {offsets = [0, 1], sizes = [8, 1], strides = [1, 1]} : vector<8x25xf32> to vector<8x1xf32>
    %139 = vector.broadcast %138 : vector<8x1xf32> to vector<8x512xf32>
    %140 = arith.mulf %137, %139 : vector<8x512xf32>
    %141 = arith.addf %136, %140 : vector<8x512xf32>
    %c0_58 = arith.constant 0 : index
    %c105 = arith.constant 105 : index
    %142 = vector.load %arg8[%c0_58, %c105] : memref<8x768xf32, #tpu.memory_space<vmem>>, vector<8x512xf32>
    %143 = vector.extract_strided_slice %105 {offsets = [0, 6], sizes = [8, 1], strides = [1, 1]} : vector<8x25xf32> to vector<8x1xf32>
    %144 = vector.broadcast %143 : vector<8x1xf32> to vector<8x512xf32>
    %145 = arith.mulf %142, %144 : vector<8x512xf32>
    %146 = arith.addf %141, %145 : vector<8x512xf32>
    %c0_59 = arith.constant 0 : index
    %c127 = arith.constant 127 : index
    %147 = vector.load %arg8[%c0_59, %c127] : memref<8x768xf32, #tpu.memory_space<vmem>>, vector<8x512xf32>
    %148 = vector.extract_strided_slice %105 {offsets = [0, 11], sizes = [8, 1], strides = [1, 1]} : vector<8x25xf32> to vector<8x1xf32>
    %149 = vector.broadcast %148 : vector<8x1xf32> to vector<8x512xf32>
    %150 = arith.mulf %147, %149 : vector<8x512xf32>
    %151 = arith.addf %146, %150 : vector<8x512xf32>
    %c0_60 = arith.constant 0 : index
    %c149 = arith.constant 149 : index
    %152 = vector.load %arg8[%c0_60, %c149] : memref<8x768xf32, #tpu.memory_space<vmem>>, vector<8x512xf32>
    %153 = vector.extract_strided_slice %105 {offsets = [0, 16], sizes = [8, 1], strides = [1, 1]} : vector<8x25xf32> to vector<8x1xf32>
    %154 = vector.broadcast %153 : vector<8x1xf32> to vector<8x512xf32>
    %155 = arith.mulf %152, %154 : vector<8x512xf32>
    %156 = arith.addf %151, %155 : vector<8x512xf32>
    %c0_61 = arith.constant 0 : index
    %c171 = arith.constant 171 : index
    %157 = vector.load %arg8[%c0_61, %c171] : memref<8x768xf32, #tpu.memory_space<vmem>>, vector<8x512xf32>
    %158 = vector.extract_strided_slice %105 {offsets = [0, 21], sizes = [8, 1], strides = [1, 1]} : vector<8x25xf32> to vector<8x1xf32>
    %159 = vector.broadcast %158 : vector<8x1xf32> to vector<8x512xf32>
    %160 = arith.mulf %157, %159 : vector<8x512xf32>
    %161 = arith.addf %156, %160 : vector<8x512xf32>
    %162 = vector.broadcast %45 : vector<1x512xf32> to vector<8x512xf32>
    %163 = arith.mulf %161, %162 : vector<8x512xf32>
    %164 = arith.addf %135, %163 : vector<8x512xf32>
    %cst_62 = arith.constant 0.000000e+00 : f32
    %165 = vector.broadcast %cst_62 : f32 to vector<8x512xf32>
    %c0_63 = arith.constant 0 : index
    %c84 = arith.constant 84 : index
    %166 = vector.load %arg8[%c0_63, %c84] : memref<8x768xf32, #tpu.memory_space<vmem>>, vector<8x512xf32>
    %167 = vector.extract_strided_slice %105 {offsets = [0, 2], sizes = [8, 1], strides = [1, 1]} : vector<8x25xf32> to vector<8x1xf32>
    %168 = vector.broadcast %167 : vector<8x1xf32> to vector<8x512xf32>
    %169 = arith.mulf %166, %168 : vector<8x512xf32>
    %170 = arith.addf %165, %169 : vector<8x512xf32>
    %c0_64 = arith.constant 0 : index
    %c106 = arith.constant 106 : index
    %171 = vector.load %arg8[%c0_64, %c106] : memref<8x768xf32, #tpu.memory_space<vmem>>, vector<8x512xf32>
    %172 = vector.extract_strided_slice %105 {offsets = [0, 7], sizes = [8, 1], strides = [1, 1]} : vector<8x25xf32> to vector<8x1xf32>
    %173 = vector.broadcast %172 : vector<8x1xf32> to vector<8x512xf32>
    %174 = arith.mulf %171, %173 : vector<8x512xf32>
    %175 = arith.addf %170, %174 : vector<8x512xf32>
    %c0_65 = arith.constant 0 : index
    %c128_66 = arith.constant 128 : index
    %176 = vector.load %arg8[%c0_65, %c128_66] : memref<8x768xf32, #tpu.memory_space<vmem>>, vector<8x512xf32>
    %177 = vector.extract_strided_slice %105 {offsets = [0, 12], sizes = [8, 1], strides = [1, 1]} : vector<8x25xf32> to vector<8x1xf32>
    %178 = vector.broadcast %177 : vector<8x1xf32> to vector<8x512xf32>
    %179 = arith.mulf %176, %178 : vector<8x512xf32>
    %180 = arith.addf %175, %179 : vector<8x512xf32>
    %c0_67 = arith.constant 0 : index
    %c150 = arith.constant 150 : index
    %181 = vector.load %arg8[%c0_67, %c150] : memref<8x768xf32, #tpu.memory_space<vmem>>, vector<8x512xf32>
    %182 = vector.extract_strided_slice %105 {offsets = [0, 17], sizes = [8, 1], strides = [1, 1]} : vector<8x25xf32> to vector<8x1xf32>
    %183 = vector.broadcast %182 : vector<8x1xf32> to vector<8x512xf32>
    %184 = arith.mulf %181, %183 : vector<8x512xf32>
    %185 = arith.addf %180, %184 : vector<8x512xf32>
    %c0_68 = arith.constant 0 : index
    %c172 = arith.constant 172 : index
    %186 = vector.load %arg8[%c0_68, %c172] : memref<8x768xf32, #tpu.memory_space<vmem>>, vector<8x512xf32>
    %187 = vector.extract_strided_slice %105 {offsets = [0, 22], sizes = [8, 1], strides = [1, 1]} : vector<8x25xf32> to vector<8x1xf32>
    %188 = vector.broadcast %187 : vector<8x1xf32> to vector<8x512xf32>
    %189 = arith.mulf %186, %188 : vector<8x512xf32>
    %190 = arith.addf %185, %189 : vector<8x512xf32>
    %191 = vector.broadcast %56 : vector<1x512xf32> to vector<8x512xf32>
    %192 = arith.mulf %190, %191 : vector<8x512xf32>
    %193 = arith.addf %164, %192 : vector<8x512xf32>
    %cst_69 = arith.constant 0.000000e+00 : f32
    %194 = vector.broadcast %cst_69 : f32 to vector<8x512xf32>
    %c0_70 = arith.constant 0 : index
    %c85 = arith.constant 85 : index
    %195 = vector.load %arg8[%c0_70, %c85] : memref<8x768xf32, #tpu.memory_space<vmem>>, vector<8x512xf32>
    %196 = vector.extract_strided_slice %105 {offsets = [0, 3], sizes = [8, 1], strides = [1, 1]} : vector<8x25xf32> to vector<8x1xf32>
    %197 = vector.broadcast %196 : vector<8x1xf32> to vector<8x512xf32>
    %198 = arith.mulf %195, %197 : vector<8x512xf32>
    %199 = arith.addf %194, %198 : vector<8x512xf32>
    %c0_71 = arith.constant 0 : index
    %c107 = arith.constant 107 : index
    %200 = vector.load %arg8[%c0_71, %c107] : memref<8x768xf32, #tpu.memory_space<vmem>>, vector<8x512xf32>
    %201 = vector.extract_strided_slice %105 {offsets = [0, 8], sizes = [8, 1], strides = [1, 1]} : vector<8x25xf32> to vector<8x1xf32>
    %202 = vector.broadcast %201 : vector<8x1xf32> to vector<8x512xf32>
    %203 = arith.mulf %200, %202 : vector<8x512xf32>
    %204 = arith.addf %199, %203 : vector<8x512xf32>
    %c0_72 = arith.constant 0 : index
    %c129 = arith.constant 129 : index
    %205 = vector.load %arg8[%c0_72, %c129] : memref<8x768xf32, #tpu.memory_space<vmem>>, vector<8x512xf32>
    %206 = vector.extract_strided_slice %105 {offsets = [0, 13], sizes = [8, 1], strides = [1, 1]} : vector<8x25xf32> to vector<8x1xf32>
    %207 = vector.broadcast %206 : vector<8x1xf32> to vector<8x512xf32>
    %208 = arith.mulf %205, %207 : vector<8x512xf32>
    %209 = arith.addf %204, %208 : vector<8x512xf32>
    %c0_73 = arith.constant 0 : index
    %c151 = arith.constant 151 : index
    %210 = vector.load %arg8[%c0_73, %c151] : memref<8x768xf32, #tpu.memory_space<vmem>>, vector<8x512xf32>
    %211 = vector.extract_strided_slice %105 {offsets = [0, 18], sizes = [8, 1], strides = [1, 1]} : vector<8x25xf32> to vector<8x1xf32>
    %212 = vector.broadcast %211 : vector<8x1xf32> to vector<8x512xf32>
    %213 = arith.mulf %210, %212 : vector<8x512xf32>
    %214 = arith.addf %209, %213 : vector<8x512xf32>
    %c0_74 = arith.constant 0 : index
    %c173 = arith.constant 173 : index
    %215 = vector.load %arg8[%c0_74, %c173] : memref<8x768xf32, #tpu.memory_space<vmem>>, vector<8x512xf32>
    %216 = vector.extract_strided_slice %105 {offsets = [0, 23], sizes = [8, 1], strides = [1, 1]} : vector<8x25xf32> to vector<8x1xf32>
    %217 = vector.broadcast %216 : vector<8x1xf32> to vector<8x512xf32>
    %218 = arith.mulf %215, %217 : vector<8x512xf32>
    %219 = arith.addf %214, %218 : vector<8x512xf32>
    %220 = vector.broadcast %67 : vector<1x512xf32> to vector<8x512xf32>
    %221 = arith.mulf %219, %220 : vector<8x512xf32>
    %222 = arith.addf %193, %221 : vector<8x512xf32>
    %cst_75 = arith.constant 0.000000e+00 : f32
    %223 = vector.broadcast %cst_75 : f32 to vector<8x512xf32>
    %c0_76 = arith.constant 0 : index
    %c86 = arith.constant 86 : index
    %224 = vector.load %arg8[%c0_76, %c86] : memref<8x768xf32, #tpu.memory_space<vmem>>, vector<8x512xf32>
    %225 = vector.extract_strided_slice %105 {offsets = [0, 4], sizes = [8, 1], strides = [1, 1]} : vector<8x25xf32> to vector<8x1xf32>
    %226 = vector.broadcast %225 : vector<8x1xf32> to vector<8x512xf32>
    %227 = arith.mulf %224, %226 : vector<8x512xf32>
    %228 = arith.addf %223, %227 : vector<8x512xf32>
    %c0_77 = arith.constant 0 : index
    %c108 = arith.constant 108 : index
    %229 = vector.load %arg8[%c0_77, %c108] : memref<8x768xf32, #tpu.memory_space<vmem>>, vector<8x512xf32>
    %230 = vector.extract_strided_slice %105 {offsets = [0, 9], sizes = [8, 1], strides = [1, 1]} : vector<8x25xf32> to vector<8x1xf32>
    %231 = vector.broadcast %230 : vector<8x1xf32> to vector<8x512xf32>
    %232 = arith.mulf %229, %231 : vector<8x512xf32>
    %233 = arith.addf %228, %232 : vector<8x512xf32>
    %c0_78 = arith.constant 0 : index
    %c130 = arith.constant 130 : index
    %234 = vector.load %arg8[%c0_78, %c130] : memref<8x768xf32, #tpu.memory_space<vmem>>, vector<8x512xf32>
    %235 = vector.extract_strided_slice %105 {offsets = [0, 14], sizes = [8, 1], strides = [1, 1]} : vector<8x25xf32> to vector<8x1xf32>
    %236 = vector.broadcast %235 : vector<8x1xf32> to vector<8x512xf32>
    %237 = arith.mulf %234, %236 : vector<8x512xf32>
    %238 = arith.addf %233, %237 : vector<8x512xf32>
    %c0_79 = arith.constant 0 : index
    %c152 = arith.constant 152 : index
    %239 = vector.load %arg8[%c0_79, %c152] : memref<8x768xf32, #tpu.memory_space<vmem>>, vector<8x512xf32>
    %240 = vector.extract_strided_slice %105 {offsets = [0, 19], sizes = [8, 1], strides = [1, 1]} : vector<8x25xf32> to vector<8x1xf32>
    %241 = vector.broadcast %240 : vector<8x1xf32> to vector<8x512xf32>
    %242 = arith.mulf %239, %241 : vector<8x512xf32>
    %243 = arith.addf %238, %242 : vector<8x512xf32>
    %c0_80 = arith.constant 0 : index
    %c174 = arith.constant 174 : index
    %244 = vector.load %arg8[%c0_80, %c174] : memref<8x768xf32, #tpu.memory_space<vmem>>, vector<8x512xf32>
    %245 = vector.extract_strided_slice %105 {offsets = [0, 24], sizes = [8, 1], strides = [1, 1]} : vector<8x25xf32> to vector<8x1xf32>
    %246 = vector.broadcast %245 : vector<8x1xf32> to vector<8x512xf32>
    %247 = arith.mulf %244, %246 : vector<8x512xf32>
    %248 = arith.addf %243, %247 : vector<8x512xf32>
    %249 = vector.broadcast %78 : vector<1x512xf32> to vector<8x512xf32>
    %250 = arith.mulf %248, %249 : vector<8x512xf32>
    %251 = arith.addf %222, %250 : vector<8x512xf32>
    %c0_81 = arith.constant 0 : index
    %c16 = arith.constant 16 : index
    %c0_82 = arith.constant 0 : index
    %252 = vector.load %arg7[%c0_81, %c16, %c0_82] : memref<2x24x512xf32, #tpu.memory_space<vmem>>, vector<1x8x512xf32>
    %253 = vector.shape_cast %252 : vector<1x8x512xf32> to vector<8x512xf32>
    %254 = vector.shape_cast %251 : vector<8x512xf32> to vector<1x8x512xf32>
    tpu.vector_store %arg7[%c0_81, %c16, %c0_82], %254 {strides = array<i32>} : memref<2x24x512xf32, #tpu.memory_space<vmem>>, vector<1x8x512xf32>,
    %255 = vector.extract_strided_slice %11 {offsets = [0, 768], sizes = [8, 256], strides = [1, 1]} : vector<16x1536xf32> to vector<8x256xf32>
    %256 = vector.extract_strided_slice %11 {offsets = [0, 1024], sizes = [8, 512], strides = [1, 1]} : vector<16x1536xf32> to vector<8x512xf32>
    %257 = vector.extract_strided_slice %11 {offsets = [8, 1024], sizes = [8, 512], strides = [1, 1]} : vector<16x1536xf32> to vector<8x512xf32>
    %c1 = arith.constant 1 : index
    %c0_83 = arith.constant 0 : index
    %c0_84 = arith.constant 0 : index
    %258 = vector.load %arg5[%c1, %c0_83, %c0_84] : memref<2x1x256xf32, #tpu.memory_space<vmem>>, vector<1x1x256xf32>
    %259 = vector.shape_cast %258 : vector<1x1x256xf32> to vector<1x256xf32>
    %260 = vector.broadcast %259 : vector<1x256xf32> to vector<8x256xf32>
    %261 = arith.mulf %255, %260 : vector<8x256xf32>
    %cst_85 = arith.constant dense<0.000000e+00> : vector<8xf32>
    %262 = vector.multi_reduction <add>, %261, %cst_85 [1] : vector<8x256xf32> to vector<8xf32>
    %263 = vector.shape_cast %262 : vector<8xf32> to vector<8x1xf32>
    %264 = vector.broadcast %263 : vector<8x1xf32> to vector<8x512xf32>
    %265 = arith.subf %256, %264 : vector<8x512xf32>
    %266 = math.absf %265 : vector<8x512xf32>
    %c1_86 = arith.constant 1 : index
    %c0_87 = arith.constant 0 : index
    %c0_88 = arith.constant 0 : index
    %267 = vector.load %arg7[%c1_86, %c0_87, %c0_88] : memref<2x24x512xf32, #tpu.memory_space<vmem>>, vector<1x8x512xf32>
    %268 = vector.shape_cast %267 : vector<1x8x512xf32> to vector<8x512xf32>
    %269 = vector.shape_cast %266 : vector<8x512xf32> to vector<1x8x512xf32>
    tpu.vector_store %arg7[%c1_86, %c0_87, %c0_88], %269 {strides = array<i32>} : memref<2x24x512xf32, #tpu.memory_space<vmem>>, vector<1x8x512xf32>,
    %c1_89 = arith.constant 1 : index
    %c8_90 = arith.constant 8 : index
    %c0_91 = arith.constant 0 : index
    %270 = vector.load %arg7[%c1_89, %c8_90, %c0_91] : memref<2x24x512xf32, #tpu.memory_space<vmem>>, vector<1x8x512xf32>
    %271 = vector.shape_cast %270 : vector<1x8x512xf32> to vector<8x512xf32>
    %272 = vector.shape_cast %256 : vector<8x512xf32> to vector<1x8x512xf32>
    tpu.vector_store %arg7[%c1_89, %c8_90, %c0_91], %272 {strides = array<i32>} : memref<2x24x512xf32, #tpu.memory_space<vmem>>, vector<1x8x512xf32>,
    %273 = vector.broadcast %23 : vector<1x512xf32> to vector<8x512xf32>
    %274 = arith.mulf %257, %273 : vector<8x512xf32>
    %c0_92 = arith.constant 0 : index
    %c128_93 = arith.constant 128 : index
    %275 = vector.load %arg8[%c0_92, %c128_93] : memref<8x768xf32, #tpu.memory_space<vmem>>, vector<8x512xf32>
    tpu.vector_store %arg8[%c0_92, %c128_93], %274 {strides = array<i32>} : memref<8x768xf32, #tpu.memory_space<vmem>>, vector<8x512xf32>,
    %c1_94 = arith.constant 1 : index
    %c0_95 = arith.constant 0 : index
    %c0_96 = arith.constant 0 : index
    %276 = vector.load %arg6[%c1_94, %c0_95, %c0_96] : memref<2x8x25xf32, #tpu.memory_space<vmem>>, vector<1x8x25xf32>
    %277 = vector.shape_cast %276 : vector<1x8x25xf32> to vector<8x25xf32>
    %cst_97 = arith.constant 0.000000e+00 : f32
    %278 = vector.broadcast %cst_97 : f32 to vector<8x512xf32>
    %cst_98 = arith.constant 0.000000e+00 : f32
    %279 = vector.broadcast %cst_98 : f32 to vector<8x512xf32>
    %c0_99 = arith.constant 0 : index
    %c82_100 = arith.constant 82 : index
    %280 = vector.load %arg8[%c0_99, %c82_100] : memref<8x768xf32, #tpu.memory_space<vmem>>, vector<8x512xf32>
    %281 = vector.extract_strided_slice %277 {offsets = [0, 0], sizes = [8, 1], strides = [1, 1]} : vector<8x25xf32> to vector<8x1xf32>
    %282 = vector.broadcast %281 : vector<8x1xf32> to vector<8x512xf32>
    %283 = arith.mulf %280, %282 : vector<8x512xf32>
    %284 = arith.addf %279, %283 : vector<8x512xf32>
    %c0_101 = arith.constant 0 : index
    %c104_102 = arith.constant 104 : index
    %285 = vector.load %arg8[%c0_101, %c104_102] : memref<8x768xf32, #tpu.memory_space<vmem>>, vector<8x512xf32>
    %286 = vector.extract_strided_slice %277 {offsets = [0, 5], sizes = [8, 1], strides = [1, 1]} : vector<8x25xf32> to vector<8x1xf32>
    %287 = vector.broadcast %286 : vector<8x1xf32> to vector<8x512xf32>
    %288 = arith.mulf %285, %287 : vector<8x512xf32>
    %289 = arith.addf %284, %288 : vector<8x512xf32>
    %c0_103 = arith.constant 0 : index
    %c126_104 = arith.constant 126 : index
    %290 = vector.load %arg8[%c0_103, %c126_104] : memref<8x768xf32, #tpu.memory_space<vmem>>, vector<8x512xf32>
    %291 = vector.extract_strided_slice %277 {offsets = [0, 10], sizes = [8, 1], strides = [1, 1]} : vector<8x25xf32> to vector<8x1xf32>
    %292 = vector.broadcast %291 : vector<8x1xf32> to vector<8x512xf32>
    %293 = arith.mulf %290, %292 : vector<8x512xf32>
    %294 = arith.addf %289, %293 : vector<8x512xf32>
    %c0_105 = arith.constant 0 : index
    %c148_106 = arith.constant 148 : index
    %295 = vector.load %arg8[%c0_105, %c148_106] : memref<8x768xf32, #tpu.memory_space<vmem>>, vector<8x512xf32>
    %296 = vector.extract_strided_slice %277 {offsets = [0, 15], sizes = [8, 1], strides = [1, 1]} : vector<8x25xf32> to vector<8x1xf32>
    %297 = vector.broadcast %296 : vector<8x1xf32> to vector<8x512xf32>
    %298 = arith.mulf %295, %297 : vector<8x512xf32>
    %299 = arith.addf %294, %298 : vector<8x512xf32>
    %c0_107 = arith.constant 0 : index
    %c170_108 = arith.constant 170 : index
    %300 = vector.load %arg8[%c0_107, %c170_108] : memref<8x768xf32, #tpu.memory_space<vmem>>, vector<8x512xf32>
    %301 = vector.extract_strided_slice %277 {offsets = [0, 20], sizes = [8, 1], strides = [1, 1]} : vector<8x25xf32> to vector<8x1xf32>
    %302 = vector.broadcast %301 : vector<8x1xf32> to vector<8x512xf32>
    %303 = arith.mulf %300, %302 : vector<8x512xf32>
    %304 = arith.addf %299, %303 : vector<8x512xf32>
    %305 = vector.broadcast %34 : vector<1x512xf32> to vector<8x512xf32>
    %306 = arith.mulf %304, %305 : vector<8x512xf32>
    %307 = arith.addf %278, %306 : vector<8x512xf32>
    %cst_109 = arith.constant 0.000000e+00 : f32
    %308 = vector.broadcast %cst_109 : f32 to vector<8x512xf32>
    %c0_110 = arith.constant 0 : index
    %c83_111 = arith.constant 83 : index
    %309 = vector.load %arg8[%c0_110, %c83_111] : memref<8x768xf32, #tpu.memory_space<vmem>>, vector<8x512xf32>
    %310 = vector.extract_strided_slice %277 {offsets = [0, 1], sizes = [8, 1], strides = [1, 1]} : vector<8x25xf32> to vector<8x1xf32>
    %311 = vector.broadcast %310 : vector<8x1xf32> to vector<8x512xf32>
    %312 = arith.mulf %309, %311 : vector<8x512xf32>
    %313 = arith.addf %308, %312 : vector<8x512xf32>
    %c0_112 = arith.constant 0 : index
    %c105_113 = arith.constant 105 : index
    %314 = vector.load %arg8[%c0_112, %c105_113] : memref<8x768xf32, #tpu.memory_space<vmem>>, vector<8x512xf32>
    %315 = vector.extract_strided_slice %277 {offsets = [0, 6], sizes = [8, 1], strides = [1, 1]} : vector<8x25xf32> to vector<8x1xf32>
    %316 = vector.broadcast %315 : vector<8x1xf32> to vector<8x512xf32>
    %317 = arith.mulf %314, %316 : vector<8x512xf32>
    %318 = arith.addf %313, %317 : vector<8x512xf32>
    %c0_114 = arith.constant 0 : index
    %c127_115 = arith.constant 127 : index
    %319 = vector.load %arg8[%c0_114, %c127_115] : memref<8x768xf32, #tpu.memory_space<vmem>>, vector<8x512xf32>
    %320 = vector.extract_strided_slice %277 {offsets = [0, 11], sizes = [8, 1], strides = [1, 1]} : vector<8x25xf32> to vector<8x1xf32>
    %321 = vector.broadcast %320 : vector<8x1xf32> to vector<8x512xf32>
    %322 = arith.mulf %319, %321 : vector<8x512xf32>
    %323 = arith.addf %318, %322 : vector<8x512xf32>
    %c0_116 = arith.constant 0 : index
    %c149_117 = arith.constant 149 : index
    %324 = vector.load %arg8[%c0_116, %c149_117] : memref<8x768xf32, #tpu.memory_space<vmem>>, vector<8x512xf32>
    %325 = vector.extract_strided_slice %277 {offsets = [0, 16], sizes = [8, 1], strides = [1, 1]} : vector<8x25xf32> to vector<8x1xf32>
    %326 = vector.broadcast %325 : vector<8x1xf32> to vector<8x512xf32>
    %327 = arith.mulf %324, %326 : vector<8x512xf32>
    %328 = arith.addf %323, %327 : vector<8x512xf32>
    %c0_118 = arith.constant 0 : index
    %c171_119 = arith.constant 171 : index
    %329 = vector.load %arg8[%c0_118, %c171_119] : memref<8x768xf32, #tpu.memory_space<vmem>>, vector<8x512xf32>
    %330 = vector.extract_strided_slice %277 {offsets = [0, 21], sizes = [8, 1], strides = [1, 1]} : vector<8x25xf32> to vector<8x1xf32>
    %331 = vector.broadcast %330 : vector<8x1xf32> to vector<8x512xf32>
    %332 = arith.mulf %329, %331 : vector<8x512xf32>
    %333 = arith.addf %328, %332 : vector<8x512xf32>
    %334 = vector.broadcast %45 : vector<1x512xf32> to vector<8x512xf32>
    %335 = arith.mulf %333, %334 : vector<8x512xf32>
    %336 = arith.addf %307, %335 : vector<8x512xf32>
    %cst_120 = arith.constant 0.000000e+00 : f32
    %337 = vector.broadcast %cst_120 : f32 to vector<8x512xf32>
    %c0_121 = arith.constant 0 : index
    %c84_122 = arith.constant 84 : index
    %338 = vector.load %arg8[%c0_121, %c84_122] : memref<8x768xf32, #tpu.memory_space<vmem>>, vector<8x512xf32>
    %339 = vector.extract_strided_slice %277 {offsets = [0, 2], sizes = [8, 1], strides = [1, 1]} : vector<8x25xf32> to vector<8x1xf32>
    %340 = vector.broadcast %339 : vector<8x1xf32> to vector<8x512xf32>
    %341 = arith.mulf %338, %340 : vector<8x512xf32>
    %342 = arith.addf %337, %341 : vector<8x512xf32>
    %c0_123 = arith.constant 0 : index
    %c106_124 = arith.constant 106 : index
    %343 = vector.load %arg8[%c0_123, %c106_124] : memref<8x768xf32, #tpu.memory_space<vmem>>, vector<8x512xf32>
    %344 = vector.extract_strided_slice %277 {offsets = [0, 7], sizes = [8, 1], strides = [1, 1]} : vector<8x25xf32> to vector<8x1xf32>
    %345 = vector.broadcast %344 : vector<8x1xf32> to vector<8x512xf32>
    %346 = arith.mulf %343, %345 : vector<8x512xf32>
    %347 = arith.addf %342, %346 : vector<8x512xf32>
    %c0_125 = arith.constant 0 : index
    %c128_126 = arith.constant 128 : index
    %348 = vector.load %arg8[%c0_125, %c128_126] : memref<8x768xf32, #tpu.memory_space<vmem>>, vector<8x512xf32>
    %349 = vector.extract_strided_slice %277 {offsets = [0, 12], sizes = [8, 1], strides = [1, 1]} : vector<8x25xf32> to vector<8x1xf32>
    %350 = vector.broadcast %349 : vector<8x1xf32> to vector<8x512xf32>
    %351 = arith.mulf %348, %350 : vector<8x512xf32>
    %352 = arith.addf %347, %351 : vector<8x512xf32>
    %c0_127 = arith.constant 0 : index
    %c150_128 = arith.constant 150 : index
    %353 = vector.load %arg8[%c0_127, %c150_128] : memref<8x768xf32, #tpu.memory_space<vmem>>, vector<8x512xf32>
    %354 = vector.extract_strided_slice %277 {offsets = [0, 17], sizes = [8, 1], strides = [1, 1]} : vector<8x25xf32> to vector<8x1xf32>
    %355 = vector.broadcast %354 : vector<8x1xf32> to vector<8x512xf32>
    %356 = arith.mulf %353, %355 : vector<8x512xf32>
    %357 = arith.addf %352, %356 : vector<8x512xf32>
    %c0_129 = arith.constant 0 : index
    %c172_130 = arith.constant 172 : index
    %358 = vector.load %arg8[%c0_129, %c172_130] : memref<8x768xf32, #tpu.memory_space<vmem>>, vector<8x512xf32>
    %359 = vector.extract_strided_slice %277 {offsets = [0, 22], sizes = [8, 1], strides = [1, 1]} : vector<8x25xf32> to vector<8x1xf32>
    %360 = vector.broadcast %359 : vector<8x1xf32> to vector<8x512xf32>
    %361 = arith.mulf %358, %360 : vector<8x512xf32>
    %362 = arith.addf %357, %361 : vector<8x512xf32>
    %363 = vector.broadcast %56 : vector<1x512xf32> to vector<8x512xf32>
    %364 = arith.mulf %362, %363 : vector<8x512xf32>
    %365 = arith.addf %336, %364 : vector<8x512xf32>
    %cst_131 = arith.constant 0.000000e+00 : f32
    %366 = vector.broadcast %cst_131 : f32 to vector<8x512xf32>
    %c0_132 = arith.constant 0 : index
    %c85_133 = arith.constant 85 : index
    %367 = vector.load %arg8[%c0_132, %c85_133] : memref<8x768xf32, #tpu.memory_space<vmem>>, vector<8x512xf32>
    %368 = vector.extract_strided_slice %277 {offsets = [0, 3], sizes = [8, 1], strides = [1, 1]} : vector<8x25xf32> to vector<8x1xf32>
    %369 = vector.broadcast %368 : vector<8x1xf32> to vector<8x512xf32>
    %370 = arith.mulf %367, %369 : vector<8x512xf32>
    %371 = arith.addf %366, %370 : vector<8x512xf32>
    %c0_134 = arith.constant 0 : index
    %c107_135 = arith.constant 107 : index
    %372 = vector.load %arg8[%c0_134, %c107_135] : memref<8x768xf32, #tpu.memory_space<vmem>>, vector<8x512xf32>
    %373 = vector.extract_strided_slice %277 {offsets = [0, 8], sizes = [8, 1], strides = [1, 1]} : vector<8x25xf32> to vector<8x1xf32>
    %374 = vector.broadcast %373 : vector<8x1xf32> to vector<8x512xf32>
    %375 = arith.mulf %372, %374 : vector<8x512xf32>
    %376 = arith.addf %371, %375 : vector<8x512xf32>
    %c0_136 = arith.constant 0 : index
    %c129_137 = arith.constant 129 : index
    %377 = vector.load %arg8[%c0_136, %c129_137] : memref<8x768xf32, #tpu.memory_space<vmem>>, vector<8x512xf32>
    %378 = vector.extract_strided_slice %277 {offsets = [0, 13], sizes = [8, 1], strides = [1, 1]} : vector<8x25xf32> to vector<8x1xf32>
    %379 = vector.broadcast %378 : vector<8x1xf32> to vector<8x512xf32>
    %380 = arith.mulf %377, %379 : vector<8x512xf32>
    %381 = arith.addf %376, %380 : vector<8x512xf32>
    %c0_138 = arith.constant 0 : index
    %c151_139 = arith.constant 151 : index
    %382 = vector.load %arg8[%c0_138, %c151_139] : memref<8x768xf32, #tpu.memory_space<vmem>>, vector<8x512xf32>
    %383 = vector.extract_strided_slice %277 {offsets = [0, 18], sizes = [8, 1], strides = [1, 1]} : vector<8x25xf32> to vector<8x1xf32>
    %384 = vector.broadcast %383 : vector<8x1xf32> to vector<8x512xf32>
    %385 = arith.mulf %382, %384 : vector<8x512xf32>
    %386 = arith.addf %381, %385 : vector<8x512xf32>
    %c0_140 = arith.constant 0 : index
    %c173_141 = arith.constant 173 : index
    %387 = vector.load %arg8[%c0_140, %c173_141] : memref<8x768xf32, #tpu.memory_space<vmem>>, vector<8x512xf32>
    %388 = vector.extract_strided_slice %277 {offsets = [0, 23], sizes = [8, 1], strides = [1, 1]} : vector<8x25xf32> to vector<8x1xf32>
    %389 = vector.broadcast %388 : vector<8x1xf32> to vector<8x512xf32>
    %390 = arith.mulf %387, %389 : vector<8x512xf32>
    %391 = arith.addf %386, %390 : vector<8x512xf32>
    %392 = vector.broadcast %67 : vector<1x512xf32> to vector<8x512xf32>
    %393 = arith.mulf %391, %392 : vector<8x512xf32>
    %394 = arith.addf %365, %393 : vector<8x512xf32>
    %cst_142 = arith.constant 0.000000e+00 : f32
    %395 = vector.broadcast %cst_142 : f32 to vector<8x512xf32>
    %c0_143 = arith.constant 0 : index
    %c86_144 = arith.constant 86 : index
    %396 = vector.load %arg8[%c0_143, %c86_144] : memref<8x768xf32, #tpu.memory_space<vmem>>, vector<8x512xf32>
    %397 = vector.extract_strided_slice %277 {offsets = [0, 4], sizes = [8, 1], strides = [1, 1]} : vector<8x25xf32> to vector<8x1xf32>
    %398 = vector.broadcast %397 : vector<8x1xf32> to vector<8x512xf32>
    %399 = arith.mulf %396, %398 : vector<8x512xf32>
    %400 = arith.addf %395, %399 : vector<8x512xf32>
    %c0_145 = arith.constant 0 : index
    %c108_146 = arith.constant 108 : index
    %401 = vector.load %arg8[%c0_145, %c108_146] : memref<8x768xf32, #tpu.memory_space<vmem>>, vector<8x512xf32>
    %402 = vector.extract_strided_slice %277 {offsets = [0, 9], sizes = [8, 1], strides = [1, 1]} : vector<8x25xf32> to vector<8x1xf32>
    %403 = vector.broadcast %402 : vector<8x1xf32> to vector<8x512xf32>
    %404 = arith.mulf %401, %403 : vector<8x512xf32>
    %405 = arith.addf %400, %404 : vector<8x512xf32>
    %c0_147 = arith.constant 0 : index
    %c130_148 = arith.constant 130 : index
    %406 = vector.load %arg8[%c0_147, %c130_148] : memref<8x768xf32, #tpu.memory_space<vmem>>, vector<8x512xf32>
    %407 = vector.extract_strided_slice %277 {offsets = [0, 14], sizes = [8, 1], strides = [1, 1]} : vector<8x25xf32> to vector<8x1xf32>
    %408 = vector.broadcast %407 : vector<8x1xf32> to vector<8x512xf32>
    %409 = arith.mulf %406, %408 : vector<8x512xf32>
    %410 = arith.addf %405, %409 : vector<8x512xf32>
    %c0_149 = arith.constant 0 : index
    %c152_150 = arith.constant 152 : index
    %411 = vector.load %arg8[%c0_149, %c152_150] : memref<8x768xf32, #tpu.memory_space<vmem>>, vector<8x512xf32>
    %412 = vector.extract_strided_slice %277 {offsets = [0, 19], sizes = [8, 1], strides = [1, 1]} : vector<8x25xf32> to vector<8x1xf32>
    %413 = vector.broadcast %412 : vector<8x1xf32> to vector<8x512xf32>
    %414 = arith.mulf %411, %413 : vector<8x512xf32>
    %415 = arith.addf %410, %414 : vector<8x512xf32>
    %c0_151 = arith.constant 0 : index
    %c174_152 = arith.constant 174 : index
    %416 = vector.load %arg8[%c0_151, %c174_152] : memref<8x768xf32, #tpu.memory_space<vmem>>, vector<8x512xf32>
    %417 = vector.extract_strided_slice %277 {offsets = [0, 24], sizes = [8, 1], strides = [1, 1]} : vector<8x25xf32> to vector<8x1xf32>
    %418 = vector.broadcast %417 : vector<8x1xf32> to vector<8x512xf32>
    %419 = arith.mulf %416, %418 : vector<8x512xf32>
    %420 = arith.addf %415, %419 : vector<8x512xf32>
    %421 = vector.broadcast %78 : vector<1x512xf32> to vector<8x512xf32>
    %422 = arith.mulf %420, %421 : vector<8x512xf32>
    %423 = arith.addf %394, %422 : vector<8x512xf32>
    %c1_153 = arith.constant 1 : index
    %c16_154 = arith.constant 16 : index
    %c0_155 = arith.constant 0 : index
    %424 = vector.load %arg7[%c1_153, %c16_154, %c0_155] : memref<2x24x512xf32, #tpu.memory_space<vmem>>, vector<1x8x512xf32>
    %425 = vector.shape_cast %424 : vector<1x8x512xf32> to vector<8x512xf32>
    %426 = vector.shape_cast %423 : vector<8x512xf32> to vector<1x8x512xf32>
    tpu.vector_store %arg7[%c1_153, %c16_154, %c0_155], %426 {strides = array<i32>} : memref<2x24x512xf32, #tpu.memory_space<vmem>>, vector<1x8x512xf32>,
    return
  }
  func.func @transform_0(%arg0: i32) -> (i32, i32, i32) {
    %c0_i32 = arith.constant 0 : i32
    %c0_i32_0 = arith.constant 0 : i32
    %c0_i32_1 = arith.constant 0 : i32
    return %arg0, %c0_i32, %c0_i32_0 : i32, i32, i32
  }
  func.func @transform_1(%arg0: i32) -> (i32, i32) {
    %c0_i32 = arith.constant 0 : i32
    %c0_i32_0 = arith.constant 0 : i32
    %c0_i32_1 = arith.constant 0 : i32
    return %c0_i32, %c0_i32_0 : i32, i32
  }
  func.func @transform_2(%arg0: i32) -> (i32, i32) {
    %c0_i32 = arith.constant 0 : i32
    %c0_i32_0 = arith.constant 0 : i32
    %c0_i32_1 = arith.constant 0 : i32
    return %c0_i32, %c0_i32_0 : i32, i32
  }
  func.func @transform_3(%arg0: i32) -> (i32, i32) {
    %c0_i32 = arith.constant 0 : i32
    %c0_i32_0 = arith.constant 0 : i32
    %c0_i32_1 = arith.constant 0 : i32
    return %c0_i32, %c0_i32_0 : i32, i32
  }
  func.func @transform_4(%arg0: i32) -> (i32, i32, i32) {
    %c0_i32 = arith.constant 0 : i32
    %c0_i32_0 = arith.constant 0 : i32
    %c0_i32_1 = arith.constant 0 : i32
    return %arg0, %c0_i32, %c0_i32_0 : i32, i32, i32
  }
  func.func @transform_5(%arg0: i32) -> (i32, i32, i32) {
    %c0_i32 = arith.constant 0 : i32
    %c0_i32_0 = arith.constant 0 : i32
    %c0_i32_1 = arith.constant 0 : i32
    return %arg0, %c0_i32, %c0_i32_0 : i32, i32, i32
  }
  func.func @transform_6(%arg0: i32) -> (i32, i32, i32) {
    %c0_i32 = arith.constant 0 : i32
    %c0_i32_0 = arith.constant 0 : i32
    %c0_i32_1 = arith.constant 0 : i32
    return %arg0, %c0_i32, %c0_i32_0 : i32, i32, i32
  }
}

</mosaic_0001>

<bundles_post_ra>
// kernel: match_cat_net_forward.1
= control target key start
LH: loop header
LB: loop body
LE: loop exit
PB: predicated region body
PF: predicated region fallthrough
CT: control target
= control target key end

     0   :  { %s3711_s21 = smov 0   ;;  %s5983_s0 = inlined_call_operand.vmem [shape: bf16[2,36,1536], index: 0, kind: input, shape index: {}]   ;;  %s5984_s1 = inlined_call_operand.vmem [shape: bf16[16,36], index: 1, kind: input, shape index: {}]   ;;  %s5985_s2 = inlined_call_operand.vmem [shape: f32[16,1], index: 2, kind: input, shape index: {}]   ;;  %s5986_s3 = inlined_call_operand.vmem [shape: f32[16,1], index: 3, kind: input, shape index: {}]   ;;  %s5987_s4 = inlined_call_operand.vmem [shape: f32[4,1,256], index: 4, kind: input, shape index: {}]   ;;  %s5988_s5 = inlined_call_operand.vmem [shape: f32[4,8,25], index: 5, kind: input, shape index: {}]   ;;  %s5989_s6 = inlined_call_operand.vmem [shape: f32[4,24,512], index: 6, kind: output, shape index: {}]  }
   0x1 LB: > { %s3717_s22 = sadd.s32 4294967295, %s3635_s21   ;;  %p3330_p0 = scmp.ge.s32.totalorder %s3635_s21, 1  ;;  %s3635_s21 = sphi %s3711_s21, %s16_s21  }
   0x2   : > { %p234_p1 = scmp.lt.s32.totalorder %s3635_s21, 3 }
   0x4   : > { %p235_p2 = pnand %p3330_p0, %p234_p1 }
   0x6   : > { %238 = sbr.rel (%p235_p2) target bundleno = 2317 (0x90d), region = 44 }
   0xd   : > { %p275_p3 = scmp.lt.s32.totalorder %s3717_s22, 1  ;;  %v6011_v0 = vmov 0   ;;  %v814_v1 = vld [vmem:[%s5986_s3] sm:$0xff]  ;;  %v866_v3 = vlaneseq  ;;  %v815_v4 = vld [vmem:[%s5986_s3 + $0x8] sm:$0xff]  ;;  %s3332_s7 = sshll.u32 %s3717_s22, 1  ;;  %vm491_vm0 = vcmask 1041408  }
   0xe   : > { %560 = vmatprep.mubr.bf16.mxu0 %v6011_v0  ;;  %601 = vmatprep.mubr.bf16.mxu1 %v6011_v0  ;;  %v782_v2 = vld [vmem:[%s5985_s2] sm:$0xff]  ;;  %v783_v5 = vld [vmem:[%s5985_s2 + $0x8] sm:$0xff]  ;;  %p3749_p4 = scmp.lt.s32.totalorder %s3332_s7, 3  ;;  %v6004_v20 = vmov 20   ;;  %vm487_vm1 = vcmask 293888   ;;  %s3643_s20 = smov 82  }
   0xf   : > { %s276_s25 = scalar_select %p275_p3, %s3717_s22, 1  ;;  %3474 = vset.pattern.permute.xlu1 %v6011_v0  ;;  %3473 = vset.pattern.permute.xlu0 %v6011_v0  ;;  %v3746_v6 = vand.u32 127, %v866_v3  ;;  %v3789_v32 = vld [vmem:[%s5984_s1] sm:$0xff]  }
  0x10   : > { %818 = vperm.xlu1 %3474, %v814_v1   ;;  %786 = vperm.xlu0 %3473, %v782_v2   ;;  %s6373_s7 = smov (!%p3749_p4, %s3332_s7), 3  ;;  %s3645_s22 = smov 83  }
  0x11   : > { %s3424_s28 = smul.u32 240, %s276_s25  ;;  %v3755_v9 = vadd.s32 256, %v3746_v6  ;;  %v3758_v10 = vadd.s32 384, %v3746_v6  ;;  %v3764_v14 = vadd.s32 128, %v3746_v6  ;;  %v871_v21 = vcvt.s32.f32 %v3746_v6  ;;  %s3335_s14 = sshll.u32 %s6373_s7, 3 }
  0x12   : > { %s3804_s19 = scalar_lea.vmem %s5988_s5, %s3335_s14  ;;  %s3652_s23 = smov 84  }
  0x13   : > { %s3743_s12 = scalar_lea.vmem %s5983_s0, %s3424_s28  ;;  %v873_v22 = vcvt.s32.f32 %v3755_v9  ;;  %v874_v23 = vcvt.s32.f32 %v3758_v10  ;;  %v872_v28 = vcvt.s32.f32 %v3764_v14  ;;  %v876_v35 = vmul.f32 0.045454547, %v871_v21  ;;  %v3816_v53 = vld [vmem:[%s3804_s19] sm:$0xff]  ;;  %s3661_s24 = smov 85  }
  0x14   : > { %v3575_v7 = vld [vmem:[%s3743_s12 + $0x4] ss:$48 sps:$4 sm:$0xff]   ;;  %823 = vperm.xlu1 %3474, %v815_v4   ;;  %791 = vperm.xlu0 %3473, %v783_v5   ;;  %v3577_v8 = vld [vmem:[%s3743_s12 + $0xc] ss:$48 sps:$4 sm:$0xff]   ;;  %v3579_v11 = vld [vmem:[%s3743_s12] ss:$48 sps:$4 sm:$0xff]  }
  0x15   : > { %528 = vmatprep.subr.bf16.mxu0 %v3575_v7  ;;  %v3580_v12 = vld [vmem:[%s3743_s12 + $0x8] ss:$48 sps:$4 sm:$0xff]   ;;  %569 = vmatprep.subr.bf16.mxu1 %v3577_v8  ;;  %v3581_v13 = vld [vmem:[%s3743_s12 + $0x64] ss:$48 sps:$4 sm:$0xff]   ;;  %v3583_v15 = vld [vmem:[%s3743_s12 + $0x6c] ss:$48 sps:$4 sm:$0xff]   ;;  %v880_v46 = vfloor.f32 %v876_v35 }
  0x16   : > { %529 = vmatpush1.bf16.msra.mxu0 %v3579_v11  ;;  %570 = vmatpush1.bf16.msra.mxu1 %v3580_v12  ;;  %v3585_v16 = vld [vmem:[%s3743_s12 + $0x60] ss:$48 sps:$4 sm:$0xff]   ;;  %v3586_v17 = vld [vmem:[%s3743_s12 + $0x68] ss:$48 sps:$4 sm:$0xff]   ;;  %v3594_v31 = vld [vmem:[%s3743_s12 + $0x14] ss:$48 sps:$4 sm:$0xff]  }
  0x17   : > { %530 = vmatprep.subr.bf16.mxu0 %v3581_v13  ;;  %v326_v18 = vld [vmem:[%s3743_s12 + $0xc0] sm:$0x33]  ;;  %v327_v19 = vld [vmem:[%s3743_s12 + $0xc8] sm:$0x33]  ;;  %571 = vmatprep.subr.bf16.mxu1 %v3583_v15  ;;  %v878_v34 = vmul.f32 0.045454547, %v873_v22 }
  0x18   : > { %3478 = vset.pattern.permute.xlu0 %v6004_v20  ;;  %v3364_v24 = vcombine.high %v326_v18, %v326_v18  ;;  %v3366_v25 = vcombine.high %v327_v19, %v327_v19  ;;  %v3363_v26 = vcombine.low %v326_v18, %v326_v18  ;;  %v3365_v27 = vcombine.low %v327_v19, %v327_v19  ;;  %v3597_v33 = vld [vmem:[%s3743_s12 + $0x1c] ss:$48 sps:$4 sm:$0xff]   ;;  %v3592_v37 = vld [vmem:[%s3743_s12 + $0x10] ss:$48 sps:$4 sm:$0xff]   ;;  %v3595_v38 = vld [vmem:[%s3743_s12 + $0x18] ss:$48 sps:$4 sm:$0xff]  }
  0x19   : > { %v879_v36 = vmul.f32 0.045454547, %v874_v23  ;;  %v877_v39 = vmul.f32 0.045454547, %v872_v28  ;;  %v882_v40 = vfloor.f32 %v878_v34  ;;  %v3600_v41 = vld [vmem:[%s3743_s12 + $0x74] ss:$48 sps:$4 sm:$0xff]   ;;  %1075 = vperm.xlu1 %3474, %v3816_v53   ;;  %1211 = vperm.xlu0 %3478, %v3816_v53  }
  0x1a   : > { %531 = vmatpush1.bf16.msra.mxu0 %v3585_v16  ;;  %572 = vmatpush1.bf16.msra.mxu1 %v3586_v17  ;;  %v493_v29 = vsel %vm491_vm0, %v3363_v26, 0  ;;  %v499_v30 = vsel %vm491_vm0, %v3365_v27, 0  ;;  %v3603_v42 = vld [vmem:[%s3743_s12 + $0x7c] ss:$48 sps:$4 sm:$0xff]   ;;  %v328_v43 = vld [vmem:[%s3743_s12 + $0xd0] sm:$0x33] }
  0x1b   : > { %3375 = vmatprep.subr.msk.bf16.mxu0 %vm491_vm0, %v3364_v24  ;;  %3377 = vmatprep.subr.msk.bf16.mxu1 %vm491_vm0, %v3366_v25  ;;  %v886_v44 = vmul.f32 22.0, %v882_v40  ;;  %v329_v45 = vld [vmem:[%s3743_s12 + $0xd8] sm:$0x33]  ;;  %v883_v47 = vfloor.f32 %v879_v36  ;;  %v3598_v48 = vld [vmem:[%s3743_s12 + $0x70] ss:$48 sps:$4 sm:$0xff]   ;;  %v881_v49 = vfloor.f32 %v877_v39  ;;  %v3368_v52 = vcombine.high %v328_v43, %v328_v43  ;;  %s3333_s25 = sshll.u32 %s6373_s7, 1 }
  0x1c   : > { %v3601_v51 = vld [vmem:[%s3743_s12 + $0x78] ss:$48 sps:$4 sm:$0xff]   ;;  %v3370_v54 = vcombine.high %v329_v45, %v329_v45  ;;  %v3367_v55 = vcombine.low %v328_v43, %v328_v43  ;;  %v3369_v56 = vcombine.low %v329_v45, %v329_v45  ;;  %v884_v57 = vmul.f32 22.0, %v880_v46  ;;  %v3610_v61 = vld [vmem:[%s3743_s12 + $0x24] ss:$48 sps:$4 sm:$0xff]   ;;  %s3951_s28 = scalar_lea.vmem %s5987_s4, %s3333_s25  ;;  %s3662_s29 = smov 106  }
  0x1d   : > { %v3812_v50 = vsub.f32 %v873_v22, %v886_v44  ;;  %v887_v58 = vmul.f32 22.0, %v883_v47  ;;  %v885_v60 = vmul.f32 22.0, %v881_v49  ;;  %v3613_v2 = vld [vmem:[%s3743_s12 + $0x2c] ss:$48 sps:$4 sm:$0xff]   ;;  %v3608_v8 = vld [vmem:[%s3743_s12 + $0x20] ss:$48 sps:$4 sm:$0xff]  }
  0x1e   : > { %533 = vmatpush1.bf16.msra.mxu0 %v493_v29  ;;  %574 = vmatpush1.bf16.msra.mxu1 %v499_v30  ;;  %v505_v63 = vsel %vm491_vm0, %v3367_v55, 0  ;;  %v511_v1 = vsel %vm491_vm0, %v3369_v56, 0  ;;  %v3833_v4 = vsub.f32 %v871_v21, %v884_v57  ;;  %v3611_v9 = vld [vmem:[%s3743_s12 + $0x28] ss:$48 sps:$4 sm:$0xff]   ;;  %v6008_v11 = vmov 5   ;;  %s3663_s30 = smov 40  }
  0x1f   : > { %612 = vmatprep.subr.bf16.mxu0 %v3594_v31  ;;  %655 = vmatprep.subr.bf16.mxu1 %v3597_v33  ;;  %v906_v59 = vadd.f32 -2.0, %v3812_v50  ;;  %v3823_v62 = vsub.f32 %v874_v23, %v887_v58  ;;  %v930_v7 = vadd.f32 -1.0, %v3812_v50  ;;  %v3842_v12 = vsub.f32 %v872_v28, %v885_v60  ;;  %v3616_v13 = vld [vmem:[%s3743_s12 + $0x84] ss:$48 sps:$4 sm:$0xff]   ;;  %v3619_v17 = vld [vmem:[%s3743_s12 + $0x8c] ss:$48 sps:$4 sm:$0xff]  }
  0x20   : > { %3475 = vset.pattern.permute.xlu1 %v6008_v11  ;;  %v6014_v15 = vmov 0.0   ;;  %v330_v18 = vld [vmem:[%s3743_s12 + $0xe0] sm:$0x33]  ;;  %v331_v19 = vld [vmem:[%s3743_s12 + $0xe8] sm:$0x33]  ;;  %v904_v14 = vadd.f32 -2.0, %v3833_v4 }
  0x21   : > { %3376 = vmatmul.mubr.msk.bf16.vlgmr.msra.gmra.mrb[0].mxu0 %vm487_vm1, %v3789_v32  ;;  %3378 = vmatmul.mubr.msk.bf16.vlgmr.msra.gmra.mrb[0].mxu1 %vm487_vm1, %v3789_v32  ;;  %vm910_vm2 = vcmp.ge.f32.partialorder %v906_v59, 0.0  ;;  %vm914_vm3 = vcmp.le.f32.partialorder %v906_v59, 21.0  ;;  %v907_v5 = vadd.f32 -2.0, %v3823_v62  ;;  %v931_v6 = vadd.f32 -1.0, %v3823_v62  ;;  %v3614_v25 = vld [vmem:[%s3743_s12 + $0x80] ss:$48 sps:$4 sm:$0xff]  }
  0x22   : > { %613 = vmatpush1.bf16.msra.mxu0 %v3592_v37  ;;  %656 = vmatpush1.bf16.msra.mxu1 %v3595_v38  ;;  %vm918_vm4 = vmand %vm910_vm2, %vm914_vm3  ;;  %v6007_v22 = vmov 6   ;;  %vm934_vm8 = vcmp.ge.f32.partialorder %v930_v7, 0.0  ;;  %vm938_vm9 = vcmp.le.f32.partialorder %v930_v7, 21.0  ;;  %v905_v23 = vadd.f32 -2.0, %v3842_v12  ;;  %v3617_v26 = vld [vmem:[%s3743_s12 + $0x88] ss:$48 sps:$4 sm:$0xff]  }
  0x23   : > { %614 = vmatprep.subr.bf16.mxu0 %v3600_v41  ;;  %657 = vmatprep.subr.bf16.mxu1 %v3603_v42  ;;  %vm911_vm5 = vcmp.ge.f32.partialorder %v907_v5, 0.0  ;;  %vm915_vm6 = vcmp.le.f32.partialorder %v907_v5, 21.0  ;;  %v3390_v16 = vsel %vm918_vm4, 1.0, %v6014_v15  ;;  %vm935_vm10 = vcmp.ge.f32.partialorder %v931_v6, 0.0  ;;  %vm3863_vm12 = vmand %vm934_vm8, %vm938_vm9  ;;  %s3664_s8 = smov 62   ;;  %s3425_s9 = smul.u32 96, %s6373_s7 }
  0x24   : > { %644 = vmatprep.mubr.bf16.mxu0 %v6011_v0  ;;  %687 = vmatprep.mubr.bf16.mxu1 %v6011_v0  ;;  %vm919_vm7 = vmand %vm911_vm5, %vm915_vm6  ;;  %vm939_vm11 = vcmp.le.f32.partialorder %v931_v6, 21.0  ;;  %v3372_v27 = vcombine.high %v330_v18, %v330_v18  ;;  %v3374_v28 = vcombine.high %v331_v19, %v331_v19  ;;  %v3371_v29 = vcombine.low %v330_v18, %v330_v18  ;;  %s3670_s12 = smov 86   ;;  %s3671_s13 = smov 127  }
  0x25   : > { %1089 = vperm.xlu1 %3475, %v3816_v53   ;;  %v3391_v21 = vsel %vm919_vm7, 1.0, %v6014_v15  ;;  %3490 = vset.pattern.permute.xlu0 %v6007_v22  ;;  %v3373_v30 = vcombine.low %v331_v19, %v331_v19  ;;  %vm908_vm13 = vcmp.ge.f32.partialorder %v904_v14, 0.0  ;;  %vm912_vm14 = vcmp.le.f32.partialorder %v904_v14, 21.0  ;;  %vm943_vm15 = vmand %vm935_vm10, %vm939_vm11  ;;  %s4078_s11 = scalar_lea.vmem %s5989_s6, %s3425_s9  ;;  %s3672_s14 = smov 126  }
  0x26   : > { %615 = vmatpush1.bf16.msra.mxu0 %v3598_v48  ;;  %658 = vmatpush1.bf16.msra.mxu1 %v3601_v51  ;;  %v3485_v24 = vpack.i.bf16 %v3391_v21, %v3390_v16  ;;  %v6010_v33 = vmov 10   ;;  %vm909_vm2 = vcmp.ge.f32.partialorder %v905_v23, 0.0  ;;  %vm913_vm3 = vcmp.le.f32.partialorder %v905_v23, 21.0  ;;  %vm916_vm4 = vmand %vm908_vm13, %vm912_vm14  ;;  %v3408_v21 = vld [vmem:[%s3951_s28 + $0x2] sm:$0x3]  ;;  %s3673_s15 = smov 125  }
  0x27   : > { %3379 = vmatprep.subr.msk.bf16.mxu0 %vm491_vm0, %v3368_v52  ;;  %3381 = vmatprep.subr.msk.bf16.mxu1 %vm491_vm0, %v3370_v54  ;;  %v517_v34 = vsel %vm491_vm0, %v3371_v29, 0  ;;  %v523_v35 = vsel %vm491_vm0, %v3373_v30, 0  ;;  %v3394_v36 = vsel %vm3863_vm12, 1.0, %v6014_v15  ;;  %v3395_v37 = vsel %vm943_vm15, 1.0, %v6014_v15  ;;  %vm917_vm5 = vmand %vm909_vm2, %vm913_vm3  ;;  %s3674_s16 = smov 124   ;;  %s3675_s17 = smov 46  }
  0x28   : > { %3486 = vrot.lane.b32.xlu0 %v3485_v24, %s3643_s20  ;;  %v3499_v38 = vpack.i.bf16 %v3395_v37, %v3394_v36  ;;  %v3388_v39 = vsel %vm916_vm4, 1.0, %v6014_v15  ;;  %v3389_v40 = vsel %vm917_vm5, 1.0, %v6014_v15  ;;  %v6006_v41 = vmov 15  }
  0x29   : > { %3476 = vset.pattern.permute.xlu1 %v6010_v33  ;;  %v3479_v42 = vpack.i.bf16 %v3389_v40, %v3388_v39  ;;  %v5992_v43 = vmov 2   ;;  %vm962_vm6 = vcmp.le.f32.partialorder %v3812_v50, 21.0  ;;  %v6003_v44 = vmov 1  }
  0x2a   : > { %617 = vmatpush1.bf16.msra.mxu0 %v505_v63  ;;  %660 = vmatpush1.bf16.msra.mxu1 %v511_v1  ;;  %vm963_vm7 = vcmp.le.f32.partialorder %v3823_v62, 21.0  ;;  %v928_v45 = vadd.f32 -1.0, %v3833_v4  ;;  %v929_v46 = vadd.f32 -1.0, %v3842_v12  ;;  %v6002_v49 = vmov 11  }
  0x2b   : > { %696 = vmatprep.subr.bf16.mxu0 %v3610_v61  ;;  %739 = vmatprep.subr.bf16.mxu1 %v3613_v2  ;;  %v5996_v51 = vmov 17   ;;  %v6001_v54 = vmov 16   ;;  %v5990_v55 = vmov 3   ;;  %v5998_v58 = vmov 21  }
  0x2c   : > { %1128 = vperm.xlu1 %3476, %v3816_v53   ;;  %1295 = vperm.xlu0 %3490, %v3816_v53   ;;  %vm932_vm10 = vcmp.ge.f32.partialorder %v928_v45, 0.0  ;;  %vm936_vm11 = vcmp.le.f32.partialorder %v928_v45, 21.0  ;;  %vm933_vm12 = vcmp.ge.f32.partialorder %v929_v46, 0.0  ;;  %vm937_vm13 = vcmp.le.f32.partialorder %v929_v46, 21.0 }
  0x2d   : > { %3380 = vmatmul.mubr.msk.bf16.vlgmr.msra.gmra.mrb[4].mxu0 %vm487_vm1, %v3789_v32  ;;  %3382 = vmatmul.mubr.msk.bf16.vlgmr.msra.gmra.mrb[4].mxu1 %vm487_vm1, %v3789_v32  ;;  %vm940_vm14 = vmand %vm932_vm10, %vm936_vm11  ;;  %vm956_vm2 = vcmp.ge.f32.partialorder %v3833_v4, 0.0  ;;  %vm960_vm3 = vcmp.le.f32.partialorder %v3833_v4, 21.0  ;;  %v5995_v60 = vmov 13   ;;  %vm957_vm4 = vcmp.ge.f32.partialorder %v3842_v12, 0.0 }
  0x2e   : > { %697 = vmatpush1.bf16.msra.mxu0 %v3608_v8  ;;  %740 = vmatpush1.bf16.msra.mxu1 %v3611_v9  ;;  %vm941_vm15 = vmand %vm933_vm12, %vm937_vm13  ;;  %v3392_v56 = vsel %vm940_vm14, 1.0, %v6014_v15  ;;  %vm961_vm5 = vcmp.le.f32.partialorder %v3842_v12, 21.0  ;;  %v6000_v61 = vmov 7   ;;  %v5994_v2 = vmov 22  }
  0x2f   : > { %698 = vmatprep.subr.bf16.mxu0 %v3616_v13  ;;  %741 = vmatprep.subr.bf16.mxu1 %v3619_v17  ;;  %v3393_v57 = vsel %vm941_vm15, 1.0, %v6014_v15  ;;  %v976_v7 = vadd.f32 1.0, %v3833_v4  ;;  %v5997_v8 = vmov 8   ;;  %v977_v9 = vadd.f32 1.0, %v3842_v12 }
  0x30   : > { %728 = vmatprep.mubr.bf16.mxu0 %v6011_v0  ;;  %771 = vmatprep.mubr.bf16.mxu1 %v6011_v0  ;;  %v3494_v59 = vpack.i.bf16 %v3393_v57, %v3392_v56  ;;  %v5993_v6 = vmov 18   ;;  %v5991_v17 = vmov 23   ;;  %v3945_v19 = vshrl.u32 %v866_v3, 7 }
  0x31   : > { %3477 = vset.pattern.permute.xlu1 %v6006_v41  ;;  %3500 = vrot.lane.b32.xlu0 %v3499_v38, %s3645_s22  ;;  %vm1458_vm12 = vcmask 678912   ;;  %vm895_vm13 = vcmp.lt.s32.totalorder %v3758_v10, 484 }
  0x32   : > { %699 = vmatpush1.bf16.msra.mxu0 %v3614_v25  ;;  %742 = vmatpush1.bf16.msra.mxu1 %v3617_v26  ;;  %v1030_v14 = vsub.s32 0, %v3945_v19  ;;  %v1034_v23 = vsub.s32 1, %v3945_v19 }
  0x33   : > { %3383 = vmatprep.subr.msk.bf16.mxu0 %vm491_vm0, %v3372_v27  ;;  %3385 = vmatprep.subr.msk.bf16.mxu1 %vm491_vm0, %v3374_v28  ;;  %vm958_vm0 = vcmp.ge.f32.partialorder %v3812_v50, 0.0 }
  0x34   : > { %1172 = vperm.xlu1 %3477, %v3816_v53   ;;  %3504 = vset.pattern.permute.xlu0 %v5992_v43  ;;  %vm966_vm8 = vmand %vm958_vm0, %vm962_vm6  ;;  %v3958_v24 = vrot.slane %v3408_v21, %v1030_v14  ;;  %v3962_v3 = vrot.slane %v3408_v21, %v1034_v23 }
  0x35   : > { %1503 = vperm.xlu0 %3504, %v3816_v53   ;;  %v3398_v47 = vsel %vm966_vm8, 1.0, %v6014_v15  ;;  %vm964_vm0 = vmand %vm956_vm2, %vm960_vm3  ;;  %vm981_vm8 = vcmp.ge.f32.partialorder %v977_v9, 0.0 }
  0x36   : > { %701 = vmatpush1.bf16.msra.mxu0 %v517_v34  ;;  %744 = vmatpush1.bf16.msra.mxu1 %v523_v35  ;;  %vm965_vm6 = vmand %vm957_vm4, %vm961_vm5  ;;  %v3396_v63 = vsel %vm964_vm0, 1.0, %v6014_v15  ;;  %vm1112_vm0 = vcmask 867328  }
  0x37   : > { %v3397_v1 = vsel %vm965_vm6, 1.0, %v6014_v15  ;;  %vm1151_vm6 = vcmask 687104  }
  0x38   : > { %3480 = vrot.lane.b32.xlu1 %v3479_v42, %s3643_s20  ;;  %v3509_v5 = vpack.i.bf16 %v3397_v1, %v3396_v63 }
  0x39   : > { %3384 = vmatmul.mubr.msk.bf16.vlgmr.msra.gmra.mrb[8].mxu0 %vm487_vm1, %v3789_v32  ;;  %3386 = vmatmul.mubr.msk.bf16.vlgmr.msra.gmra.mrb[8].mxu1 %vm487_vm1, %v3789_v32  ;;  %vm959_vm1 = vcmp.ge.f32.partialorder %v3823_v62, 0.0  ;;  %v5999_v32 = vmov 12  }
  0x3a   : > { %3484 = vset.pattern.permute.xlu1 %v6003_v44  ;;  %3506 = vset.pattern.permute.xlu0 %v5999_v32  ;;  %vm967_vm9 = vmand %vm959_vm1, %vm963_vm7  ;;  %vm980_vm1 = vcmp.ge.f32.partialorder %v976_v7, 0.0  ;;  %vm984_vm7 = vcmp.le.f32.partialorder %v976_v7, 21.0 }
  0x3b   : > { %1555 = vperm.xlu0 %3506, %v3816_v53   ;;  %v3399_v48 = vsel %vm967_vm9, 1.0, %v6014_v15  ;;  %vm985_vm9 = vcmp.le.f32.partialorder %v977_v9, 21.0  ;;  %vm988_vm10 = vmand %vm980_vm1, %vm984_vm7 }
  0x3c   : > { %1281 = vperm.xlu1 %3484, %v3816_v53   ;;  %v3514_v52 = vpack.i.bf16 %v3399_v48, %v3398_v47  ;;  %vm989_vm11 = vmand %vm981_vm8, %vm985_vm9  ;;  %v3400_v13 = vsel %vm988_vm10, 1.0, %v6014_v15 }
  0x3d   : > { %v3401_v16 = vsel %vm989_vm11, 1.0, %v6014_v15 }
  0x3e   : > { %v3524_v18 = vpack.i.bf16 %v3401_v16, %v3400_v13 }
  0x3f   : > { %3507 = vset.pattern.permute.xlu0 %v5996_v51 }
  0x40   : > { %3491 = vset.pattern.permute.xlu1 %v6002_v49  ;;  %1588 = vperm.xlu0 %3507, %v3816_v53  }
  0x41   : > { %1333 = vperm.xlu1 %3491, %v3816_v53  }
  0x44   : > { %3515 = vrot.lane.b32.xlu0 %v3514_v52, %s3652_s23 }
  0x45   : > { %3492 = vset.pattern.permute.xlu1 %v6001_v54  ;;  %3519 = vset.pattern.permute.xlu0 %v5990_v55 }
  0x46   : > { %1371 = vperm.xlu1 %3492, %v3816_v53  }
  0x48   : > { %1719 = vperm.xlu0 %3519, %v3816_v53  }
  0x4a   : > { %3493 = vset.pattern.permute.xlu1 %v5998_v58 }
  0x4b   : > { %1409 = vperm.xlu1 %3493, %v3816_v53  }
  0x4c   : > { %3521 = vset.pattern.permute.xlu0 %v5995_v60 }
  0x4d   : > { %1771 = vperm.xlu0 %3521, %v3816_v53  }
  0x4f   : > { %3495 = vrot.lane.b32.xlu1 %v3494_v59, %s3645_s22 }
  0x50   : > { %3505 = vset.pattern.permute.xlu1 %v6000_v61 }
  0x53   : > { %1517 = vperm.xlu1 %3505, %v3816_v53  }
  0x57   : > { %3508 = vset.pattern.permute.xlu1 %v5994_v2 }
  0x58   : > { %1626 = vperm.xlu1 %3508, %v3816_v53  }
  0x5c   : > { %3510 = vrot.lane.b32.xlu1 %v3509_v5, %s3652_s23 }
  0x5d   : > { %3520 = vset.pattern.permute.xlu1 %v5997_v8 }
  0x60   : > { %1733 = vperm.xlu1 %3520, %v3816_v53  }
  0x64   : > { %3522 = vset.pattern.permute.xlu1 %v5993_v6 }
  0x65   : > { %1809 = vperm.xlu1 %3522, %v3816_v53  }
  0x69   : > { %3523 = vset.pattern.permute.xlu1 %v5991_v17 }
  0x6a   : > { %1847 = vperm.xlu1 %3523, %v3816_v53  }
  0x6e   : > { %3525 = vrot.lane.b32.xlu1 %v3524_v18, %s3661_s24 }
  0x8f   : > { %v3964_v25 = vpop.permute.xlu1 %818  ;;  %v3966_v26 = vpop.permute.xlu0 %786 }
  0x93   : > { %v3968_v27 = vpop.permute.xlu1 %823  ;;  %v3970_v28 = vpop.permute.xlu0 %791 }
  0x94   : > { %6118 = vst [vmem:[#allocation3_spill] sm:$0xff] %v3968_v27  ;;  %6119 = vst [vmem:[#allocation4_spill] sm:$0xff] %v3970_v28 }
  0x98   : > { %v3972_v29 = vpop.permute.xlu1 %1075  ;;  %v3974_v30 = vpop.permute.xlu0 %1211 }
  0x99   : > { %6120 = vst [vmem:[#allocation5_spill] sm:$0xff] %v3972_v29  ;;  %v1218_v39 = vmul.f32 0.0, %v3974_v30 }
  0x9c   : > { %v3980_v35 = vpop.permute.xlu0 %3486 }
  0x9d   : > { %6121 = vst [vmem:[#allocation6_spill] sm:$0xff] %v3980_v35 }
  0xa4   : > { %v3976_v31 = vpop.permute.xlu1 %1089 }
  0xa5   : > { %v1092_v34 = vmul.f32 0.0, %v3976_v31 }
  0xa7   : > { %1102 = vrot.lane.b32.xlu1 %v1092_v34, %s3662_s29 }
  0xab   : > { %v3982_v36 = vpop.permute.xlu1 %1128  ;;  %v3985_v38 = vpop.permute.xlu0 %1295 }
  0xac   : > { %v1131_v37 = vmul.f32 0.0, %v3982_v36  ;;  %v1298_v52 = vmul.f32 0.0, %v3985_v38 }
  0xae   : > { %1141 = vrot.lane.b32.xlu0 %v1131_v37, %s3652_s23 }
  0xaf   : > { %v3501_v40 = vpop.permute.xlu0 %3500 }
  0xb0   : > { %v3991_v45 = vunpack.i.h.bf16 %v3501_v40  ;;  %v3502_v46 = vunpack.i.l.bf16 %v3501_v40 }
  0xb2   : > { %6122 = vst [vmem:[#allocation7_spill] sm:$0xff] %v3991_v45  ;;  %1232 = vrot.lane.b32.xlu0 %v1218_v39, %s3663_s30  ;;  %v3997_v48 = vsel %vm1458_vm12, %v3502_v46, %v3991_v45 }
  0xb3   : > { %v3989_v42 = vpop.permute.xlu1 %1172  ;;  %6123 = vst [vmem:[#allocation8_spill] sm:$0xff] %v3997_v48 }
  0xb4   : > { %v1179_v47 = vmul.f32 0.0, %v3989_v42  ;;  %v4003_v57 = vpop.permute.xlu0 %1503 }
  0xb6   : > { %1193 = vrot.lane.b32.xlu1 %v1179_v47, %s3664_s8 }
  0xb7   : > { %v4001_v56 = vpop.permute.xlu1 %3480 }
  0xb8   : > { %6124 = vst [vmem:[#allocation9_spill] sm:$0xff] %v4001_v56 }
  0xba   : > { %1308 = vrot.lane.b32.xlu1 %v1298_v52, %s3662_s29  ;;  %v4008_v63 = vpop.permute.xlu0 %1555 }
  0xbb   : > { %v4006_v59 = vpop.permute.xlu1 %1281 }
  0xbf   : > { %v4016_v9 = vpop.permute.xlu0 %1588 }
  0xc0   : > { %v4010_v1 = vpop.permute.xlu1 %1333  ;;  %v1595_v34 = vmul.f32 0.0, %v4016_v9 }
  0xc1   : > { %v1336_v5 = vmul.f32 0.0, %v4010_v1 }
  0xc3   : > { %1346 = vrot.lane.b32.xlu0 %v1336_v5, %s3652_s23  ;;  %v4023_v21 = vpop.permute.xlu0 %3515 }
  0xc4   : > { %6125 = vst [vmem:[#allocation10_spill] sm:$0xff] %v4023_v21 }
  0xc5   : > { %v4014_v7 = vpop.permute.xlu1 %1371 }
  0xc6   : > { %v1378_v13 = vmul.f32 0.0, %v4014_v7 }
  0xc7   : > { %v4031_v40 = vpop.permute.xlu0 %1719 }
  0xc8   : > { %1392 = vrot.lane.b32.xlu0 %v1378_v13, %s3664_s8 }
  0xca   : > { %v4020_v16 = vpop.permute.xlu1 %1409 }
  0xcb   : > { %v1416_v18 = vmul.f32 0.0, %v4020_v16 }
  0xcd   : > { %1430 = vrot.lane.b32.xlu0 %v1416_v18, %s3663_s30  ;;  %v4044_v18 = vpop.permute.xlu0 %1771 }
  0xce   : > { %v4027_v37 = vpop.permute.xlu1 %3495  ;;  %v1778_v55 = vmul.f32 0.0, %v4044_v18 }
  0xcf   : > { %v6009_v39 = vunpack.i.h.bf16 %v4027_v37 }
  0xd1   : > { %1609 = vrot.lane.b32.xlu0 %v1595_v34, %s3664_s8  ;;  %v4036_v47 = vsel %vm1458_vm12, %v6009_v39, %v3502_v46 }
  0xd2   : > { %6126 = vst [vmem:[#allocation11_spill] sm:$0xff] %v4036_v47  ;;  %v4038_v52 = vpop.permute.xlu1 %1517 }
  0xd3   : > { %v1520_v5 = vmul.f32 0.0, %v4038_v52 }
  0xd5   : > { %1530 = vrot.lane.b32.xlu1 %v1520_v5, %s3662_s29 }
  0xd7   : > { %v4042_v13 = vpop.permute.xlu1 %1626 }
  0xd8   : > { %v1633_v34 = vmul.f32 0.0, %v4042_v13 }
  0xda   : > { %1647 = vrot.lane.b32.xlu0 %v1633_v34, %s3663_s30 }
  0xdb   : > { %v4049_v17 = vpop.permute.xlu1 %3510 }
  0xde   : > { %1792 = vrot.lane.b32.xlu0 %v1778_v55, %s3652_s23 }
  0xdf   : > { %v4052_v46 = vpop.permute.xlu1 %1733 }
  0xe0   : > { %v1736_v43 = vmul.f32 0.0, %v4052_v46 }
  0xe2   : > { %1746 = vrot.lane.b32.xlu1 %v1736_v43, %s3662_s29 }
  0xe4   : > { %v4056_v5 = vpop.permute.xlu1 %1809 }
  0xe5   : > { %v1816_v6 = vmul.f32 0.0, %v4056_v5 }
  0xe7   : > { %1830 = vrot.lane.b32.xlu0 %v1816_v6, %s3664_s8 }
  0xe9   : > { %v4060_v2 = vpop.permute.xlu1 %1847 }
  0xea   : > { %v1854_v34 = vmul.f32 0.0, %v4060_v2 }
  0xec   : > { %1868 = vrot.lane.b32.xlu0 %v1854_v34, %s3663_s30 }
  0xf4   : > { %v562_v60 = vpop.f32.mrb[0].mxu0  ;;  %v603_v55 = vpop.f32.mrb[0].mxu1 }
  0xf5   : > { %v796_v51 = vmul.f32 %v3966_v26, %v603_v55  ;;  %v564_v8 = vpop.f32.mrb[1].mxu0  ;;  %v605_v58 = vpop.f32.mrb[1].mxu1  ;;  %v794_v43 = vmul.f32 %v3966_v26, %v562_v60 }
  0xf6   : > { %v795_v32 = vmul.f32 %v3966_v26, %v564_v8  ;;  %v797_v61 = vmul.f32 %v3966_v26, %v605_v58  ;;  %v607_v6 = vpop.f32.mrb[2].mxu1  ;;  %v566_v54 = vpop.f32.mrb[2].mxu0 }
  0xf7   : > { %v4070_v49 = vadd.f32 %v3964_v25, %v796_v51  ;;  %v806_v34 = vmul.f32 %v3970_v28, %v607_v6  ;;  %v4073_v44 = vpop.f32.mrb[3].mxu1  ;;  %v567_v20 = vpop.f32.mrb[3].mxu0  ;;  %v6005_v54 = vmov 9   ;;  %v826_v8 = vadd.f32 %v3964_v25, %v794_v43 }
  0xf8   : > { %v4081_v58 = vadd.f32 %v3964_v25, %v797_v61  ;;  %3535 = vset.pattern.permute.xlu1 %v6005_v54  ;;  %v827_v20 = vadd.f32 %v3964_v25, %v795_v32  ;;  %v1026_v61 = vld [vmem:[%s3951_s28] sm:$0x3] }
  0xf9   : > { %v6013_v51 = vmax.f32 %v4070_v49, 0.0  ;;  %v838_v60 = vadd.f32 %v3968_v27, %v806_v34  ;;  %v846_v43 = vmax.f32 %v826_v8, 0.0  ;;  %v1031_v32 = vrot.slane %v1026_v61, %v1030_v14 }
  0xfa   : > { %v6012_v55 = vmax.f32 %v4081_v58, 0.0  ;;  %v847_v41 = vmax.f32 %v827_v20, 0.0  ;;  %v1035_v22 = vrot.slane %v1026_v61, %v1034_v23 }
  0xfb   : > { %1055 = vst [vmem:[%s4078_s11 + $0x20] sm:$0xff] %v6013_v51  ;;  %v4092_v6 = vmax.f32 %v838_v60, 0.0  ;;  %v1038_v61 = vmul.f32 %v1031_v32, %v846_v43 }
  0xfc   : > { %1056 = vst [vmem:[%s4078_s11 + $0x28] sm:$0xff] %v6012_v55 }
  0xfd   : > { %6127 = vst [vmem:[#allocation12_spill] sm:$0xff] %v4092_v6  ;;  %v1374_v54 = vmul.f32 %v4014_v7, %v4092_v6  ;;  %v1093_v34 = vmul.f32 %v3976_v31, %v4092_v6  ;;  %v1412_v8 = vmul.f32 %v4020_v16, %v4092_v6  ;;  %v1132_v14 = vmul.f32 %v3982_v36, %v4092_v6 }
  0xfe   : > { %v1175_v43 = vmul.f32 %v3989_v42, %v4092_v6  ;;  %v1337_v48 = vmul.f32 %v4010_v1, %v4092_v6 }
  0xff   : > { %1384 = vrot.lane.b32.xlu0 %v1374_v54, %s3664_s8  ;;  %1104 = vrot.lane.b32.xlu1 %v1093_v34, %s3662_s29  ;;  %v1039_v34 = vmul.f32 %v1035_v22, %v847_v41 }
 0x100   : > { %v646_v60 = vpop.f32.mrb[4].mxu0  ;;  %v689_v11 = vpop.f32.mrb[4].mxu1 }
 0x101   : > { %v798_v39 = vmul.f32 %v3966_v26, %v646_v60  ;;  %v800_v33 = vmul.f32 %v3966_v26, %v689_v11  ;;  %v648_v0 = vpop.f32.mrb[5].mxu0  ;;  %v691_v55 = vpop.f32.mrb[5].mxu1 }
 0x102   : > { %v799_v19 = vmul.f32 %v3966_v26, %v648_v0  ;;  %v801_v23 = vmul.f32 %v3966_v26, %v691_v55  ;;  %v4116_v54 = vpop.f32.mrb[6].mxu0  ;;  %v693_v20 = vpop.f32.mrb[6].mxu1  ;;  %v1521_v55 = vmul.f32 %v4038_v52, %v4092_v6 }
 0x103   : > { %v4119_v60 = vadd.f32 %v3964_v25, %v798_v39  ;;  %v832_v11 = vadd.f32 %v3964_v25, %v800_v33  ;;  %1422 = vrot.lane.b32.xlu0 %v1412_v8, %s3663_s30  ;;  %1143 = vrot.lane.b32.xlu1 %v1132_v14, %s3652_s23  ;;  %v652_v51 = vpop.f32.mrb[7].mxu0  ;;  %v694_v15 = vpop.f32.mrb[7].mxu1  ;;  %v4137_v8 = vadd.f32 %v1039_v34, %v1038_v61  ;;  %v6128_v14 = vmov 0.0  }
 0x104   : > { %v4126_v0 = vadd.f32 %v3964_v25, %v799_v19  ;;  %v833_v22 = vadd.f32 %v3964_v25, %v801_v23  ;;  %v809_v41 = vmul.f32 %v3970_v28, %v652_v51  ;;  %v3387_v19 = vsel %vm895_vm13, 1.0, %v6128_v14 }
 0x105   : > { %v6017_v39 = vmax.f32 %v4119_v60, 0.0  ;;  %v852_v33 = vmax.f32 %v832_v11, 0.0  ;;  %v1629_v61 = vmul.f32 %v4042_v13, %v4092_v6  ;;  %v1214_v34 = vmul.f32 %v3974_v30, %v4092_v6 }
 0x106   : > { %v6016_v15 = vmax.f32 %v4126_v0, 0.0  ;;  %v853_v10 = vmax.f32 %v833_v22, 0.0  ;;  %v841_v32 = vadd.f32 %v3968_v27, %v809_v41 }
 0x107   : > { %1057 = vst [vmem:[%s4078_s11 + $0x30] sm:$0xff] %v6017_v39  ;;  %v2203_v51 = vmul.f32 %v3958_v24, %v852_v33  ;;  %1532 = vrot.lane.b32.xlu0 %v1521_v55, %s3662_s29  ;;  %1185 = vrot.lane.b32.xlu1 %v1175_v43, %s3664_s8  ;;  %v1737_v43 = vmul.f32 %v4052_v46, %v4092_v6 }
 0x108   : > { %1058 = vst [vmem:[%s4078_s11 + $0x38] sm:$0xff] %v6016_v15  ;;  %v2204_v23 = vmul.f32 %v3962_v3, %v853_v10  ;;  %v861_v20 = vmax.f32 %v841_v32, 0.0 }
 0x10a   : > { %v4154_v11 = vmul.f32 %v3387_v19, %v861_v20 }
 0x10b   : > { %1639 = vrot.lane.b32.xlu0 %v1629_v61, %s3663_s30  ;;  %1224 = vrot.lane.b32.xlu1 %v1214_v34, %s3663_s30  ;;  %v1299_v34 = vmul.f32 %v3985_v38, %v4092_v6 }
 0x10c   : > { %v730_v24 = vpop.f32.mrb[8].mxu0  ;;  %v773_v22 = vpop.f32.mrb[8].mxu1 }
 0x10d   : > { %v802_v41 = vmul.f32 %v3966_v26, %v730_v24  ;;  %v804_v33 = vmul.f32 %v3966_v26, %v773_v22  ;;  %v732_v3 = vpop.f32.mrb[9].mxu0  ;;  %v775_v55 = vpop.f32.mrb[9].mxu1 }
 0x10e   : > { %v803_v10 = vmul.f32 %v3966_v26, %v732_v3  ;;  %v805_v32 = vmul.f32 %v3966_v26, %v775_v55  ;;  %v4164_v20 = vpop.f32.mrb[10].mxu0  ;;  %v4166_v61 = vpop.f32.mrb[10].mxu1 }
 0x10f   : > { %6129 = vst [vmem:[#allocation13_spill] sm:$0xff] %v4164_v20  ;;  %6130 = vst [vmem:[#allocation14_spill] sm:$0xff] %v4166_v61  ;;  %v834_v24 = vadd.f32 %v3964_v25, %v802_v41  ;;  %v836_v22 = vadd.f32 %v3964_v25, %v804_v33  ;;  %1748 = vrot.lane.b32.xlu0 %v1737_v43, %s3662_s29  ;;  %v4173_v15 = vpop.f32.mrb[11].mxu0  ;;  %v779_v3 = vpop.f32.mrb[11].mxu1  ;;  %1310 = vrot.lane.b32.xlu1 %v1299_v34, %s3662_s29  ;;  %v6153_v61 = vmax.f32 %v4081_v58, 0.0 }
 0x110   : > { %6131 = vst [vmem:[#allocation15_spill] sm:$0xff] %v4173_v15  ;;  %v835_v26 = vadd.f32 %v3964_v25, %v803_v10  ;;  %v837_v55 = vadd.f32 %v3964_v25, %v805_v32  ;;  %v813_v39 = vmul.f32 %v3970_v28, %v779_v3  ;;  %v1812_v33 = vmul.f32 %v4056_v5, %v4092_v6 }
 0x111   : > { %v854_v41 = vmax.f32 %v834_v24, 0.0  ;;  %v856_v35 = vmax.f32 %v836_v22, 0.0  ;;  %v1850_v10 = vmul.f32 %v4060_v2, %v4092_v6  ;;  %v807_v32 = vmul.f32 %v3970_v28, %v4073_v44 }
 0x112   : > { %v855_v56 = vmax.f32 %v835_v26, 0.0  ;;  %v857_v43 = vmax.f32 %v837_v55, 0.0  ;;  %v845_v29 = vadd.f32 %v3968_v27, %v813_v39  ;;  %v1558_v39 = vmul.f32 %v4008_v63, %v4092_v6 }
 0x113   : > { %3413 = vst [vmem:[%s4078_s11 + $0x80] sm:$0xff] %v854_v41  ;;  %3415 = vst [vmem:[%s4078_s11 + $0x90] sm:$0xff] %v856_v35  ;;  %1822 = vrot.lane.b32.xlu0 %v1812_v33, %s3664_s8  ;;  %1348 = vrot.lane.b32.xlu1 %v1337_v48, %s3652_s23  ;;  %v839_v35 = vadd.f32 %v3968_v27, %v807_v32  ;;  %v6022_v48 = vmov 4   ;;  %v6155_v20 = vmax.f32 %v4126_v0, 0.0 }
 0x114   : > { %3414 = vst [vmem:[%s4078_s11 + $0x88] sm:$0xff] %v855_v56  ;;  %3416 = vst [vmem:[%s4078_s11 + $0x98] sm:$0xff] %v857_v43  ;;  %v865_v25 = vmax.f32 %v845_v29, 0.0  ;;  %v1591_v29 = vmul.f32 %v4016_v9, %v4092_v6  ;;  %3534 = vset.pattern.permute.xlu0 %v6022_v48  ;;  %v1774_v56 = vmul.f32 %v4044_v18, %v4092_v6 }
 0x115   : > { %v4205_v44 = vmax.f32 %v839_v35, 0.0  ;;  %v808_v43 = vmul.f32 %v3970_v28, %v4116_v54 }
 0x116   : > { %v4194_v34 = vmul.f32 %v3387_v19, %v865_v25  ;;  %v4210_v19 = vadd.f32 %v2204_v23, %v2203_v51 }
 0x117   : > { %1860 = vrot.lane.b32.xlu0 %v1850_v10, %s3663_s30  ;;  %1566 = vrot.lane.b32.xlu1 %v1558_v39, %s3652_s23  ;;  %v1094_v24 = vmul.f32 %v3976_v31, %v4205_v44  ;;  %v1133_v22 = vmul.f32 %v3982_v36, %v4205_v44  ;;  %v1215_v3 = vmul.f32 %v3974_v30, %v4205_v44 }
 0x118   : > { %6132 = vst [vmem:[#allocation16_spill] sm:$0xff] %v4194_v34  ;;  %6133 = vst [vmem:[#allocation17_spill] sm:$0xff] %v4210_v19  ;;  %v1375_v26 = vmul.f32 %v4014_v7, %v4205_v44  ;;  %v1413_v51 = vmul.f32 %v4020_v16, %v4205_v44  ;;  %v1522_v23 = vmul.f32 %v4038_v52, %v4205_v44 }
 0x119   : > { %v1559_v55 = vmul.f32 %v4008_v63, %v4205_v44  ;;  %v1592_v41 = vmul.f32 %v4016_v9, %v4205_v44  ;;  %v1630_v33 = vmul.f32 %v4042_v13, %v4205_v44  ;;  %v1775_v25 = vmul.f32 %v4044_v18, %v4205_v44 }
 0x11a   : > { %v1176_v10 = vmul.f32 %v3989_v42, %v4205_v44  ;;  %v840_v32 = vadd.f32 %v3968_v27, %v808_v43  ;;  %v1813_v39 = vmul.f32 %v4056_v5, %v4205_v44  ;;  %v1300_v35 = vmul.f32 %v3985_v38, %v4205_v44 }
 0x11b   : > { %1601 = vrot.lane.b32.xlu1 %v1591_v29, %s3664_s8  ;;  %v1851_v29 = vmul.f32 %v4060_v2, %v4205_v44  ;;  %v6154_v27 = vmax.f32 %v4119_v60, 0.0 }
 0x11c   : > { %v4258_v54 = vmax.f32 %v840_v32, 0.0 }
 0x11f   : > { %1784 = vrot.lane.b32.xlu1 %v1774_v56, %s3652_s23  ;;  %v1338_v56 = vmul.f32 %v4010_v1, %v4205_v44 }
 0x123   : > { %1106 = vrot.lane.b32.xlu1 %v1094_v24, %s3662_s29  ;;  %v4264_v24 = vpop.permute.xlu1 %3525 }
 0x127   : > { %1145 = vrot.lane.b32.xlu1 %v1133_v22, %s3652_s23  ;;  %v1095_v22 = vmul.f32 %v3976_v31, %v4258_v54 }
 0x12b   : > { %1226 = vrot.lane.b32.xlu1 %v1215_v3, %s3663_s30  ;;  %v1216_v3 = vmul.f32 %v3974_v30, %v4258_v54 }
 0x12f   : > { %1386 = vrot.lane.b32.xlu1 %v1375_v26, %s3664_s8  ;;  %v4274_v26 = vpop.permute.xlu1 %1102 }
 0x130   : > { %6134 = vst [vmem:[#allocation18_spill] sm:$0xff] %v4274_v26 }
 0x133   : > { %1424 = vrot.lane.b32.xlu1 %v1413_v51, %s3663_s30  ;;  %v1134_v51 = vmul.f32 %v3982_v36, %v4258_v54 }
 0x136   : > { %1041 = vadd.xlane.f32.xlu0 %v4137_v8  ;;  %v1738_v8 = vmul.f32 %v4052_v46, %v4205_v44 }
 0x137   : > { %1534 = vrot.lane.b32.xlu1 %v1522_v23, %s3662_s29  ;;  %v1376_v23 = vmul.f32 %v4014_v7, %v4258_v54 }
 0x13b   : > { %1568 = vrot.lane.b32.xlu1 %v1559_v55, %s3652_s23  ;;  %v4282_v55 = vpop.permute.xlu1 %1193 }
 0x13c   : > { %6135 = vst [vmem:[#allocation19_spill] sm:$0xff] %v4282_v55 }
 0x13f   : > { %1603 = vrot.lane.b32.xlu1 %v1592_v41, %s3664_s8  ;;  %v1177_v41 = vmul.f32 %v3989_v42, %v4258_v54  ;;  %v4292_v43 = vpop.permute.xlu1 %1308 }
 0x143   : > { %1641 = vrot.lane.b32.xlu1 %v1630_v33, %s3663_s30  ;;  %v1414_v33 = vmul.f32 %v4020_v16, %v4258_v54 }
 0x147   : > { %1750 = vrot.lane.b32.xlu1 %v1738_v8, %s3662_s29  ;;  %v4290_v8 = vpop.permute.xlu0 %1141 }
 0x148   : > { %6136 = vst [vmem:[#allocation20_spill] sm:$0xff] %v4290_v8 }
 0x14b   : > { %1786 = vrot.lane.b32.xlu1 %v1775_v25, %s3652_s23  ;;  %v1301_v25 = vmul.f32 %v3985_v38, %v4258_v54  ;;  %v4300_v32 = vpop.permute.xlu0 %1232 }
 0x14c   : > { %1187 = vrot.lane.b32.xlu0 %v1176_v10, %s3664_s8  ;;  %v1523_v10 = vmul.f32 %v4038_v52, %v4258_v54  ;;  %6137 = vst [vmem:[#allocation21_spill] sm:$0xff] %v4300_v32  ;;  %v1853_v32 = vmul.f32 %v4060_v2, %v4154_v11 }
 0x14f   : > { %1824 = vrot.lane.b32.xlu1 %v1813_v39, %s3664_s8  ;;  %v1339_v39 = vmul.f32 %v4010_v1, %v4258_v54 }
 0x150   : > { %1312 = vrot.lane.b32.xlu0 %v1300_v35, %s3662_s29  ;;  %v1560_v35 = vmul.f32 %v4008_v63, %v4258_v54 }
 0x153   : > { %1862 = vrot.lane.b32.xlu1 %v1851_v29, %s3663_s30  ;;  %v4306_v29 = vpop.permute.xlu1 %1530 }
 0x154   : > { %1350 = vrot.lane.b32.xlu0 %v1338_v56, %s3652_s23  ;;  %v1096_v56 = vmul.f32 %v3976_v31, %v4154_v11 }
 0x157   : > { %1108 = vrot.lane.b32.xlu1 %v1095_v22, %s3662_s29  ;;  %v1593_v22 = vmul.f32 %v4016_v9, %v4258_v54 }
 0x158   : > { %1228 = vrot.lane.b32.xlu0 %v1216_v3, %s3663_s30  ;;  %v4314_v3 = vpop.permute.xlu0 %1346 }
 0x15b   : > { %1147 = vrot.lane.b32.xlu1 %v1134_v51, %s3652_s23  ;;  %v4316_v51 = vpop.permute.xlu1 %1746 }
 0x15c   : > { %1388 = vrot.lane.b32.xlu0 %v1376_v23, %s3664_s8  ;;  %v1135_v23 = vmul.f32 %v3982_v36, %v4154_v11  ;;  %v4326_v31 = vpop.permute.xlu0 %1392 }
 0x15d   : > { %6138 = vst [vmem:[#allocation22_spill] sm:$0xff] %v4326_v31 }
 0x15f   : > { %1189 = vrot.lane.b32.xlu1 %v1177_v41, %s3664_s8  ;;  %v1631_v41 = vmul.f32 %v4042_v13, %v4258_v54 }
 0x160   : > { %1426 = vrot.lane.b32.xlu0 %v1414_v33, %s3663_s30 }
 0x163   : > { %1314 = vrot.lane.b32.xlu1 %v1301_v25, %s3662_s29  ;;  %v1217_v25 = vmul.f32 %v3974_v30, %v4154_v11  ;;  %v1377_v30 = vmul.f32 %v4014_v7, %v4154_v11  ;;  %v979_v7 = vadd.f32 1.0, %v3823_v62 }
 0x164   : > { %1536 = vrot.lane.b32.xlu0 %v1523_v10, %s3662_s29  ;;  %v1739_v10 = vmul.f32 %v4052_v46, %v4258_v54 }
 0x165   : > { %vm983_vm2 = vcmp.ge.f32.partialorder %v979_v7, 0.0  ;;  %vm987_vm3 = vcmp.le.f32.partialorder %v979_v7, 21.0 }
 0x166   : > { %vm991_vm5 = vmand %vm983_vm2, %vm987_vm3  ;;  %vm1195_vm3 = vcmask 506880  }
 0x167   : > { %1352 = vrot.lane.b32.xlu1 %v1339_v39, %s3652_s23  ;;  %v1776_v39 = vmul.f32 %v4044_v18, %v4258_v54  ;;  %v3403_v7 = vsel %vm991_vm5, 1.0, %v6128_v14 }
 0x168   : > { %1570 = vrot.lane.b32.xlu0 %v1560_v35, %s3652_s23  ;;  %v4340_v35 = vpop.permute.xlu0 %1430 }
 0x169   : > { %6141 = vst [vmem:[#allocation25_spill] sm:$0xff] %v4340_v35 }
 0x16b   : > { %1110 = vrot.lane.b32.xlu1 %v1096_v56, %s3662_s29 }
 0x16c   : > { %1605 = vrot.lane.b32.xlu0 %v1593_v22, %s3664_s8  ;;  %v1814_v22 = vmul.f32 %v4056_v5, %v4258_v54 }
 0x16f   : > { %1149 = vrot.lane.b32.xlu1 %v1135_v23, %s3652_s23  ;;  %v4352_v23 = vpop.permute.xlu0 %1609 }
 0x170   : > { %1643 = vrot.lane.b32.xlu0 %v1631_v41, %s3663_s30  ;;  %6143 = vst [vmem:[#allocation27_spill] sm:$0xff] %v4352_v23 }
 0x171   : > { %v4328_v33 = vpop.permute.xlu1 %1104 }
 0x172   : > { %6139 = vst [vmem:[#allocation23_spill] sm:$0xff] %v4328_v33  ;;  %v6152_v33 = vmax.f32 %v4070_v49, 0.0 }
 0x173   : > { %1230 = vrot.lane.b32.xlu1 %v1217_v25, %s3663_s30  ;;  %v1852_v25 = vmul.f32 %v4060_v2, %v4258_v54 }
 0x174   : > { %1752 = vrot.lane.b32.xlu0 %v1739_v10, %s3662_s29  ;;  %v978_v10 = vadd.f32 1.0, %v3812_v50 }
 0x175   : > { %v4336_v36 = vpop.permute.xlu1 %1143 }
 0x176   : > { %6140 = vst [vmem:[#allocation24_spill] sm:$0xff] %v4336_v36  ;;  %vm982_vm14 = vcmp.ge.f32.partialorder %v978_v10, 0.0  ;;  %vm986_vm15 = vcmp.le.f32.partialorder %v978_v10, 21.0 }
 0x177   : > { %1955 = vperm.xlu1 %3535, %v3816_v53   ;;  %v1415_v53 = vmul.f32 %v4020_v16, %v4154_v11  ;;  %v4370_v16 = vpop.permute.xlu0 %1647  ;;  %vm990_vm4 = vmand %vm982_vm14, %vm986_vm15 }
 0x178   : > { %1788 = vrot.lane.b32.xlu0 %v1776_v39, %s3652_s23  ;;  %6145 = vst [vmem:[#allocation29_spill] sm:$0xff] %v4370_v16  ;;  %v3402_v10 = vsel %vm990_vm4, 1.0, %v6128_v14 }
 0x179   : > { %v4344_v56 = vpop.permute.xlu1 %1185 }
 0x17a   : > { %6142 = vst [vmem:[#allocation26_spill] sm:$0xff] %v4344_v56 }
 0x17b   : > { %1390 = vrot.lane.b32.xlu1 %v1377_v30, %s3664_s8  ;;  %v1524_v30 = vmul.f32 %v4038_v52, %v4154_v11  ;;  %v1302_v52 = vmul.f32 %v3985_v38, %v4154_v11  ;;  %v1340_v38 = vmul.f32 %v4010_v1, %v4154_v11  ;;  %v1740_v1 = vmul.f32 %v4052_v46, %v4154_v11 }
 0x17c   : > { %1826 = vrot.lane.b32.xlu0 %v1814_v22, %s3664_s8  ;;  %v1178_v22 = vmul.f32 %v3989_v42, %v4154_v11  ;;  %v4382_v42 = vpop.permute.xlu0 %1792  ;;  %v1815_v46 = vmul.f32 %v4056_v5, %v4154_v11 }
 0x17d   : > { %v4354_v41 = vpop.permute.xlu1 %1224  ;;  %6146 = vst [vmem:[#allocation30_spill] sm:$0xff] %v4382_v42 }
 0x17e   : > { %6144 = vst [vmem:[#allocation28_spill] sm:$0xff] %v4354_v41 }
 0x17f   : > { %1428 = vrot.lane.b32.xlu1 %v1415_v53, %s3663_s30 }
 0x180   : > { %1864 = vrot.lane.b32.xlu0 %v1852_v25, %s3663_s30  ;;  %v1561_v25 = vmul.f32 %v4008_v63, %v4154_v11  ;;  %v1594_v63 = vmul.f32 %v4016_v9, %v4154_v11  ;;  %v4398_v48 = vpop.permute.xlu0 %1830 }
 0x181   : > { %v4364_v39 = vpop.permute.xlu1 %1310  ;;  %6147 = vst [vmem:[#allocation31_spill] sm:$0xff] %v4398_v48 }
 0x183   : > { %1538 = vrot.lane.b32.xlu1 %v1524_v30, %s3662_s29 }
 0x184   : > { %1191 = vrot.lane.b32.xlu0 %v1178_v22, %s3664_s8  ;;  %v3529_v22 = vpack.i.bf16 %v3403_v7, %v3402_v10  ;;  %v4411_v10 = vpop.permute.xlu0 %1868  ;;  %v1777_v7 = vmul.f32 %v4044_v18, %v4154_v11 }
 0x185   : > { %v4374_v53 = vpop.permute.xlu1 %1348  ;;  %6148 = vst [vmem:[#allocation32_spill] sm:$0xff] %v4411_v10 }
 0x187   : > { %1572 = vrot.lane.b32.xlu1 %v1561_v25, %s3652_s23 }
 0x188   : > { %1316 = vrot.lane.b32.xlu0 %v1302_v52, %s3662_s29  ;;  %v1632_v52 = vmul.f32 %v4042_v13, %v4154_v11 }
 0x189   : > { %v4386_v30 = vpop.permute.xlu1 %1566 }
 0x18b   : > { %1607 = vrot.lane.b32.xlu1 %v1594_v63, %s3664_s8  ;;  %v4408_v63 = vld [vmem:[%s3804_s19] sm:$0xff] }
 0x18c   : > { %1354 = vrot.lane.b32.xlu0 %v1340_v38, %s3652_s23  ;;  %v6023_v38 = vmov 14  }
 0x18d   : > { %v4394_v25 = vpop.permute.xlu1 %1601 }
 0x18f   : > { %1645 = vrot.lane.b32.xlu1 %v1632_v52, %s3663_s30  ;;  %v4423_v52 = vpop.permute.xlu0 %1384 }
 0x190   : > { %3530 = vrot.lane.b32.xlu0 %v3529_v22, %s3661_s24 }
 0x191   : > { %v4402_v9 = vpop.permute.xlu1 %1784 }
 0x193   : > { %1754 = vrot.lane.b32.xlu1 %v1740_v1, %s3662_s29  ;;  %v4431_v18 = vpop.permute.xlu0 %1422 }
 0x194   : > { %1941 = vperm.xlu0 %3534, %v4408_v63  }
 0x195   : > { %v4413_v13 = vpop.permute.xlu1 %1106 }
 0x196   : > { %6149 = vst [vmem:[#allocation33_spill] sm:$0xff] %v4413_v13 }
 0x197   : > { %1790 = vrot.lane.b32.xlu1 %v1777_v7, %s3652_s23 }
 0x198   : > { %3536 = vset.pattern.permute.xlu0 %v6023_v38 }
 0x199   : > { %v4419_v22 = vpop.permute.xlu1 %1145 }
 0x19a   : > { %6150 = vst [vmem:[#allocation34_spill] sm:$0xff] %v4419_v22  ;;  %v4437_v22 = vpop.permute.xlu0 %1532 }
 0x19b   : > { %1828 = vrot.lane.b32.xlu1 %v1815_v46, %s3664_s8 }
 0x19d   : > { %v4426_v1 = vpop.permute.xlu1 %1226 }
 0x19e   : > { %6151 = vst [vmem:[#allocation35_spill] sm:$0xff] %v4426_v1  ;;  %v4441_v55 = vpop.permute.xlu0 %1639 }
 0x19f   : > { %1866 = vrot.lane.b32.xlu1 %v1853_v32, %s3663_s30 }
 0x1a1   : > { %v4433_v7 = vpop.permute.xlu1 %1386 }
 0x1a2   : > { %v4447_v13 = vpop.permute.xlu0 %1748 }
 0x1a5   : > { %v4435_v38 = vpop.permute.xlu1 %1424 }
 0x1a6   : > { %v4451_v32 = vpop.permute.xlu0 %1822 }
 0x1a9   : > { %v4439_v5 = vpop.permute.xlu1 %1534 }
 0x1aa   : > { %v4457_v8 = vpop.permute.xlu0 %1860 }
 0x1ad   : > { %v4443_v46 = vpop.permute.xlu1 %1568 }
 0x1b1   : > { %v4445_v1 = vpop.permute.xlu1 %1603 }
 0x1b5   : > { %v4449_v2 = vpop.permute.xlu1 %1641 }
 0x1b9   : > { %v4453_v41 = vpop.permute.xlu1 %1750 }
 0x1bd   : > { %v4455_v56 = vpop.permute.xlu1 %1786 }
 0x1c1   : > { %v4459_v36 = vpop.permute.xlu1 %1824 }
 0x1c3   : > { %v1042_v26 = vpop.xlane.xlu0 %1041 }
 0x1c4   : > { %v1043_v34 = vsub.f32 %v6152_v33, %v1042_v26  ;;  %v1044_v15 = vsub.f32 %v6153_v61, %v1042_v26  ;;  %v1045_v28 = vsub.f32 %v6154_v27, %v1042_v26  ;;  %v1046_v19 = vsub.f32 %v6155_v20, %v1042_v26 }
 0x1c5   : > { %v4469_v42 = vpop.permute.xlu1 %1862  ;;  %v6162_v33 = vmov 0  }
 0x1c6   : > { %v1047_v10 = vand.u32 2147483647, %v1043_v34  ;;  %v1048_v45 = vand.u32 2147483647, %v1044_v15  ;;  %v1049_v48 = vand.u32 2147483647, %v1045_v28 }
 0x1c7   : > { %v1050_v16 = vand.u32 2147483647, %v1046_v19 }
 0x1c8   : > { %1051 = vst [vmem:[%s4078_s11] sm:$0xff] %v1047_v10  ;;  %1052 = vst [vmem:[%s4078_s11 + $0x8] sm:$0xff] %v1048_v45 }
 0x1c9   : > { %1053 = vst [vmem:[%s4078_s11 + $0x10] sm:$0xff] %v1049_v48  ;;  %1054 = vst [vmem:[%s4078_s11 + $0x18] sm:$0xff] %v1050_v16  ;;  %v4475_v49 = vpop.permute.xlu1 %1108  ;;  %v4502_v16 = vpop.permute.xlu0 %1187 }
 0x1ca   : > { %6156 = vst [vmem:[#allocation36_spill] sm:$0xff] %v4475_v49  ;;  %6163 = vst [vmem:[#allocation42_spill] sm:$0xff] %v4502_v16 }
 0x1cd   : > { %v4477_v58 = vpop.permute.xlu1 %1147  ;;  %v4504_v10 = vpop.permute.xlu0 %1312 }
 0x1ce   : > { %6157 = vst [vmem:[#allocation37_spill] sm:$0xff] %v4477_v58 }
 0x1d1   : > { %v4479_v61 = vpop.permute.xlu1 %1189 }
 0x1d2   : > { %6158 = vst [vmem:[#allocation38_spill] sm:$0xff] %v4479_v61 }
 0x1d5   : > { %v4481_v27 = vpop.permute.xlu1 %1314 }
 0x1d9   : > { %v4483_v60 = vpop.permute.xlu1 %1352 }
 0x1dd   : > { %v4485_v0 = vpop.permute.xlu1 %1110 }
 0x1de   : > { %6159 = vst [vmem:[#allocation39_spill] sm:$0xff] %v4485_v0 }
 0x1e1   : > { %v4487_v28 = vpop.permute.xlu1 %1149 }
 0x1e2   : > { %6160 = vst [vmem:[#allocation40_spill] sm:$0xff] %v4487_v28 }
 0x1e5   : > { %v4489_v15 = vpop.permute.xlu1 %1230 }
 0x1e6   : > { %6161 = vst [vmem:[#allocation41_spill] sm:$0xff] %v4489_v15 }
 0x1f6   : > { %v1956_v20 = vpop.permute.xlu1 %1955 }
 0x1f7   : > { %v1959_v45 = vmul.f32 %v1956_v20, %v4092_v6  ;;  %v1958_v34 = vmul.f32 0.0, %v1956_v20  ;;  %v1961_v48 = vmul.f32 %v1956_v20, %v4258_v54  ;;  %v1960_v19 = vmul.f32 %v1956_v20, %v4205_v44 }
 0x1f8   : > { %v1962_v26 = vmul.f32 %v1956_v20, %v4154_v11 }
 0x1f9   : > { %1970 = vrot.lane.b32.xlu0 %v1959_v45, %s3662_s29  ;;  %1968 = vrot.lane.b32.xlu1 %v1958_v34, %s3662_s29  ;;  %v6042_v45 = vmov 19   ;;  %v4507_v34 = vpop.permute.xlu0 %1350 }
 0x1fa   : > { %3537 = vset.pattern.permute.xlu1 %v6042_v45 }
 0x1fd   : > { %1974 = vrot.lane.b32.xlu0 %v1961_v48, %s3662_s29  ;;  %1972 = vrot.lane.b32.xlu1 %v1960_v19, %s3662_s29  ;;  %v4509_v48 = vpop.permute.xlu0 %1228 }
 0x1fe   : > { %6164 = vst [vmem:[#allocation43_spill] sm:$0xff] %v4509_v48 }
 0x201   : > { %1993 = vperm.xlu0 %3536, %v4408_v63   ;;  %1976 = vrot.lane.b32.xlu1 %v1962_v26, %s3662_s29  ;;  %v4511_v19 = vpop.permute.xlu0 %1388 }
 0x205   : > { %3549 = vset.pattern.permute.xlu0 %v6162_v33  ;;  %v4513_v20 = vpop.permute.xlu0 %1426 }
 0x206   : > { %6165 = vst [vmem:[#allocation44_spill] sm:$0xff] %v4513_v20  ;;  %v1285_v20 = vmul.f32 %v4006_v59, %v4092_v6 }
 0x209   : > { %v4515_v15 = vpop.permute.xlu0 %1536 }
 0x20d   : > { %v4517_v26 = vpop.permute.xlu0 %1570 }
 0x211   : > { %v4519_v33 = vpop.permute.xlu0 %1605 }
 0x212   : > { %6166 = vst [vmem:[#allocation45_spill] sm:$0xff] %v4519_v33 }
 0x215   : > { %v4521_v16 = vpop.permute.xlu0 %1643 }
 0x216   : > { %6167 = vst [vmem:[#allocation46_spill] sm:$0xff] %v4521_v16 }
 0x219   : > { %v4523_v61 = vpop.permute.xlu0 %1752 }
 0x21a   : > { %6168 = vst [vmem:[#allocation47_spill] sm:$0xff] %v4523_v61 }
 0x21d   : > { %v4525_v58 = vpop.permute.xlu0 %1788 }
 0x21e   : > { %6169 = vst [vmem:[#allocation48_spill] sm:$0xff] %v4525_v58 }
 0x221   : > { %v4527_v45 = vpop.permute.xlu0 %1826 }
 0x222   : > { %6170 = vst [vmem:[#allocation49_spill] sm:$0xff] %v4527_v45 }
 0x225   : > { %v4529_v28 = vpop.permute.xlu0 %1864 }
 0x226   : > { %6171 = vst [vmem:[#allocation50_spill] sm:$0xff] %v4529_v28 }
 0x229   : > { %v4531_v48 = vpop.permute.xlu0 %1191 }
 0x22a   : > { %6172 = vst [vmem:[#allocation51_spill] sm:$0xff] %v4531_v48 }
 0x22d   : > { %v4533_v49 = vpop.permute.xlu0 %1316 }
 0x22e   : > { %6173 = vst [vmem:[#allocation52_spill] sm:$0xff] %v4533_v49  ;;  %v6059_v49 = vmov 24  }
 0x231   : > { %v4535_v0 = vpop.permute.xlu0 %1354 }
 0x232   : > { %6174 = vst [vmem:[#allocation53_spill] sm:$0xff] %v4535_v0 }
 0x235   : > { %v4537_v23 = vpop.permute.xlu0 %3530 }
 0x236   : > { %6175 = vst [vmem:[#allocation54_spill] sm:$0xff] %v4537_v23 }
 0x239   : > { %v4539_v35 = vpop.permute.xlu0 %1941 }
 0x26b   : > { %v4541_v31 = vpop.permute.xlu0 %1970 }
 0x26f   : > { %v4543_v47 = vpop.permute.xlu0 %1974 }
 0x270   : > { %6176 = vst [vmem:[#allocation55_spill] sm:$0xff] %v4543_v47  ;;  %v4556_v47 = vpop.permute.xlu1 %1390 }
 0x271   : > { %6177 = vst [vmem:[#allocation56_spill] sm:$0xff] %v4556_v47 }
 0x280   : > { %v1994_v21 = vpop.permute.xlu0 %1993 }
 0x281   : > { %v1998_v58 = vmul.f32 %v1994_v21, %v4258_v54  ;;  %v1996_v45 = vmul.f32 %v1994_v21, %v4092_v6  ;;  %v2000_v48 = vmul.f32 0.0, %v1994_v21  ;;  %v1997_v0 = vmul.f32 %v1994_v21, %v4205_v44 }
 0x282   : > { %v1999_v28 = vmul.f32 %v1994_v21, %v4154_v11 }
 0x283   : > { %2010 = vrot.lane.b32.xlu0 %v1998_v58, %s3652_s23  ;;  %2006 = vrot.lane.b32.xlu1 %v1996_v45, %s3652_s23  ;;  %v4558_v58 = vpop.permute.xlu1 %1428 }
 0x284   : > { %6178 = vst [vmem:[#allocation57_spill] sm:$0xff] %v4558_v58 }
 0x287   : > { %2014 = vrot.lane.b32.xlu0 %v2000_v48, %s3652_s23  ;;  %2008 = vrot.lane.b32.xlu1 %v1997_v0, %s3652_s23  ;;  %v4560_v45 = vpop.permute.xlu1 %1538 }
 0x288   : > { %6179 = vst [vmem:[#allocation58_spill] sm:$0xff] %v4560_v45 }
 0x28b   : > { %2012 = vrot.lane.b32.xlu1 %v1999_v28, %s3652_s23  ;;  %v4562_v23 = vpop.permute.xlu1 %1572 }
 0x28c   : > { %6180 = vst [vmem:[#allocation59_spill] sm:$0xff] %v4562_v23 }
 0x28f   : > { %2031 = vperm.xlu1 %3537, %v4408_v63   ;;  %v4564_v48 = vpop.permute.xlu1 %1607 }
 0x290   : > { %6181 = vst [vmem:[#allocation60_spill] sm:$0xff] %v4564_v48 }
 0x293   : > { %3538 = vset.pattern.permute.xlu1 %v6059_v49  ;;  %v4566_v0 = vpop.permute.xlu1 %1645 }
 0x294   : > { %6182 = vst [vmem:[#allocation61_spill] sm:$0xff] %v4566_v0 }
 0x297   : > { %v4568_v21 = vpop.permute.xlu1 %1754 }
 0x298   : > { %6183 = vst [vmem:[#allocation62_spill] sm:$0xff] %v4568_v21 }
 0x29b   : > { %v4570_v28 = vpop.permute.xlu1 %1790 }
 0x29c   : > { %6184 = vst [vmem:[#allocation63_spill] sm:$0xff] %v4570_v28 }
 0x29f   : > { %v4572_v61 = vpop.permute.xlu1 %1828 }
 0x2a0   : > { %6185 = vst [vmem:[#allocation64_spill] sm:$0xff] %v4572_v61 }
 0x2a3   : > { %v4574_v16 = vpop.permute.xlu1 %1866 }
 0x2a4   : > { %6186 = vst [vmem:[#allocation65_spill] sm:$0xff] %v4574_v16 }
 0x2a7   : > { %v4576_v49 = vpop.permute.xlu1 %1968 }
 0x2ab   : > { %v4578_v47 = vpop.permute.xlu1 %1972 }
 0x2af   : > { %v4580_v58 = vpop.permute.xlu1 %1976 }
 0x2b0   : > { %6187 = vst [vmem:[#allocation66_spill] sm:$0xff] %v4580_v58 }
 0x2f5   : > { %v4582_v45 = vpop.permute.xlu1 %2006 }
 0x2f9   : > { %v4584_v23 = vpop.permute.xlu1 %2008 }
 0x2fd   : > { %v4586_v48 = vpop.permute.xlu1 %2012 }
 0x2fe   : > { %6188 = vst [vmem:[#allocation67_spill] sm:$0xff] %v4586_v48  ;;  %v6189_v48 = vmov 10  }
 0x30e   : > { %v2032_v0 = vpop.permute.xlu1 %2031 }
 0x30f   : > { %v2035_v21 = vmul.f32 %v2032_v0, %v4205_v44  ;;  %v2034_v28 = vmul.f32 %v2032_v0, %v4092_v6  ;;  %v2037_v16 = vmul.f32 %v2032_v0, %v4154_v11  ;;  %v2036_v61 = vmul.f32 %v2032_v0, %v4258_v54 }
 0x310   : > { %v2038_v58 = vmul.f32 0.0, %v2032_v0 }
 0x311   : > { %2046 = vrot.lane.b32.xlu1 %v2035_v21, %s3664_s8  ;;  %2044 = vrot.lane.b32.xlu0 %v2034_v28, %s3664_s8  ;;  %v1000_v21 = vadd.f32 2.0, %v3833_v4  ;;  %v1001_v28 = vadd.f32 2.0, %v3842_v12  ;;  %v1002_v4 = vadd.f32 2.0, %v3812_v50  ;;  %v1003_v12 = vadd.f32 2.0, %v3823_v62 }
 0x313   : > { %vm1004_vm1 = vcmp.ge.f32.partialorder %v1000_v21, 0.0  ;;  %vm1008_vm7 = vcmp.le.f32.partialorder %v1000_v21, 21.0  ;;  %vm1005_vm8 = vcmp.ge.f32.partialorder %v1001_v28, 0.0  ;;  %vm1009_vm9 = vcmp.le.f32.partialorder %v1001_v28, 21.0 }
 0x314   : > { %vm4623_vm10 = vmand %vm1004_vm1, %vm1008_vm7  ;;  %vm1006_vm13 = vcmp.ge.f32.partialorder %v1002_v4, 0.0  ;;  %vm1010_vm14 = vcmp.le.f32.partialorder %v1002_v4, 21.0  ;;  %vm1007_vm15 = vcmp.ge.f32.partialorder %v1003_v12, 0.0  ;;  %vm1011_vm2 = vcmp.le.f32.partialorder %v1003_v12, 21.0 }
 0x315   : > { %2050 = vrot.lane.b32.xlu1 %v2037_v16, %s3664_s8  ;;  %2048 = vrot.lane.b32.xlu0 %v2036_v61, %s3664_s8  ;;  %v1318_v16 = vsel %vm1112_vm0, %v4292_v43, %v4364_v39  ;;  %v1284_v61 = vmul.f32 0.0, %v4006_v59  ;;  %v1506_v43 = vmul.f32 0.0, %v4003_v57  ;;  %vm1013_vm11 = vmand %vm1005_vm8, %vm1009_vm9  ;;  %v1541_v12 = vsel %vm1112_vm0, %v4437_v22, %v4439_v5 }
 0x316   : > { %vm1014_vm4 = vmand %vm1006_vm13, %vm1010_vm14  ;;  %vm1234_vm1 = vcmask 326656   ;;  %vm2118_vm7 = vcmask 703488   ;;  %vm1487_vm8 = vcmask 1039360   ;;  %vm1703_vm9 = vcmask 1031168  }
 0x317   : > { %vm1015_vm5 = vmand %vm1007_vm15, %vm1011_vm2  ;;  %vm1261_vm13 = vcmask 670720   ;;  %vm2177_vm14 = vcmask 375808  }
 0x319   : > { %2069 = vperm.xlu1 %3538, %v4408_v63   ;;  %2052 = vrot.lane.b32.xlu0 %v2038_v58, %s3664_s8  ;;  %v1356_v63 = vsel %vm1151_vm6, %v4314_v3, %v4374_v53  ;;  %v1327_v58 = vadd.f32 %v1318_v16, %v1284_v61  ;;  %v1319_v3 = vsel %vm1112_vm0, %v4364_v39, %v4504_v10  ;;  %v1722_v39 = vmul.f32 0.0, %v4031_v40 }
 0x31a   : > { %v1328_v61 = vadd.f32 %v1319_v3, %v1285_v20 }
 0x31d   : > { %3551 = vset.pattern.permute.xlu1 %v6189_v48  ;;  %v1540_v48 = vsel %vm1112_vm0, %v4306_v29, %v4437_v22  ;;  %v1357_v29 = vsel %vm1151_vm6, %v4374_v53, %v4507_v34  ;;  %v3404_v53 = vsel %vm4623_vm10, 1.0, %v6128_v14  ;;  %v1723_v22 = vmul.f32 %v4031_v40, %v4092_v6 }
 0x31e   : > { %v1549_v16 = vadd.f32 %v1540_v48, %v1506_v43  ;;  %v3405_v43 = vsel %vm1013_vm11, 1.0, %v6128_v14  ;;  %v1366_v48 = vadd.f32 %v1357_v29, %v1328_v61  ;;  %v3406_v29 = vsel %vm1014_vm4, 1.0, %v6128_v14 }
 0x31f   : > { %v3539_v4 = vpack.i.bf16 %v3405_v43, %v3404_v53  ;;  %v4665_v53 = vunpack.i.l.bf16 %v4027_v37  ;;  %vm1925_vm10 = vcmask 1022976   ;;  %vm2147_vm11 = vcmask 1014784  }
 0x320   : > { %v1582_v20 = vadd.f32 %v4386_v30, %v1549_v16  ;;  %v3407_v16 = vsel %vm1015_vm5, 1.0, %v6128_v14 }
 0x321   : > { %6193 = vst [vmem:[#allocation69_spill] sm:$0xff] %v4665_v53  ;;  %v3544_v14 = vpack.i.bf16 %v3407_v16, %v3406_v29  ;;  %v6077_v29 = vunpack.i.h.bf16 %v4049_v17 }
 0x322   : > { %v1620_v21 = vadd.f32 %v4394_v25, %v1582_v20 }
 0x383   : > { %v4599_v33 = vpop.permute.xlu1 %2046 }
 0x387   : > { %v4607_v0 = vpop.permute.xlu1 %2050 }
 0x388   : > { %6190 = vst [vmem:[#allocation68_spill] sm:$0xff] %v4607_v0  ;;  %v1365_v0 = vadd.f32 %v1356_v63, %v1327_v58  ;;  %v1756_v63 = vsel %vm1112_vm0, %v4316_v51, %v4447_v13  ;;  %v1507_v51 = vmul.f32 %v4003_v57, %v4092_v6 }
 0x38a   : > { %v1403_v58 = vadd.f32 %v4423_v52, %v1365_v0  ;;  %v1765_v0 = vadd.f32 %v1756_v63, %v1722_v39  ;;  %v1550_v43 = vadd.f32 %v1541_v12, %v1507_v51 }
 0x38c   : > { %v1441_v39 = vadd.f32 %v4431_v18, %v1403_v58  ;;  %v1803_v61 = vadd.f32 %v4402_v9, %v1765_v0  ;;  %v1658_v58 = vadd.f32 %v4441_v55, %v1620_v21  ;;  %v4686_v21 = vunpack.i.l.bf16 %v4049_v17 }
 0x38e   : > { %v1467_v0 = vmul.f32 %v4665_v53, %v1441_v39  ;;  %6194 = vst [vmem:[#allocation70_spill] sm:$0xff] %v4686_v21 }
 0x398   : > { %v2070_v50 = vpop.permute.xlu1 %2069 }
 0x399   : > { %v2073_v62 = vmul.f32 %v2070_v50, %v4205_v44  ;;  %v2072_v28 = vmul.f32 %v2070_v50, %v4092_v6  ;;  %v2075_v3 = vmul.f32 %v2070_v50, %v4154_v11  ;;  %v2076_v20 = vmul.f32 0.0, %v2070_v50 }
 0x39b   : > { %2084 = vrot.lane.b32.xlu1 %v2073_v62, %s3663_s30  ;;  %2082 = vrot.lane.b32.xlu0 %v2072_v28, %s3663_s30  ;;  %v2074_v62 = vmul.f32 %v2070_v50, %v4258_v54  ;;  %v1394_v28 = vsel %vm1195_vm3, %v4423_v52, %v4433_v7  ;;  %v1574_v52 = vsel %vm1151_vm6, %v4386_v30, %v4443_v46 }
 0x39c   : > { %v1404_v63 = vadd.f32 %v1394_v28, %v1366_v48  ;;  %v1432_v50 = vsel %vm1234_vm1, %v4431_v18, %v4435_v38  ;;  %v1611_v30 = vsel %vm1195_vm3, %v4394_v25, %v4445_v1  ;;  %v1757_v48 = vsel %vm1112_vm0, %v4447_v13, %v4453_v41 }
 0x39d   : > { %v1649_v18 = vsel %vm1234_vm1, %v4441_v55, %v4449_v2  ;;  %v1794_v25 = vsel %vm1151_vm6, %v4402_v9, %v4455_v56  ;;  %v1766_v28 = vadd.f32 %v1757_v48, %v1723_v22  ;;  %v6195_v13 = vunpack.i.h.bf16 %v4027_v37 }
 0x39e   : > { %v1442_v51 = vadd.f32 %v1432_v50, %v1404_v63  ;;  %v1832_v55 = vsel %vm1195_vm3, %v4451_v32, %v4459_v36  ;;  %v1683_v9 = vmul.f32 %v4686_v21, %v1658_v58  ;;  %v1870_v37 = vsel %vm1234_vm1, %v4457_v8, %v4469_v42 }
 0x39f   : > { %2088 = vrot.lane.b32.xlu1 %v2075_v3, %s3663_s30  ;;  %2086 = vrot.lane.b32.xlu0 %v2074_v62, %s3663_s30  ;;  %v1841_v3 = vadd.f32 %v4451_v32, %v1803_v61  ;;  %v1583_v62 = vadd.f32 %v1574_v52, %v1550_v43  ;;  %v4699_v12 = vsel %vm1458_vm12, %v4665_v53, %v6195_v13  ;;  %v6076_v32 = vunpack.i.h.bf16 %v4264_v24 }
 0x3a0   : > { %6196 = vst [vmem:[#allocation71_spill] sm:$0xff] %v4699_v12  ;;  %v1804_v61 = vadd.f32 %v1794_v25, %v1766_v28  ;;  %v1468_v63 = vmul.f32 %v4699_v12, %v1442_v51  ;;  %v4721_v43 = vsel %vm1151_vm6, %v4686_v21, %v6077_v29  ;;  %vm1896_vm12 = vcmask 695296   ;;  %v6218_v29 = vld [vmem:[#allocation50_spill] sm:$0xff]  ;;  %v6243_v12 = vld [vmem:[#allocation65_spill] sm:$0xff] }
 0x3a1   : > { %v1879_v16 = vadd.f32 %v4457_v8, %v1841_v3  ;;  %6198 = vst [vmem:[#allocation73_spill] sm:$0xff] %v4721_v43  ;;  %v1944_v25 = vmul.f32 0.0, %v4539_v35  ;;  %v1978_v28 = vsel %vm1112_vm0, %v4576_v49, %v4541_v31 }
 0x3a2   : > { %v1842_v52 = vadd.f32 %v1832_v55, %v1804_v61 }
 0x3a3   : > { %3540 = vrot.lane.b32.xlu1 %v3539_v4, %s3670_s12  ;;  %2090 = vrot.lane.b32.xlu0 %v2076_v20, %s3663_s30  ;;  %v1621_v4 = vadd.f32 %v1611_v30, %v1583_v62  ;;  %v4712_v20 = vunpack.i.l.bf16 %v4264_v24  ;;  %v4735_v30 = vpop.permute.xlu0 %2010  ;;  %v1987_v61 = vadd.f32 %v1978_v28, %v1944_v25  ;;  %v1575_v25 = vsel %vm1151_vm6, %v4443_v46, %v4517_v26 }
 0x3a4   : > { %v1880_v8 = vadd.f32 %v1870_v37, %v1842_v52 }
 0x3a5   : > { %v1659_v39 = vadd.f32 %v1649_v18, %v1621_v4  ;;  %6197 = vst [vmem:[#allocation72_spill] sm:$0xff] %v4712_v20  ;;  %v4731_v58 = vsel %vm1896_vm12, %v4712_v20, %v6076_v32  ;;  %v1286_v18 = vmul.f32 %v4006_v59, %v4205_v44  ;;  %v1358_v4 = vsel %vm1151_vm6, %v4507_v34, %v4483_v60 }
 0x3a6   : > { %6199 = vst [vmem:[#allocation74_spill] sm:$0xff] %v4731_v58  ;;  %v1906_v50 = vmul.f32 %v4731_v58, %v1880_v8  ;;  %v2016_v34 = vsel %vm1151_vm6, %v4582_v45, %v4584_v23  ;;  %v2025_v52 = vadd.f32 %v4582_v45, %v1987_v61  ;;  %v1542_v8 = vsel %vm1112_vm0, %v4439_v5, %v4515_v15  ;;  %v6202_v61 = vld [vmem:[#allocation45_spill] sm:$0xff] }
 0x3a7   : > { %1477 = vrot.lane.b32.xlu1 %v1467_v0, %s3671_s13  ;;  %3545 = vrot.lane.b32.xlu0 %v3544_v14, %s3670_s12  ;;  %v1684_v22 = vmul.f32 %v4721_v43, %v1659_v39  ;;  %v1905_v14 = vmul.f32 %v4712_v20, %v1879_v16  ;;  %v4737_v48 = vpop.permute.xlu0 %2014  ;;  %v1320_v0 = vsel %vm1112_vm0, %v4504_v10, %v4481_v27 }
 0x3a8   : > { %v1979_v10 = vsel %vm1112_vm0, %v4541_v31, %v4578_v47  ;;  %v1945_v16 = vmul.f32 %v4539_v35, %v4092_v6  ;;  %v1395_v31 = vsel %vm1195_vm3, %v4433_v7, %v4511_v19 }
 0x3ab   : > { %1693 = vrot.lane.b32.xlu1 %v1683_v9, %s3672_s14  ;;  %1479 = vrot.lane.b32.xlu0 %v1468_v63, %s3671_s13  ;;  %v2045_v3 = vpop.permute.xlu0 %2044  ;;  %v1329_v9 = vadd.f32 %v1320_v0, %v1286_v18  ;;  %v1988_v63 = vadd.f32 %v1979_v10, %v1945_v16  ;;  %v1508_v0 = vmul.f32 %v4003_v57, %v4205_v44 }
 0x3ac   : > { %v2063_v18 = vadd.f32 %v2045_v3, %v2025_v52 }
 0x3ad   : > { %v1367_v39 = vadd.f32 %v1358_v4, %v1329_v9  ;;  %v1551_v9 = vadd.f32 %v1542_v8, %v1508_v0 }
 0x3af   : > { %1915 = vrot.lane.b32.xlu1 %v1905_v14, %s3673_s15  ;;  %1695 = vrot.lane.b32.xlu0 %v1684_v22, %s3672_s14  ;;  %v4739_v62 = vpop.permute.xlu0 %2048  ;;  %v2054_v22 = vsel %vm1195_vm3, %v2045_v3, %v4599_v33  ;;  %v2026_v14 = vadd.f32 %v2016_v34, %v1988_v63  ;;  %v1612_v34 = vsel %vm1195_vm3, %v4445_v1, %v6202_v61 }
 0x3b0   : > { %v1584_v52 = vadd.f32 %v1575_v25, %v1551_v9  ;;  %v1288_v9 = vmul.f32 %v4006_v59, %v4154_v11 }
 0x3b1   : > { %v2064_v4 = vadd.f32 %v2054_v22, %v2026_v14  ;;  %v6205_v14 = vld [vmem:[#allocation47_spill] sm:$0xff] }
 0x3b3   : > { %1917 = vrot.lane.b32.xlu0 %v1906_v50, %s3673_s15  ;;  %v4741_v51 = vpop.permute.xlu0 %2052  ;;  %v1405_v50 = vadd.f32 %v1395_v31, %v1367_v39  ;;  %v6201_v39 = vld [vmem:[#allocation44_spill] sm:$0xff]  ;;  %v6204_v31 = vld [vmem:[#allocation46_spill] sm:$0xff] }
 0x3b4   : > { %v1433_v3 = vsel %vm1234_vm1, %v4435_v38, %v6201_v39  ;;  %v1650_v8 = vsel %vm1234_vm1, %v4449_v2, %v6204_v31  ;;  %v1758_v38 = vsel %vm1112_vm0, %v4453_v41, %v6205_v14  ;;  %v6213_v2 = vld [vmem:[#allocation55_spill] sm:$0xff] }
 0x3b5   : > { %v1443_v46 = vadd.f32 %v1433_v3, %v1405_v50  ;;  %v1622_v50 = vadd.f32 %v1612_v34, %v1584_v52 }
 0x3b7   : > { %v1660_v34 = vadd.f32 %v1650_v8, %v1622_v50 }
 0x40d   : > { %v4755_v13 = vpop.permute.xlu1 %2084  ;;  %v2083_v55 = vpop.permute.xlu0 %2082 }
 0x40e   : > { %v2092_v45 = vsel %vm1234_vm1, %v2083_v55, %v4755_v13  ;;  %v2101_v5 = vadd.f32 %v2083_v55, %v2063_v18  ;;  %v1724_v18 = vmul.f32 %v4031_v40, %v4205_v44 }
 0x40f   : > { %v2102_v63 = vadd.f32 %v2092_v45, %v2064_v4  ;;  %v6207_v4 = vld [vmem:[#allocation10_spill] sm:$0xff] }
 0x410   : > { %v6215_v50 = vunpack.i.l.bf16 %v6207_v4  ;;  %v4908_v53 = vunpack.i.h.bf16 %v6207_v4 }
 0x411   : > { %v4765_v37 = vpop.permute.xlu1 %2088  ;;  %v4767_v49 = vpop.permute.xlu0 %2086 }
 0x415   : > { %v3541_v7 = vpop.permute.xlu1 %3540  ;;  %v4785_v28 = vpop.permute.xlu0 %2090 }
 0x416   : > { %v3543_v10 = vunpack.i.h.bf16 %v3541_v7  ;;  %v4787_v16 = vunpack.i.l.bf16 %v3541_v7  ;;  %v6208_v7 = vld [vmem:[#allocation48_spill] sm:$0xff] }
 0x417   : > { %v1795_v41 = vsel %vm1151_vm6, %v4455_v56, %v6208_v7  ;;  %v6212_v56 = vld [vmem:[#allocation54_spill] sm:$0xff] }
 0x418   : > { %6200 = vst [vmem:[#allocation75_spill] sm:$0xff] %v4787_v16  ;;  %v4797_v22 = vsel %vm2118_vm7, %v4787_v16, %v3543_v10  ;;  %v2127_v55 = vmul.f32 %v4787_v16, %v2101_v5  ;;  %v6209_v5 = vld [vmem:[#allocation11_spill] sm:$0xff]  ;;  %v1871_v16 = vsel %vm1234_vm1, %v4469_v42, %v6218_v29  ;;  %v2055_v42 = vsel %vm1195_vm3, %v4599_v33, %v4739_v62 }
 0x419   : > { %6203 = vst [vmem:[#allocation44_spill] sm:$0xff] %v4797_v22  ;;  %v3546_v0 = vpop.permute.xlu0 %3545  ;;  %v2128_v1 = vmul.f32 %v4797_v22, %v2102_v63  ;;  %v1469_v3 = vmul.f32 %v6209_v5, %v1443_v46  ;;  %v1767_v63 = vadd.f32 %v1758_v38, %v1724_v18  ;;  %v6214_v46 = vld [vmem:[#allocation52_spill] sm:$0xff]  ;;  %v1946_v38 = vmul.f32 %v4539_v35, %v4205_v44 }
 0x41a   : > { %v4809_v45 = vunpack.i.h.bf16 %v3546_v0  ;;  %v3547_v25 = vunpack.i.l.bf16 %v3546_v0  ;;  %2137 = vrot.lane.b32.xlu1 %v2127_v55, %s3674_s16  ;;  %v4825_v55 = vld [vmem:[%s3804_s19 + $0x8] sm:$0xff]  ;;  %v6211_v0 = vld [vmem:[#allocation49_spill] sm:$0xff]  ;;  %v1331_v8 = vadd.f32 %v6214_v46, %v1288_v9  ;;  %v6216_v18 = vunpack.i.h.bf16 %v4049_v17 }
 0x41b   : > { %2139 = vrot.lane.b32.xlu0 %v2128_v1, %s3674_s16  ;;  %v1833_v32 = vsel %vm1195_vm3, %v4459_v36, %v6211_v0  ;;  %v1980_v1 = vsel %vm1112_vm0, %v4578_v47, %v6213_v2  ;;  %v1805_v22 = vadd.f32 %v1795_v41, %v1767_v63  ;;  %v2017_v47 = vsel %vm1151_vm6, %v4584_v23, %v4735_v30  ;;  %v6242_v5 = vld [vmem:[#allocation32_spill] sm:$0xff] }
 0x41c   : > { %6206 = vst [vmem:[#allocation45_spill] sm:$0xff] %v4809_v45  ;;  %v4822_v52 = vsel %vm2118_vm7, %v3547_v25, %v4809_v45  ;;  %v4843_v36 = vsel %vm1151_vm6, %v6216_v18, %v6215_v50  ;;  %v1989_v58 = vadd.f32 %v1980_v1, %v1946_v38  ;;  %v6220_v17 = vunpack.i.l.bf16 %v6212_v56  ;;  %6244 = vst [vmem:[#allocation49_spill] sm:$0xff] %v4908_v53 }
 0x41d   : > { %6210 = vst [vmem:[#allocation46_spill] sm:$0xff] %v4822_v52  ;;  %6217 = vst [vmem:[#allocation47_spill] sm:$0xff] %v4843_v36  ;;  %v1685_v41 = vmul.f32 %v4843_v36, %v1660_v34  ;;  %v1843_v9 = vadd.f32 %v1833_v32, %v1805_v22  ;;  %v6221_v50 = vunpack.i.h.bf16 %v4264_v24  ;;  %v6223_v34 = vld [vmem:[#allocation22_spill] sm:$0xff]  ;;  %v6224_v32 = vld [vmem:[#allocation56_spill] sm:$0xff]  ;;  %v2093_v1 = vsel %vm1234_vm1, %v4755_v13, %v4767_v49 }
 0x41e   : > { %1481 = vrot.lane.b32.xlu1 %v1469_v3, %s3671_s13  ;;  %v6219_v3 = vld [vmem:[#allocation53_spill] sm:$0xff]  ;;  %v2027_v20 = vadd.f32 %v2017_v47, %v1989_v58  ;;  %v1397_v22 = vsel %vm1195_vm3, %v6224_v32, %v6223_v34  ;;  %v6225_v24 = vmov 5   ;;  %v4877_v58 = vsel %vm2118_vm7, %v3543_v10, %v3547_v25  ;;  %v6230_v34 = vld [vmem:[#allocation27_spill] sm:$0xff] }
 0x41f   : > { %2242 = vperm.xlu0 %3549, %v4825_v55   ;;  %v1369_v63 = vadd.f32 %v6219_v3, %v1331_v8  ;;  %v4859_v18 = vsel %vm1896_vm12, %v6221_v50, %v6220_v17  ;;  %v1881_v23 = vadd.f32 %v1871_v16, %v1843_v9  ;;  %v1510_v8 = vmul.f32 %v4003_v57, %v4154_v11  ;;  %v6227_v16 = vld [vmem:[#allocation58_spill] sm:$0xff]  ;;  %v6228_v13 = vld [vmem:[#allocation25_spill] sm:$0xff] }
 0x420   : > { %6222 = vst [vmem:[#allocation10_spill] sm:$0xff] %v4859_v18  ;;  %v2065_v17 = vadd.f32 %v2055_v42, %v2027_v20  ;;  %6226 = vst [vmem:[#allocation48_spill] sm:$0xff] %v4877_v58  ;;  %v6229_v9 = vld [vmem:[#allocation57_spill] sm:$0xff]  ;;  %v1726_v10 = vmul.f32 %v4031_v40, %v4154_v11 }
 0x421   : > { %v1407_v38 = vadd.f32 %v1397_v22, %v1369_v63  ;;  %v1907_v33 = vmul.f32 %v4859_v18, %v1881_v23  ;;  %v1553_v47 = vadd.f32 %v6227_v16, %v1510_v8  ;;  %v1435_v50 = vsel %vm1234_vm1, %v6229_v9, %v6228_v13  ;;  %v6232_v63 = vld [vmem:[#allocation59_spill] sm:$0xff]  ;;  %v6235_v8 = vld [vmem:[#allocation61_spill] sm:$0xff] }
 0x422   : > { %1697 = vrot.lane.b32.xlu1 %v1685_v41, %s3672_s14  ;;  %v2103_v41 = vadd.f32 %v2093_v1, %v2065_v17  ;;  %v6233_v23 = vmov 6   ;;  %v6234_v1 = vld [vmem:[#allocation29_spill] sm:$0xff]  ;;  %v6237_v13 = vld [vmem:[#allocation63_spill] sm:$0xff] }
 0x423   : > { %3550 = vset.pattern.permute.xlu0 %v6225_v24  ;;  %v6231_v24 = vld [vmem:[#allocation60_spill] sm:$0xff]  ;;  %v1586_v42 = vadd.f32 %v6232_v63, %v1553_v47  ;;  %v1445_v22 = vadd.f32 %v1435_v50, %v1407_v38  ;;  %v1652_v17 = vsel %vm1234_vm1, %v6235_v8, %v6234_v1  ;;  %v6239_v38 = vld [vmem:[#allocation31_spill] sm:$0xff]  ;;  %v1873_v1 = vsel %vm1234_vm1, %v6243_v12, %v6242_v5  ;;  %v6247_v5 = vld [vmem:[#allocation66_spill] sm:$0xff] }
 0x424   : > { %2256 = vperm.xlu0 %3550, %v4825_v55   ;;  %v1614_v20 = vsel %vm1195_vm3, %v6231_v24, %v6230_v34  ;;  %v2129_v25 = vmul.f32 %v4877_v58, %v2103_v41  ;;  %v6238_v34 = vld [vmem:[#allocation62_spill] sm:$0xff]  ;;  %v6240_v47 = vld [vmem:[#allocation64_spill] sm:$0xff] }
 0x425   : > { %v1624_v36 = vadd.f32 %v1614_v20, %v1586_v42  ;;  %v1769_v43 = vadd.f32 %v6238_v34, %v1726_v10  ;;  %v1835_v50 = vsel %vm1195_vm3, %v6240_v47, %v6239_v38  ;;  %v1948_v42 = vmul.f32 %v4539_v35, %v4154_v11  ;;  %v6245_v10 = vld [vmem:[#allocation67_spill] sm:$0xff] }
 0x426   : > { %1919 = vrot.lane.b32.xlu1 %v1907_v33, %s3673_s15  ;;  %v6236_v33 = vld [vmem:[#allocation30_spill] sm:$0xff] }
 0x427   : > { %v1797_v18 = vsel %vm1151_vm6, %v6237_v13, %v6236_v33  ;;  %v1662_v41 = vadd.f32 %v1652_v17, %v1624_v36  ;;  %v2019_v36 = vsel %vm1151_vm6, %v6245_v10, %v4737_v48  ;;  %v6248_v17 = vld [vmem:[#allocation68_spill] sm:$0xff] }
 0x428   : > { %3555 = vset.pattern.permute.xlu0 %v6233_v23  ;;  %v1807_v58 = vadd.f32 %v1797_v18, %v1769_v43  ;;  %v6241_v23 = vld [vmem:[#allocation7_spill] sm:$0xff]  ;;  %v4917_v43 = vunpack.i.h.bf16 %v6212_v56 }
 0x429   : > { %v1471_v21 = vmul.f32 %v6241_v23, %v1445_v22  ;;  %v1687_v18 = vmul.f32 %v4908_v53, %v1662_v41 }
 0x42a   : > { %2141 = vrot.lane.b32.xlu1 %v2129_v25, %s3674_s16  ;;  %v1845_v20 = vadd.f32 %v1835_v50, %v1807_v58  ;;  %6246 = vst [vmem:[#allocation54_spill] sm:$0xff] %v4917_v43  ;;  %v1991_v25 = vadd.f32 %v6247_v5, %v1948_v42  ;;  %v2057_v58 = vsel %vm1195_vm3, %v6248_v17, %v4741_v51  ;;  %v6250_v51 = vmov 15  }
 0x42c   : > { %v1883_v22 = vadd.f32 %v1873_v1, %v1845_v20  ;;  %v2029_v33 = vadd.f32 %v2019_v36, %v1991_v25  ;;  %v6249_v1 = vld [vmem:[#allocation17_spill] sm:$0xff]  ;;  %v6251_v20 = vmov 20   ;;  %v6254_v25 = vld [vmem:[#allocation4_spill] sm:$0xff] }
 0x42e   : > { %1485 = vrot.lane.b32.xlu1 %v1471_v21, %s3671_s13  ;;  %v2095_v21 = vsel %vm1234_vm1, %v4765_v37, %v4785_v28  ;;  %v1909_v48 = vmul.f32 %v4917_v43, %v1883_v22  ;;  %v2067_v38 = vadd.f32 %v2057_v58, %v2029_v33  ;;  %v4937_v28 = vpop.permute.xlu0 %1479  ;;  %v6253_v22 = vld [vmem:[#allocation13_spill] sm:$0xff] }
 0x42f   : > { %v810_v58 = vmul.f32 %v6254_v25, %v6253_v22  ;;  %v1359_v22 = vsel %vm1151_vm6, %v4483_v60, %v6219_v3  ;;  %v1396_v60 = vsel %vm1195_vm3, %v4511_v19, %v6224_v32  ;;  %v1543_v3 = vsel %vm1112_vm0, %v4515_v15, %v6227_v16 }
 0x430   : > { %v2105_v50 = vadd.f32 %v2095_v21, %v2067_v38  ;;  %v6256_v21 = vld [vmem:[#allocation3_spill] sm:$0xff]  ;;  %v1434_v15 = vsel %vm1234_vm1, %v6201_v39, %v6229_v9  ;;  %v1759_v32 = vsel %vm1112_vm0, %v6205_v14, %v6238_v34  ;;  %v1651_v39 = vsel %vm1234_vm1, %v6204_v31, %v6235_v8 }
 0x431   : > { %v6257_v38 = vld [vmem:[#allocation15_spill] sm:$0xff]  ;;  %v1834_v14 = vsel %vm1195_vm3, %v6211_v0, %v6240_v47  ;;  %v1872_v31 = vsel %vm1234_vm1, %v6218_v29, %v6243_v12  ;;  %v6260_v0 = vunpack.i.l.bf16 %v6207_v4  ;;  %v2018_v12 = vsel %vm1151_vm6, %v4735_v30, %v6245_v10 }
 0x432   : > { %1701 = vrot.lane.b32.xlu1 %v1687_v18, %s3672_s14  ;;  %v2131_v41 = vmul.f32 %v4809_v45, %v2105_v50  ;;  %v4939_v42 = vpop.permute.xlu0 %1695  ;;  %v811_v50 = vmul.f32 %v6254_v25, %v6257_v38  ;;  %v2056_v4 = vsel %vm1195_vm3, %v4739_v62, %v6248_v17  ;;  %v2094_v30 = vsel %vm1234_vm1, %v4767_v49, %v4765_v37  ;;  %v6264_v17 = vld [vmem:[#allocation16_spill] sm:$0xff] }
 0x433   : > { %v5034_v47 = vsel %vm1151_vm6, %v6260_v0, %v4908_v53  ;;  %v6315_v53 = vld [vmem:[#allocation43_spill] sm:$0xff] }
 0x434   : > { %v843_v45 = vadd.f32 %v6256_v21, %v811_v50  ;;  %6261 = vst [vmem:[#allocation50_spill] sm:$0xff] %v5034_v47 }
 0x436   : > { %1923 = vrot.lane.b32.xlu1 %v1909_v48, %s3673_s15  ;;  %v4941_v36 = vpop.permute.xlu0 %1917  ;;  %v842_v48 = vadd.f32 %v6256_v21, %v810_v58  ;;  %v6258_v58 = vld [vmem:[#allocation14_spill] sm:$0xff] }
 0x437   : > { %v812_v38 = vmul.f32 %v6254_v25, %v6258_v58 }
 0x439   : > { %v844_v6 = vadd.f32 %v6256_v21, %v812_v38 }
 0x43a   : > { %2145 = vrot.lane.b32.xlu1 %v2131_v41, %s3674_s16  ;;  %v1321_v41 = vsel %vm1112_vm0, %v4481_v27, %v6214_v46  ;;  %v4969_v27 = vpop.permute.xlu1 %1477 }
 0x43b   : > { %v4992_v50 = vmax.f32 %v844_v6, 0.0  ;;  %v1725_v6 = vmul.f32 %v4031_v40, %v4258_v54 }
 0x43e   : > { %v4990_v21 = vpop.permute.xlu1 %1693 }
 0x442   : > { %v5018_v40 = vpop.permute.xlu1 %1915 }
 0x45e   : > { %2206 = vadd.xlane.f32.xlu1 %v6249_v1 }
 0x46f   : > { %2294 = vperm.xlu1 %3551, %v4825_v55  }
 0x473   : > { %3552 = vset.pattern.permute.xlu1 %v6250_v51  ;;  %v1287_v51 = vmul.f32 %v4006_v59, %v4258_v54 }
 0x474   : > { %2337 = vperm.xlu1 %3552, %v4825_v55  }
 0x475   : > { %v1330_v23 = vadd.f32 %v1321_v41, %v1287_v51  ;;  %v6259_v51 = vld [vmem:[#allocation8_spill] sm:$0xff] }
 0x477   : > { %v1368_v46 = vadd.f32 %v1359_v22, %v1330_v23  ;;  %v1509_v23 = vmul.f32 %v4003_v57, %v4258_v54  ;;  %v1613_v57 = vsel %vm1195_vm3, %v6202_v61, %v6231_v24  ;;  %v1796_v61 = vsel %vm1151_vm6, %v6208_v7, %v6237_v13 }
 0x478   : > { %3553 = vset.pattern.permute.xlu1 %v6251_v20  ;;  %v1768_v24 = vadd.f32 %v1759_v32, %v1725_v6  ;;  %v1981_v7 = vsel %vm1112_vm0, %v6213_v2, %v6247_v5  ;;  %v1947_v13 = vmul.f32 %v4539_v35, %v4258_v54  ;;  %v6262_v35 = vunpack.i.l.bf16 %v6212_v56  ;;  %v3628_v6 = vld [vmem:[%s4078_s11 + $0x98] sm:$0xff] }
 0x479   : > { %v1406_v25 = vadd.f32 %v1396_v60, %v1368_v46  ;;  %v1552_v19 = vadd.f32 %v1543_v3, %v1509_v23 }
 0x47a   : > { %v1806_v41 = vadd.f32 %v1796_v61, %v1768_v24  ;;  %v1990_v22 = vadd.f32 %v1981_v7, %v1947_v13  ;;  %v5046_v58 = vsel %vm1896_vm12, %v6262_v35, %v4917_v43  ;;  %v6312_v43 = vmov 17  }
 0x47b   : > { %v1444_v16 = vadd.f32 %v1434_v15, %v1406_v25  ;;  %6263 = vst [vmem:[#allocation53_spill] sm:$0xff] %v5046_v58  ;;  %v3625_v15 = vld [vmem:[%s4078_s11 + $0x80] sm:$0xff] }
 0x47c   : > { %v1844_v8 = vadd.f32 %v1834_v14, %v1806_v41  ;;  %v2028_v38 = vadd.f32 %v2018_v12, %v1990_v22  ;;  %v6265_v12 = vmov 1  }
 0x47e   : > { %v1882_v5 = vadd.f32 %v1872_v31, %v1844_v8  ;;  %v2066_v46 = vadd.f32 %v2056_v4, %v2028_v38 }
 0x480   : > { %v1908_v10 = vmul.f32 %v5046_v58, %v1882_v5  ;;  %v2104_v56 = vadd.f32 %v2094_v30, %v2066_v46 }
 0x482   : > { %v2130_v60 = vmul.f32 %v4822_v52, %v2104_v56  ;;  %v1704_v52 = vsel %vm1703_vm9, %v4990_v21, %v4939_v42 }
 0x48c   : > { %v5039_v29 = vpop.permute.xlu1 %2137 }
 0x48d   : > { %v4943_v18 = vpop.permute.xlu0 %2139 }
 0x48e   : > { %6252 = vst [vmem:[#allocation55_spill] sm:$0xff] %v4943_v18  ;;  %v4974_v18 = vmax.f32 %v843_v45, 0.0  ;;  %v1576_v45 = vsel %vm1151_vm6, %v4517_v26, %v6232_v63 }
 0x48f   : > { %v1585_v26 = vadd.f32 %v1576_v45, %v1552_v19 }
 0x491   : > { %v1623_v9 = vadd.f32 %v1613_v57, %v1585_v26  ;;  %v3626_v57 = vld [vmem:[%s4078_s11 + $0x88] sm:$0xff]  ;;  %v3627_v26 = vld [vmem:[%s4078_s11 + $0x90] sm:$0xff] }
 0x493   : > { %v1661_v34 = vadd.f32 %v1651_v39, %v1623_v9 }
 0x495   : > { %v1686_v2 = vmul.f32 %v5034_v47, %v1661_v34 }
 0x49e   : > { %v4947_v33 = vpop.permute.xlu0 %2242 }
 0x49f   : > { %6255 = vst [vmem:[#allocation52_spill] sm:$0xff] %v4947_v33  ;;  %v4963_v33 = vmax.f32 %v842_v48, 0.0 }
 0x4a3   : > { %v4955_v1 = vpop.permute.xlu0 %2256 }
 0x4a4   : > { %v2259_v20 = vmul.f32 0.0, %v4955_v1  ;;  %v2260_v59 = vmul.f32 %v4955_v1, %v4963_v33  ;;  %v2261_v48 = vmul.f32 %v4955_v1, %v4974_v18  ;;  %v2262_v63 = vmul.f32 %v4955_v1, %v4992_v50 }
 0x4a5   : > { %v2263_v37 = vmul.f32 %v4955_v1, %v6264_v17 }
 0x4a6   : > { %2269 = vrot.lane.b32.xlu0 %v2259_v20, %s3662_s29  ;;  %v1470_v20 = vmul.f32 %v6259_v51, %v1444_v16 }
 0x4aa   : > { %2271 = vrot.lane.b32.xlu0 %v2260_v59, %s3662_s29  ;;  %v5056_v59 = vpop.permute.xlu1 %1481 }
 0x4ae   : > { %2273 = vrot.lane.b32.xlu0 %v2261_v48, %s3662_s29  ;;  %v5061_v62 = vpop.permute.xlu1 %1697 }
 0x4b2   : > { %2275 = vrot.lane.b32.xlu0 %v2262_v63, %s3662_s29  ;;  %v5066_v49 = vpop.permute.xlu1 %1919 }
 0x4b6   : > { %1483 = vrot.lane.b32.xlu0 %v1470_v20, %s3671_s13  ;;  %v5068_v3 = vpop.permute.xlu1 %2141 }
 0x4ba   : > { %1699 = vrot.lane.b32.xlu0 %v1686_v2, %s3672_s14  ;;  %v5070_v23 = vpop.permute.xlu1 %1485 }
 0x4be   : > { %1921 = vrot.lane.b32.xlu0 %v1908_v10, %s3673_s15  ;;  %v5072_v25 = vpop.permute.xlu1 %1701 }
 0x4c2   : > { %2143 = vrot.lane.b32.xlu0 %v2130_v60, %s3674_s16  ;;  %v5074_v48 = vpop.permute.xlu1 %1923 }
 0x4c6   : > { %2277 = vrot.lane.b32.xlu0 %v2263_v37, %s3662_s29  ;;  %v5076_v45 = vpop.permute.xlu1 %2145  ;;  %v6268_v37 = vmov 11  }
 0x4eb   : > { %v2207_v19 = vpop.xlane.xlu1 %2206 }
 0x4ec   : > { %v2208_v1 = vsub.f32 %v3625_v15, %v2207_v19  ;;  %v2209_v32 = vsub.f32 %v3626_v57, %v2207_v19  ;;  %v2210_v16 = vsub.f32 %v3627_v26, %v2207_v19  ;;  %v2211_v63 = vsub.f32 %v3628_v6, %v2207_v19 }
 0x4ed   : > { %v6269_v19 = vmov 16  }
 0x4ee   : > { %v2212_v39 = vand.u32 2147483647, %v2208_v1  ;;  %v2213_v61 = vand.u32 2147483647, %v2209_v32  ;;  %v2214_v9 = vand.u32 2147483647, %v2210_v16 }
 0x4ef   : > { %v2215_v24 = vand.u32 2147483647, %v2211_v63  ;;  %v2295_v14 = vpop.permute.xlu1 %2294 }
 0x4f0   : > { %3409 = vst [vmem:[%s4078_s11 + $0x60] sm:$0xff] %v2212_v39  ;;  %3410 = vst [vmem:[%s4078_s11 + $0x68] sm:$0xff] %v2213_v61  ;;  %v2297_v34 = vmul.f32 0.0, %v2295_v14  ;;  %v2298_v31 = vmul.f32 %v2295_v14, %v4963_v33  ;;  %v2299_v8 = vmul.f32 %v2295_v14, %v4974_v18  ;;  %v2300_v13 = vmul.f32 %v2295_v14, %v4992_v50 }
 0x4f1   : > { %3411 = vst [vmem:[%s4078_s11 + $0x70] sm:$0xff] %v2214_v9  ;;  %3412 = vst [vmem:[%s4078_s11 + $0x78] sm:$0xff] %v2215_v24  ;;  %v2301_v0 = vmul.f32 %v2295_v14, %v6264_v17 }
 0x4f2   : > { %2307 = vrot.lane.b32.xlu0 %v2297_v34, %s3652_s23 }
 0x4f3   : > { %v2338_v41 = vpop.permute.xlu1 %2337 }
 0x4f4   : > { %v2341_v20 = vmul.f32 %v2338_v41, %v4974_v18  ;;  %v2343_v7 = vmul.f32 %v2338_v41, %v6264_v17  ;;  %v2340_v2 = vmul.f32 %v2338_v41, %v4963_v33  ;;  %v2342_v5 = vmul.f32 %v2338_v41, %v4992_v50 }
 0x4f5   : > { %v2344_v22 = vmul.f32 0.0, %v2338_v41 }
 0x4f6   : > { %2352 = vrot.lane.b32.xlu1 %v2341_v20, %s3664_s8  ;;  %2309 = vrot.lane.b32.xlu0 %v2298_v31, %s3652_s23 }
 0x4fa   : > { %2356 = vrot.lane.b32.xlu1 %v2343_v7, %s3664_s8  ;;  %2311 = vrot.lane.b32.xlu0 %v2299_v8, %s3652_s23 }
 0x4fe   : > { %2375 = vperm.xlu1 %3553, %v4825_v55   ;;  %2313 = vrot.lane.b32.xlu0 %v2300_v13, %s3652_s23 }
 0x502   : > { %2315 = vrot.lane.b32.xlu0 %v2301_v0, %s3652_s23  ;;  %3554 = vset.pattern.permute.xlu1 %v6265_v12 }
 0x506   : > { %2350 = vrot.lane.b32.xlu0 %v2340_v2, %s3664_s8 }
 0x50a   : > { %2354 = vrot.lane.b32.xlu0 %v2342_v5, %s3664_s8 }
 0x50e   : > { %2358 = vrot.lane.b32.xlu0 %v2344_v22, %s3664_s8 }
 0x518   : > { %v5123_v15 = vpop.permute.xlu0 %2269 }
 0x519   : > { %6270 = vst [vmem:[#allocation58_spill] sm:$0xff] %v5123_v15  ;;  %v6309_v15 = vmov 9  }
 0x51c   : > { %v5125_v1 = vpop.permute.xlu0 %2271 }
 0x51d   : > { %6271 = vst [vmem:[#allocation25_spill] sm:$0xff] %v5125_v1  ;;  %v6310_v1 = vld [vmem:[#allocation38_spill] sm:$0xff] }
 0x520   : > { %v5127_v57 = vpop.permute.xlu0 %2273 }
 0x521   : > { %6272 = vst [vmem:[#allocation57_spill] sm:$0xff] %v5127_v57  ;;  %v1488_v57 = vsel %vm1487_vm8, %v4969_v27, %v4937_v28 }
 0x524   : > { %v5129_v32 = vpop.permute.xlu0 %2275 }
 0x525   : > { %6273 = vst [vmem:[#allocation27_spill] sm:$0xff] %v5129_v32 }
 0x528   : > { %v5131_v26 = vpop.permute.xlu0 %1483 }
 0x52c   : > { %v5133_v16 = vpop.permute.xlu0 %1699 }
 0x530   : > { %v5135_v6 = vpop.permute.xlu0 %1921 }
 0x534   : > { %v5137_v63 = vpop.permute.xlu0 %2143 }
 0x538   : > { %v5139_v39 = vpop.permute.xlu0 %2277 }
 0x539   : > { %6274 = vst [vmem:[#allocation60_spill] sm:$0xff] %v5139_v39 }
 0x564   : > { %v5141_v61 = vpop.permute.xlu0 %2307 }
 0x565   : > { %6275 = vst [vmem:[#allocation59_spill] sm:$0xff] %v5141_v61 }
 0x568   : > { %v5106_v35 = vpop.permute.xlu1 %2352  ;;  %v5143_v9 = vpop.permute.xlu0 %2309 }
 0x569   : > { %6266 = vst [vmem:[#allocation22_spill] sm:$0xff] %v5106_v35  ;;  %6276 = vst [vmem:[#allocation29_spill] sm:$0xff] %v5143_v9 }
 0x56c   : > { %v5108_v4 = vpop.permute.xlu1 %2356  ;;  %v5145_v24 = vpop.permute.xlu0 %2311 }
 0x56d   : > { %6267 = vst [vmem:[#allocation56_spill] sm:$0xff] %v5108_v4  ;;  %6277 = vst [vmem:[#allocation61_spill] sm:$0xff] %v5145_v24  ;;  %v6308_v24 = vld [vmem:[#allocation34_spill] sm:$0xff] }
 0x570   : > { %v5147_v14 = vpop.permute.xlu0 %2313 }
 0x571   : > { %6278 = vst [vmem:[#allocation30_spill] sm:$0xff] %v5147_v14  ;;  %v6307_v14 = vld [vmem:[#allocation37_spill] sm:$0xff] }
 0x572   : > { %v1154_v32 = vsel %vm1151_vm6, %v6308_v24, %v6307_v14 }
 0x574   : > { %v5149_v34 = vpop.permute.xlu0 %2315 }
 0x575   : > { %6279 = vst [vmem:[#allocation63_spill] sm:$0xff] %v5149_v34 }
 0x578   : > { %v5151_v41 = vpop.permute.xlu0 %2350 }
 0x579   : > { %6280 = vst [vmem:[#allocation62_spill] sm:$0xff] %v5151_v41  ;;  %v6299_v41 = vld [vmem:[#allocation39_spill] sm:$0xff] }
 0x57c   : > { %v5153_v20 = vpop.permute.xlu0 %2354 }
 0x57d   : > { %v2376_v38 = vpop.permute.xlu1 %2375  ;;  %6281 = vst [vmem:[#allocation31_spill] sm:$0xff] %v5153_v20  ;;  %v6297_v20 = vmov 21  }
 0x57e   : > { %v2379_v30 = vmul.f32 %v2376_v38, %v4974_v18  ;;  %v2378_v10 = vmul.f32 %v2376_v38, %v4963_v33  ;;  %v2381_v46 = vmul.f32 %v2376_v38, %v6264_v17  ;;  %v2380_v56 = vmul.f32 %v2376_v38, %v4992_v50 }
 0x57f   : > { %v2382_v60 = vmul.f32 0.0, %v2376_v38 }
 0x580   : > { %2390 = vrot.lane.b32.xlu1 %v2379_v30, %s3663_s30  ;;  %2388 = vrot.lane.b32.xlu0 %v2378_v10, %s3663_s30  ;;  %v5155_v31 = vpop.permute.xlu0 %2358  ;;  %v6286_v30 = vmov 7  }
 0x581   : > { %6282 = vst [vmem:[#allocation64_spill] sm:$0xff] %v5155_v31 }
 0x584   : > { %2394 = vrot.lane.b32.xlu1 %v2381_v46, %s3663_s30  ;;  %2392 = vrot.lane.b32.xlu0 %v2380_v56, %s3663_s30 }
 0x588   : > { %2423 = vperm.xlu1 %3554, %v4825_v55   ;;  %2396 = vrot.lane.b32.xlu0 %v2382_v60, %s3663_s30 }
 0x58c   : > { %2437 = vperm.xlu0 %3555, %v4825_v55   ;;  %3556 = vset.pattern.permute.xlu1 %v6268_v37 }
 0x590   : > { %3558 = vset.pattern.permute.xlu0 %v6269_v19 }
 0x5f2   : > { %v5157_v7 = vpop.permute.xlu0 %2388  ;;  %v5174_v10 = vpop.permute.xlu1 %2390 }
 0x5f3   : > { %6283 = vst [vmem:[#allocation32_spill] sm:$0xff] %v5157_v7  ;;  %6287 = vst [vmem:[#allocation66_spill] sm:$0xff] %v5174_v10  ;;  %v6294_v10 = vld [vmem:[#allocation20_spill] sm:$0xff] }
 0x5f6   : > { %v5159_v8 = vpop.permute.xlu0 %2392  ;;  %v5176_v46 = vpop.permute.xlu1 %2394 }
 0x5f7   : > { %6284 = vst [vmem:[#allocation65_spill] sm:$0xff] %v5159_v8  ;;  %6288 = vst [vmem:[#allocation68_spill] sm:$0xff] %v5176_v46  ;;  %v6292_v46 = vld [vmem:[#allocation5_spill] sm:$0xff]  ;;  %v6293_v8 = vld [vmem:[#allocation24_spill] sm:$0xff] }
 0x5f8   : > { %v1152_v4 = vsel %vm1151_vm6, %v6294_v10, %v6293_v8  ;;  %v1082_v34 = vmul.f32 %v6292_v46, %v4154_v11  ;;  %v6298_v10 = vld [vmem:[#allocation28_spill] sm:$0xff]  ;;  %v6305_v11 = vld [vmem:[#allocation9_spill] sm:$0xff] }
 0x5fa   : > { %v5161_v13 = vpop.permute.xlu0 %2396  ;;  %v1126_v39 = vadd.f32 %v6299_v41, %v1082_v34  ;;  %v1080_v34 = vmul.f32 %v6292_v46, %v4205_v44  ;;  %v6311_v44 = vld [vmem:[#allocation42_spill] sm:$0xff] }
 0x5fb   : > { %6285 = vst [vmem:[#allocation67_spill] sm:$0xff] %v5161_v13  ;;  %v1078_v13 = vmul.f32 0.0, %v6292_v46 }
 0x607   : > { %v5178_v56 = vpop.permute.xlu1 %2423 }
 0x60b   : > { %v2438_v0 = vpop.permute.xlu0 %2437 }
 0x60c   : > { %v2442_v12 = vmul.f32 %v2438_v0, %v4974_v18  ;;  %v2440_v2 = vmul.f32 0.0, %v2438_v0  ;;  %v2444_v5 = vmul.f32 %v2438_v0, %v6264_v17  ;;  %v2441_v22 = vmul.f32 %v2438_v0, %v4963_v33 }
 0x60d   : > { %v2443_v38 = vmul.f32 %v2438_v0, %v4992_v50 }
 0x60e   : > { %2454 = vrot.lane.b32.xlu0 %v2442_v12, %s3662_s29  ;;  %2450 = vrot.lane.b32.xlu1 %v2440_v2, %s3662_s29 }
 0x612   : > { %2458 = vrot.lane.b32.xlu0 %v2444_v5, %s3662_s29  ;;  %2452 = vrot.lane.b32.xlu1 %v2441_v22, %s3662_s29  ;;  %v6290_v5 = vld [vmem:[#allocation23_spill] sm:$0xff]  ;;  %v6291_v22 = vld [vmem:[#allocation18_spill] sm:$0xff] }
 0x616   : > { %2456 = vrot.lane.b32.xlu1 %v2443_v38, %s3662_s29  ;;  %v1113_v38 = vsel %vm1112_vm0, %v6291_v22, %v6290_v5  ;;  %v6296_v22 = vld [vmem:[#allocation26_spill] sm:$0xff] }
 0x61a   : > { %2475 = vperm.xlu1 %3556, %v4825_v55  }
 0x61e   : > { %3557 = vset.pattern.permute.xlu1 %v6286_v30 }
 0x680   : > { %v5180_v60 = vpop.permute.xlu1 %2450 }
 0x684   : > { %v5182_v37 = vpop.permute.xlu1 %2452 }
 0x688   : > { %v5184_v19 = vpop.permute.xlu1 %2456 }
 0x689   : > { %6289 = vst [vmem:[#allocation17_spill] sm:$0xff] %v5184_v19  ;;  %v6320_v19 = vmov 13  }
 0x699   : > { %v5186_v12 = vpop.permute.xlu1 %2475 }
 0x69a   : > { %v2479_v0 = vmul.f32 %v5186_v12, %v4963_v33  ;;  %v2478_v2 = vmul.f32 0.0, %v5186_v12  ;;  %v2480_v30 = vmul.f32 %v5186_v12, %v4974_v18 }
 0x69c   : > { %2490 = vrot.lane.b32.xlu1 %v2479_v0, %s3652_s23  ;;  %2488 = vrot.lane.b32.xlu0 %v2478_v2, %s3652_s23  ;;  %v1122_v0 = vadd.f32 %v1113_v38, %v1078_v13  ;;  %v6295_v2 = vmov 12   ;;  %v6300_v13 = vmov 8   ;;  %v6302_v38 = vld [vmem:[#allocation33_spill] sm:$0xff] }
 0x69e   : > { %v1161_v31 = vadd.f32 %v1152_v4, %v1122_v0  ;;  %v6301_v4 = vld [vmem:[#allocation36_spill] sm:$0xff]  ;;  %v6303_v0 = vld [vmem:[#allocation19_spill] sm:$0xff] }
 0x6a0   : > { %2637 = vperm.xlu1 %3557, %v4825_v55   ;;  %2492 = vrot.lane.b32.xlu0 %v2480_v30, %s3652_s23  ;;  %v1205_v7 = vadd.f32 %v6296_v22, %v1161_v31  ;;  %v1115_v30 = vsel %vm1112_vm0, %v6302_v38, %v6301_v4  ;;  %v6304_v31 = vld [vmem:[#allocation51_spill] sm:$0xff] }
 0x6a1   : > { %v1124_v61 = vadd.f32 %v1115_v30, %v1080_v34  ;;  %v6314_v30 = vld [vmem:[#allocation41_spill] sm:$0xff] }
 0x6a2   : > { %v1244_v35 = vadd.f32 %v6298_v10, %v1205_v7  ;;  %v6306_v7 = vld [vmem:[#allocation40_spill] sm:$0xff] }
 0x6a3   : > { %v1163_v27 = vadd.f32 %v1154_v32, %v1124_v61  ;;  %v6317_v32 = vld [vmem:[#allocation55_spill] sm:$0xff]  ;;  %v6318_v61 = vmov 14  }
 0x6a4   : > { %3559 = vset.pattern.permute.xlu1 %v6295_v2  ;;  %2513 = vperm.xlu0 %3558, %v4825_v55   ;;  %v1199_v2 = vsel %vm1195_vm3, %v6304_v31, %v6303_v0 }
 0x6a5   : > { %2675 = vperm.xlu1 %3559, %v4825_v55  }
 0x6a8   : > { %3561 = vset.pattern.permute.xlu0 %v6297_v20  ;;  %v5223_v20 = vunpack.i.l.bf16 %v6305_v11 }
 0x6a9   : > { %3560 = vset.pattern.permute.xlu1 %v6300_v13  ;;  %2551 = vperm.xlu0 %3561, %v4825_v55   ;;  %v1165_v13 = vadd.f32 %v6306_v7, %v1126_v39  ;;  %v1197_v39 = vsel %vm1195_vm3, %v6311_v44, %v6310_v1 }
 0x6aa   : > { %2832 = vperm.xlu1 %3560, %v4825_v55   ;;  %v1270_v0 = vmul.f32 %v5223_v20, %v1244_v35  ;;  %v6313_v35 = vld [vmem:[#allocation21_spill] sm:$0xff]  ;;  %v1207_v34 = vadd.f32 %v1197_v39, %v1163_v27  ;;  %v6321_v27 = vmov 22  }
 0x6ab   : > { %v1209_v9 = vadd.f32 %v1199_v2, %v1165_v13  ;;  %v1926_v2 = vsel %vm1925_vm10, %v5018_v40, %v4941_v36  ;;  %v3483_v40 = vunpack.i.h.bf16 %v6305_v11  ;;  %v1490_v11 = vsel %vm1487_vm8, %v5056_v59, %v5131_v26 }
 0x6ac   : > { %v1497_v58 = vadd.f32 %v1488_v57, %v1270_v0  ;;  %v2148_v57 = vsel %vm2147_vm11, %v5039_v29, %v6317_v32  ;;  %v6319_v0 = vld [vmem:[#allocation6_spill] sm:$0xff] }
 0x6ad   : > { %3564 = vset.pattern.permute.xlu0 %v6309_v15  ;;  %v1238_v15 = vsel %vm1234_vm1, %v6314_v30, %v6313_v35  ;;  %v5259_v51 = vunpack.i.h.bf16 %v6319_v0 }
 0x6ae   : > { %3562 = vset.pattern.permute.xlu1 %v6312_v43  ;;  %3032 = vperm.xlu0 %3564, %v4825_v55   ;;  %v1248_v13 = vadd.f32 %v1238_v15, %v1209_v9  ;;  %v1713_v21 = vadd.f32 %v1704_v52, %v1497_v58  ;;  %v6316_v43 = vld [vmem:[#allocation35_spill] sm:$0xff]  ;;  %v3488_v52 = vunpack.i.l.bf16 %v6319_v0 }
 0x6af   : > { %2708 = vperm.xlu1 %3562, %v4825_v55   ;;  %v1236_v47 = vsel %vm1234_vm1, %v6316_v43, %v6315_v53 }
 0x6b0   : > { %v1935_v35 = vadd.f32 %v1926_v2, %v1713_v21  ;;  %v1246_v58 = vadd.f32 %v1236_v47, %v1207_v34  ;;  %v1274_v29 = vmul.f32 %v5259_v51, %v1248_v13  ;;  %v6322_v47 = vmov 24  }
 0x6b1   : > { %v1706_v34 = vsel %vm1703_vm9, %v5061_v62, %v5133_v16  ;;  %v1114_v13 = vsel %vm1112_vm0, %v6290_v5, %v6302_v38  ;;  %v6324_v5 = vmov 18  }
 0x6b2   : > { %3567 = vset.pattern.permute.xlu0 %v6318_v61  ;;  %v2157_v9 = vadd.f32 %v2148_v57, %v1935_v35  ;;  %v1501_v39 = vadd.f32 %v5070_v23, %v1274_v29  ;;  %v6323_v61 = vld [vmem:[#allocation12_spill] sm:$0xff] }
 0x6b3   : > { %3563 = vset.pattern.permute.xlu1 %v6320_v19  ;;  %3070 = vperm.xlu0 %3567, %v4825_v55   ;;  %v5272_v19 = vsel %vm1261_vm13, %v3483_v40, %v3488_v52  ;;  %v1079_v35 = vmul.f32 %v6292_v46, %v6323_v61 }
 0x6b4   : > { %2870 = vperm.xlu1 %3563, %v4825_v55   ;;  %v1717_v15 = vadd.f32 %v5072_v25, %v1501_v39  ;;  %v1272_v2 = vmul.f32 %v5272_v19, %v1246_v58  ;;  %v1928_v58 = vsel %vm1925_vm10, %v5066_v49, %v5135_v6 }
 0x6b5   : > { %v1123_v38 = vadd.f32 %v1114_v13, %v1079_v35  ;;  %v1155_v13 = vsel %vm1151_vm6, %v6307_v14, %v6306_v7  ;;  %v6327_v7 = vmov 19   ;;  %v2481_v35 = vmul.f32 %v5186_v12, %v4992_v50 }
 0x6b6   : > { %v1939_v21 = vadd.f32 %v5074_v48, %v1717_v15  ;;  %v1499_v57 = vadd.f32 %v1490_v11, %v1272_v2  ;;  %v2150_v11 = vsel %vm2147_vm11, %v5068_v3, %v5137_v63  ;;  %v1081_v2 = vmul.f32 %v6292_v46, %v4258_v54 }
 0x6b7   : > { %2167 = vrot.lane.b32.xlu0 %v2157_v9, %s3675_s17  ;;  %v1153_v9 = vsel %vm1151_vm6, %v6293_v8, %v6308_v24  ;;  %v1116_v24 = vsel %vm1112_vm0, %v6301_v4, %v6299_v41  ;;  %v1198_v41 = vsel %vm1195_vm3, %v6310_v1, %v6304_v31  ;;  %v1235_v46 = vsel %vm1234_vm1, %v6298_v10, %v6316_v43 }
 0x6b8   : > { %3565 = vset.pattern.permute.xlu1 %v6321_v27  ;;  %3570 = vset.pattern.permute.xlu0 %v6322_v47  ;;  %v2161_v29 = vadd.f32 %v5076_v45, %v1939_v21  ;;  %v1715_v39 = vadd.f32 %v1706_v34, %v1499_v57  ;;  %v1196_v27 = vsel %vm1195_vm3, %v6296_v22, %v6311_v44  ;;  %v6325_v34 = vmov 2  }
 0x6b9   : > { %2746 = vperm.xlu1 %3565, %v4825_v55   ;;  %v1162_v15 = vadd.f32 %v1153_v9, %v1123_v38  ;;  %v1125_v22 = vadd.f32 %v1116_v24, %v1081_v2  ;;  %v6326_v44 = vmov 23   ;;  %v1237_v1 = vsel %vm1234_vm1, %v6315_v53, %v6314_v30 }
 0x6ba   : > { %v1937_v8 = vadd.f32 %v1928_v58, %v1715_v39  ;;  %v5334_v31 = vsel %vm1261_vm13, %v5223_v20, %v3483_v40  ;;  %v1489_v10 = vsel %vm1487_vm8, %v4937_v28, %v5056_v59  ;;  %v1705_v58 = vsel %vm1703_vm9, %v4939_v42, %v5061_v62 }
 0x6bb   : > { %3146 = vperm.xlu0 %3570, %v4825_v55   ;;  %v1206_v57 = vadd.f32 %v1196_v27, %v1162_v15  ;;  %v1164_v54 = vadd.f32 %v1155_v13, %v1125_v22  ;;  %v1927_v30 = vsel %vm1925_vm10, %v4941_v36, %v5066_v49  ;;  %v5354_v28 = vsel %vm1261_vm13, %v3488_v52, %v5259_v51 }
 0x6bc   : > { %v2159_v21 = vadd.f32 %v2150_v11, %v1937_v8  ;;  %v1491_v59 = vsel %vm1487_vm8, %v5131_v26, %v5070_v23  ;;  %v6328_v42 = vmov 3   ;;  %v2149_v36 = vsel %vm2147_vm11, %v6317_v32, %v5068_v3 }
 0x6bd   : > { %3566 = vset.pattern.permute.xlu1 %v6324_v5  ;;  %v1245_v4 = vadd.f32 %v1235_v46, %v1206_v57  ;;  %v1208_v14 = vadd.f32 %v1198_v41, %v1164_v54  ;;  %v1707_v49 = vsel %vm1703_vm9, %v5133_v16, %v5072_v25  ;;  %v1929_v23 = vsel %vm1925_vm10, %v5135_v6, %v5074_v48  ;;  %v5381_v16 = vpop.permute.xlu0 %2454 }
 0x6be   : > { %2908 = vperm.xlu1 %3566, %v4825_v55   ;;  %v6329_v25 = vmov 4  }
 0x6bf   : > { %2175 = vrot.lane.b32.xlu0 %v2161_v29, %s3675_s17  ;;  %v1247_v43 = vadd.f32 %v1237_v1, %v1208_v14  ;;  %v1271_v61 = vmul.f32 %v5334_v31, %v1245_v4 }
 0x6c0   : > { %3571 = vset.pattern.permute.xlu0 %v6325_v34 }
 0x6c1   : > { %v1498_v53 = vadd.f32 %v1489_v10, %v1271_v61  ;;  %v1273_v40 = vmul.f32 %v5354_v28, %v1247_v43  ;;  %v5383_v48 = vpop.permute.xlu0 %2458 }
 0x6c2   : > { %3568 = vset.pattern.permute.xlu1 %v6326_v44 }
 0x6c3   : > { %2946 = vperm.xlu1 %3568, %v4825_v55   ;;  %2171 = vrot.lane.b32.xlu0 %v2159_v21, %s3675_s17  ;;  %v1714_v62 = vadd.f32 %v1705_v58, %v1498_v53  ;;  %v1500_v52 = vadd.f32 %v1491_v59, %v1273_v40 }
 0x6c5   : > { %v1936_v0 = vadd.f32 %v1927_v30, %v1714_v62  ;;  %v1716_v9 = vadd.f32 %v1707_v49, %v1500_v52 }
 0x6c7   : > { %3569 = vset.pattern.permute.xlu1 %v6327_v7  ;;  %2623 = vperm.xlu0 %3571, %v4825_v55   ;;  %v2158_v26 = vadd.f32 %v2149_v36, %v1936_v0  ;;  %v1938_v29 = vadd.f32 %v1929_v23, %v1716_v9 }
 0x6c8   : > { %3108 = vperm.xlu1 %3569, %v4825_v55  }
 0x6cb   : > { %3574 = vset.pattern.permute.xlu0 %v6322_v47  ;;  %v2482_v47 = vmul.f32 %v5186_v12, %v6264_v17  ;;  %v2151_v12 = vsel %vm2147_vm11, %v5137_v63, %v5076_v45 }
 0x6cc   : > { %2494 = vrot.lane.b32.xlu1 %v2481_v35, %s3652_s23  ;;  %v2160_v3 = vadd.f32 %v2151_v12, %v1938_v29 }
 0x6cd   : > { %3572 = vset.pattern.permute.xlu1 %v6328_v42 }
 0x6d0   : > { %2496 = vrot.lane.b32.xlu1 %v2482_v47, %s3652_s23 }
 0x6d4   : > { %2169 = vrot.lane.b32.xlu1 %v2158_v26, %s3675_s17 }
 0x6d8   : > { %2173 = vrot.lane.b32.xlu1 %v2160_v3, %s3675_s17 }
 0x6dc   : > { %2818 = vperm.xlu1 %3572, %v4825_v55  }
 0x6e0   : > { %3573 = vset.pattern.permute.xlu1 %v6329_v25 }
 0x6e1   : > { %3018 = vperm.xlu1 %3573, %v4825_v55  }
 0x70e   : > { %v5385_v6 = vpop.permute.xlu1 %2490  ;;  %v5387_v32 = vpop.permute.xlu0 %2488 }
 0x712   : > { %v5390_v5 = vpop.permute.xlu0 %2492 }
 0x71f   : > { %v2638_v45 = vpop.permute.xlu1 %2637 }
 0x720   : > { %v2641_v63 = vmul.f32 %v2638_v45, %v4963_v33  ;;  %v2640_v39 = vmul.f32 0.0, %v2638_v45  ;;  %v2643_v55 = vmul.f32 %v2638_v45, %v4992_v50  ;;  %v2642_v11 = vmul.f32 %v2638_v45, %v4974_v18 }
 0x721   : > { %v2644_v24 = vmul.f32 %v2638_v45, %v6264_v17 }
 0x722   : > { %2652 = vrot.lane.b32.xlu1 %v2641_v63, %s3662_s29  ;;  %2650 = vrot.lane.b32.xlu0 %v2640_v39, %s3662_s29 }
 0x723   : > { %v2514_v27 = vpop.permute.xlu0 %2513 }
 0x724   : > { %v2676_v38 = vpop.permute.xlu1 %2675  ;;  %v2516_v8 = vmul.f32 %v2514_v27, %v4963_v33  ;;  %v2517_v2 = vmul.f32 %v2514_v27, %v4974_v18  ;;  %v2518_v34 = vmul.f32 %v2514_v27, %v4992_v50  ;;  %v2519_v57 = vmul.f32 %v2514_v27, %v6264_v17 }
 0x725   : > { %v2520_v22 = vmul.f32 0.0, %v2514_v27  ;;  %v2678_v41 = vmul.f32 %v2676_v38, %v4963_v33  ;;  %v2679_v54 = vmul.f32 %v2676_v38, %v4974_v18  ;;  %v2680_v14 = vmul.f32 %v2676_v38, %v4992_v50 }
 0x726   : > { %2656 = vrot.lane.b32.xlu1 %v2643_v55, %s3662_s29  ;;  %2654 = vrot.lane.b32.xlu0 %v2642_v11, %s3662_s29  ;;  %v2681_v7 = vmul.f32 %v2676_v38, %v6264_v17 }
 0x728   : > { %v2552_v21 = vpop.permute.xlu0 %2551 }
 0x729   : > { %v2833_v15 = vpop.permute.xlu1 %2832  ;;  %v2554_v42 = vmul.f32 %v2552_v21, %v4963_v33  ;;  %v2555_v47 = vmul.f32 %v2552_v21, %v4974_v18  ;;  %v2556_v36 = vmul.f32 %v2552_v21, %v4992_v50  ;;  %v2557_v0 = vmul.f32 %v2552_v21, %v6264_v17 }
 0x72a   : > { %2658 = vrot.lane.b32.xlu0 %v2644_v24, %s3662_s29  ;;  %2526 = vrot.lane.b32.xlu1 %v2516_v8, %s3664_s8  ;;  %v2835_v1 = vmul.f32 0.0, %v2833_v15  ;;  %v2836_v43 = vmul.f32 %v2833_v15, %v4963_v33  ;;  %v2837_v35 = vmul.f32 %v2833_v15, %v4974_v18  ;;  %v2838_v58 = vmul.f32 %v2833_v15, %v4992_v50 }
 0x72b   : > { %v2839_v59 = vmul.f32 %v2833_v15, %v6264_v17  ;;  %v2558_v52 = vmul.f32 0.0, %v2552_v21 }
 0x72d   : > { %v5415_v46 = vpop.permute.xlu0 %3032 }
 0x72e   : > { %v5404_v13 = vpop.permute.xlu1 %2708  ;;  %2528 = vrot.lane.b32.xlu0 %v2517_v2, %s3664_s8  ;;  %2530 = vrot.lane.b32.xlu1 %v2518_v34, %s3664_s8  ;;  %v3036_v21 = vmul.f32 %v5415_v46, %v4963_v33 }
 0x72f   : > { %v2711_v9 = vmul.f32 %v5404_v13, %v4963_v33  ;;  %v2712_v12 = vmul.f32 %v5404_v13, %v4974_v18  ;;  %v2713_v63 = vmul.f32 %v5404_v13, %v4992_v50  ;;  %v2714_v39 = vmul.f32 %v5404_v13, %v6264_v17 }
 0x730   : > { %v2715_v27 = vmul.f32 0.0, %v5404_v13  ;;  %v3035_v13 = vmul.f32 0.0, %v5415_v46 }
 0x732   : > { %2532 = vrot.lane.b32.xlu0 %v2519_v57, %s3664_s8  ;;  %2534 = vrot.lane.b32.xlu1 %v2520_v22, %s3664_s8  ;;  %v5425_v10 = vpop.permute.xlu0 %3070  ;;  %v3038_v57 = vmul.f32 %v5415_v46, %v4992_v50  ;;  %v3037_v22 = vmul.f32 %v5415_v46, %v4974_v18 }
 0x733   : > { %v5411_v44 = vpop.permute.xlu1 %2870 }
 0x734   : > { %v2873_v24 = vmul.f32 %v5411_v44, %v4963_v33  ;;  %v2874_v8 = vmul.f32 %v5411_v44, %v4974_v18  ;;  %v2875_v15 = vmul.f32 %v5411_v44, %v4992_v50  ;;  %v2876_v2 = vmul.f32 %v5411_v44, %v6264_v17 }
 0x735   : > { %v2877_v34 = vmul.f32 0.0, %v5411_v44 }
 0x736   : > { %2686 = vrot.lane.b32.xlu0 %v2678_v41, %s3652_s23  ;;  %2688 = vrot.lane.b32.xlu1 %v2679_v54, %s3652_s23  ;;  %v2168_v53 = vpop.permute.xlu0 %2167  ;;  %v3039_v41 = vmul.f32 %v5415_v46, %v6264_v17 }
 0x738   : > { %v5419_v4 = vpop.permute.xlu1 %2746 }
 0x739   : > { %v2749_v44 = vmul.f32 %v5419_v4, %v4963_v33  ;;  %v2751_v54 = vmul.f32 %v5419_v4, %v4992_v50 }
 0x73a   : > { %2690 = vrot.lane.b32.xlu0 %v2680_v14, %s3652_s23  ;;  %2692 = vrot.lane.b32.xlu1 %v2681_v7, %s3652_s23  ;;  %v5442_v62 = vpop.permute.xlu0 %3146  ;;  %v2750_v14 = vmul.f32 %v5419_v4, %v4974_v18  ;;  %v2753_v7 = vmul.f32 0.0, %v5419_v4 }
 0x73d   : > { %v5428_v61 = vpop.permute.xlu1 %2908 }
 0x73e   : > { %2845 = vrot.lane.b32.xlu0 %v2835_v1, %s3662_s29  ;;  %2847 = vrot.lane.b32.xlu1 %v2836_v43, %s3662_s29  ;;  %v2176_v23 = vpop.permute.xlu0 %2175  ;;  %v2752_v1 = vmul.f32 %v5419_v4, %v6264_v17  ;;  %v2912_v46 = vmul.f32 %v5428_v61, %v4974_v18  ;;  %v2911_v43 = vmul.f32 %v5428_v61, %v4963_v33 }
 0x73f   : > { %v2913_v4 = vmul.f32 %v5428_v61, %v4992_v50 }
 0x742   : > { %v5434_v30 = vpop.permute.xlu1 %2946  ;;  %2849 = vrot.lane.b32.xlu0 %v2837_v35, %s3662_s29  ;;  %2851 = vrot.lane.b32.xlu1 %v2838_v58, %s3662_s29  ;;  %v2172_v29 = vpop.permute.xlu0 %2171  ;;  %v2914_v35 = vmul.f32 %v5428_v61, %v6264_v17  ;;  %v2915_v58 = vmul.f32 0.0, %v5428_v61  ;;  %v3076_v61 = vmul.f32 %v5425_v10, %v6264_v17 }
 0x746   : > { %2853 = vrot.lane.b32.xlu0 %v2839_v59, %s3662_s29  ;;  %2564 = vrot.lane.b32.xlu1 %v2554_v42, %s3663_s30  ;;  %v3074_v59 = vmul.f32 %v5425_v10, %v4974_v18  ;;  %v3075_v42 = vmul.f32 %v5425_v10, %v4992_v50 }
 0x747   : > { %v5444_v40 = vpop.permute.xlu1 %3108 }
 0x74a   : > { %2566 = vrot.lane.b32.xlu0 %v2555_v47, %s3663_s30  ;;  %2568 = vrot.lane.b32.xlu1 %v2556_v36, %s3663_s30  ;;  %v3077_v47 = vmul.f32 0.0, %v5425_v10 }
 0x74b   : > { %v5450_v49 = vpop.permute.xlu1 %2494 }
 0x74e   : > { %2570 = vrot.lane.b32.xlu0 %v2557_v0, %s3663_s30  ;;  %2572 = vrot.lane.b32.xlu1 %v2558_v52, %s3663_s30  ;;  %v2949_v0 = vmul.f32 %v5434_v30, %v4963_v33  ;;  %v2950_v52 = vmul.f32 %v5434_v30, %v4974_v18 }
 0x74f   : > { %v5455_v26 = vpop.permute.xlu1 %2496 }
 0x752   : > { %2721 = vrot.lane.b32.xlu0 %v2711_v9, %s3664_s8  ;;  %2723 = vrot.lane.b32.xlu1 %v2712_v12, %s3664_s8  ;;  %v2952_v12 = vmul.f32 %v5434_v30, %v6264_v17 }
 0x753   : > { %v2170_v3 = vpop.permute.xlu1 %2169 }
 0x754   : > { %v2178_v25 = vsel %vm2177_vm14, %v2168_v53, %v2170_v3  ;;  %v2179_v45 = vsel %vm2177_vm14, %v2170_v3, %v2172_v29  ;;  %v3073_v53 = vmul.f32 %v5425_v10, %v4963_v33  ;;  %v2951_v10 = vmul.f32 %v5434_v30, %v4992_v50 }
 0x755   : > { %2186 = vst [vmem:[%s4078_s11 + $0x40] sm:$0xff] %v2178_v25  ;;  %2187 = vst [vmem:[%s4078_s11 + $0x48] sm:$0xff] %v2179_v45  ;;  %v2953_v25 = vmul.f32 0.0, %v5434_v30  ;;  %v3111_v45 = vmul.f32 %v5444_v40, %v4963_v33 }
 0x756   : > { %2725 = vrot.lane.b32.xlu0 %v2713_v63, %s3664_s8  ;;  %2727 = vrot.lane.b32.xlu1 %v2714_v39, %s3664_s8 }
 0x757   : > { %v2174_v38 = vpop.permute.xlu1 %2173 }
 0x758   : > { %v2180_v55 = vsel %vm2177_vm14, %v2172_v29, %v2174_v38  ;;  %v2181_v11 = vsel %vm2177_vm14, %v2174_v38, %v2176_v23  ;;  %v5557_v23 = vpop.permute.xlu0 %2623 }
 0x759   : > { %2188 = vst [vmem:[%s4078_s11 + $0x50] sm:$0xff] %v2180_v55  ;;  %2189 = vst [vmem:[%s4078_s11 + $0x58] sm:$0xff] %v2181_v11  ;;  %v3112_v55 = vmul.f32 %v5444_v40, %v4974_v18  ;;  %v3113_v11 = vmul.f32 %v5444_v40, %v4992_v50 }
 0x75a   : > { %2729 = vrot.lane.b32.xlu0 %v2715_v27, %s3664_s8  ;;  %2883 = vrot.lane.b32.xlu1 %v2873_v24, %s3652_s23 }
 0x75b   : > { %v5547_v36 = vpop.permute.xlu1 %2818 }
 0x75e   : > { %2885 = vrot.lane.b32.xlu0 %v2874_v8, %s3652_s23  ;;  %2887 = vrot.lane.b32.xlu1 %v2875_v15, %s3652_s23  ;;  %v3114_v15 = vmul.f32 %v5444_v40, %v6264_v17 }
 0x760   : > { %v5559_v9 = vpop.permute.xlu1 %3018 }
 0x762   : > { %2889 = vrot.lane.b32.xlu0 %v2876_v2, %s3652_s23  ;;  %2891 = vrot.lane.b32.xlu1 %v2877_v34, %s3652_s23  ;;  %v3115_v2 = vmul.f32 0.0, %v5444_v40 }
 0x766   : > { %3047 = vrot.lane.b32.xlu1 %v3036_v21, %s3662_s29  ;;  %3045 = vrot.lane.b32.xlu0 %v3035_v13, %s3662_s29 }
 0x76a   : > { %3051 = vrot.lane.b32.xlu1 %v3038_v57, %s3662_s29  ;;  %3049 = vrot.lane.b32.xlu0 %v3037_v22, %s3662_s29  ;;  %v3150_v57 = vmul.f32 %v5442_v62, %v4974_v18  ;;  %v3149_v22 = vmul.f32 %v5442_v62, %v4963_v33 }
 0x76e   : > { %2759 = vrot.lane.b32.xlu1 %v2749_v44, %s3663_s30  ;;  %3053 = vrot.lane.b32.xlu0 %v3039_v41, %s3662_s29  ;;  %v3152_v41 = vmul.f32 %v5442_v62, %v6264_v17 }
 0x772   : > { %2763 = vrot.lane.b32.xlu1 %v2751_v54, %s3663_s30  ;;  %2761 = vrot.lane.b32.xlu0 %v2750_v14, %s3663_s30  ;;  %v3151_v54 = vmul.f32 %v5442_v62, %v4992_v50 }
 0x776   : > { %2767 = vrot.lane.b32.xlu1 %v2753_v7, %s3663_s30  ;;  %2765 = vrot.lane.b32.xlu0 %v2752_v1, %s3663_s30  ;;  %v3153_v1 = vmul.f32 0.0, %v5442_v62  ;;  %v2498_v62 = vsel %vm1151_vm6, %v5387_v32, %v5385_v6  ;;  %v2823_v32 = vmul.f32 %v5547_v36, %v4974_v18 }
 0x77a   : > { %2923 = vrot.lane.b32.xlu1 %v2912_v46, %s3664_s8  ;;  %2921 = vrot.lane.b32.xlu0 %v2911_v43, %s3664_s8 }
 0x77e   : > { %2927 = vrot.lane.b32.xlu1 %v2914_v35, %s3664_s8  ;;  %2925 = vrot.lane.b32.xlu0 %v2913_v4, %s3664_s8  ;;  %v2426_v35 = vmul.f32 0.0, %v5178_v56  ;;  %v2460_v4 = vsel %vm1112_vm0, %v5180_v60, %v5182_v37  ;;  %v2430_v60 = vmul.f32 %v5178_v56, %v6264_v17 }
 0x782   : > { %2929 = vrot.lane.b32.xlu0 %v2915_v58, %s3664_s8  ;;  %3083 = vrot.lane.b32.xlu1 %v3073_v53, %s3652_s23  ;;  %v2821_v53 = vmul.f32 0.0, %v5547_v36 }
 0x786   : > { %3085 = vrot.lane.b32.xlu0 %v3074_v59, %s3652_s23  ;;  %3087 = vrot.lane.b32.xlu1 %v3075_v42, %s3652_s23 }
 0x78a   : > { %3089 = vrot.lane.b32.xlu0 %v3076_v61, %s3652_s23  ;;  %3091 = vrot.lane.b32.xlu1 %v3077_v47, %s3652_s23  ;;  %v2461_v47 = vsel %vm1112_vm0, %v5182_v37, %v5381_v16 }
 0x78e   : > { %2959 = vrot.lane.b32.xlu0 %v2949_v0, %s3663_s30  ;;  %2961 = vrot.lane.b32.xlu1 %v2950_v52, %s3663_s30  ;;  %v2469_v0 = vadd.f32 %v2460_v4, %v2426_v35  ;;  %v2427_v52 = vmul.f32 %v5178_v56, %v4963_v33  ;;  %v2824_v4 = vmul.f32 %v5547_v36, %v4992_v50 }
 0x790   : > { %v2507_v37 = vadd.f32 %v2498_v62, %v2469_v0 }
 0x792   : > { %2963 = vrot.lane.b32.xlu0 %v2951_v10, %s3663_s30  ;;  %2965 = vrot.lane.b32.xlu1 %v2952_v12, %s3663_s30  ;;  %v2822_v12 = vmul.f32 %v5547_v36, %v4963_v33 }
 0x794   : > { %v2653_v29 = vpop.permute.xlu1 %2652  ;;  %v2651_v3 = vpop.permute.xlu0 %2650 }
 0x795   : > { %v5571_v63 = vsel %vm1112_vm0, %v2651_v3, %v2653_v29  ;;  %v6330_v3 = vld [vmem:[#allocation17_spill] sm:$0xff] }
 0x796   : > { %2967 = vrot.lane.b32.xlu0 %v2953_v25, %s3663_s30  ;;  %3121 = vrot.lane.b32.xlu1 %v3111_v45, %s3664_s8  ;;  %v2462_v25 = vsel %vm1112_vm0, %v5381_v16, %v6330_v3  ;;  %v2500_v16 = vsel %vm1151_vm6, %v5390_v5, %v5450_v49 }
 0x798   : > { %v2657_v39 = vpop.permute.xlu1 %2656  ;;  %v2655_v38 = vpop.permute.xlu0 %2654 }
 0x799   : > { %v5580_v30 = vsel %vm1112_vm0, %v2653_v29, %v2655_v38  ;;  %v5583_v27 = vsel %vm1112_vm0, %v2655_v38, %v2657_v39  ;;  %v2470_v38 = vadd.f32 %v2461_v47, %v2427_v52 }
 0x79a   : > { %3123 = vrot.lane.b32.xlu0 %v3112_v55, %s3664_s8  ;;  %3125 = vrot.lane.b32.xlu1 %v3113_v11, %s3664_s8  ;;  %v2428_v55 = vmul.f32 %v5178_v56, %v4974_v18 }
 0x79c   : > { %v2527_v24 = vpop.permute.xlu1 %2526  ;;  %v5587_v8 = vpop.permute.xlu0 %2658 }
 0x79d   : > { %v5594_v34 = vsel %vm1112_vm0, %v2657_v39, %v5587_v8 }
 0x79e   : > { %3127 = vrot.lane.b32.xlu0 %v3114_v15, %s3664_s8  ;;  %3129 = vrot.lane.b32.xlu1 %v3115_v2, %s3664_s8  ;;  %v2499_v2 = vsel %vm1151_vm6, %v5385_v6, %v5390_v5 }
 0x79f   : > { %v2508_v62 = vadd.f32 %v2499_v2, %v2470_v38  ;;  %v6332_v2 = vld [vmem:[#allocation71_spill] sm:$0xff] }
 0x7a0   : > { %v5598_v13 = vpop.permute.xlu1 %2530  ;;  %v2529_v21 = vpop.permute.xlu0 %2528 }
 0x7a2   : > { %3161 = vrot.lane.b32.xlu1 %v3150_v57, %s3663_s30  ;;  %3159 = vrot.lane.b32.xlu0 %v3149_v22, %s3663_s30  ;;  %v2545_v57 = vadd.f32 %v2527_v24, %v2507_v37  ;;  %v2825_v22 = vmul.f32 %v5547_v36, %v6264_v17  ;;  %v2501_v36 = vsel %vm1151_vm6, %v5450_v49, %v5455_v26 }
 0x7a4   : > { %v5606_v40 = vpop.permute.xlu1 %2534  ;;  %v5608_v44 = vpop.permute.xlu0 %2532 }
 0x7a6   : > { %3165 = vrot.lane.b32.xlu1 %v3152_v41, %s3663_s30  ;;  %3163 = vrot.lane.b32.xlu0 %v3151_v54, %s3663_s30  ;;  %v2463_v41 = vsel %vm1112_vm0, %v6330_v3, %v5383_v48  ;;  %v2471_v54 = vadd.f32 %v2462_v25, %v2428_v55  ;;  %v2539_v25 = vsel %vm1195_vm3, %v5608_v44, %v5606_v40 }
 0x7a8   : > { %v5616_v14 = vpop.permute.xlu1 %2688  ;;  %v5618_v7 = vpop.permute.xlu0 %2686  ;;  %v2509_v47 = vadd.f32 %v2500_v16, %v2471_v54 }
 0x7aa   : > { %3167 = vrot.lane.b32.xlu0 %v3153_v1, %s3663_s30  ;;  %v2536_v1 = vsel %vm1195_vm3, %v2527_v24, %v2529_v21  ;;  %v6331_v24 = vld [vmem:[#allocation69_spill] sm:$0xff] }
 0x7ac   : > { %v5622_v46 = vpop.permute.xlu1 %2692  ;;  %v5624_v43 = vpop.permute.xlu0 %2690 }
 0x7b0   : > { %v2848_v58 = vpop.permute.xlu1 %2847  ;;  %v2846_v59 = vpop.permute.xlu0 %2845 }
 0x7b1   : > { %v2855_v42 = vsel %vm1112_vm0, %v2846_v59, %v2848_v58 }
 0x7b2   : > { %v5635_v61 = vadd.f32 %v2855_v42, %v2821_v53  ;;  %v2429_v42 = vmul.f32 %v5178_v56, %v4992_v50  ;;  %v2538_v56 = vsel %vm1195_vm3, %v5598_v13, %v5608_v44 }
 0x7b4   : > { %v2852_v10 = vpop.permute.xlu1 %2851  ;;  %v2850_v29 = vpop.permute.xlu0 %2849 }
 0x7b5   : > { %v2856_v45 = vsel %vm1112_vm0, %v2848_v58, %v2850_v29  ;;  %v2857_v39 = vsel %vm1112_vm0, %v2850_v29, %v2852_v10  ;;  %v2537_v58 = vsel %vm1195_vm3, %v2529_v21, %v5598_v13  ;;  %v2473_v21 = vadd.f32 %v5383_v48, %v2430_v60  ;;  %v6333_v13 = vld [vmem:[#allocation11_spill] sm:$0xff] }
 0x7b6   : > { %v5655_v11 = vadd.f32 %v2856_v45, %v2822_v12  ;;  %v5657_v15 = vadd.f32 %v2857_v39, %v2823_v32  ;;  %v2472_v12 = vadd.f32 %v2463_v41, %v2429_v42  ;;  %v2546_v32 = vadd.f32 %v2536_v1, %v2508_v62 }
 0x7b7   : > { %v2511_v60 = vadd.f32 %v5455_v26, %v2473_v21  ;;  %v6334_v26 = vld [vmem:[#allocation8_spill] sm:$0xff] }
 0x7b8   : > { %v2565_v35 = vpop.permute.xlu1 %2564  ;;  %v2854_v6 = vpop.permute.xlu0 %2853  ;;  %v2510_v48 = vadd.f32 %v2501_v36, %v2472_v12 }
 0x7b9   : > { %v2583_v5 = vadd.f32 %v2565_v35, %v2545_v57  ;;  %v2858_v53 = vsel %vm1112_vm0, %v2852_v10, %v2854_v6  ;;  %v5676_v59 = vadd.f32 %v2854_v6, %v2825_v22  ;;  %v2547_v10 = vadd.f32 %v2537_v58, %v2509_v47 }
 0x7ba   : > { %v5680_v0 = vadd.f32 %v2858_v53, %v2824_v4  ;;  %v2548_v38 = vadd.f32 %v2538_v56, %v2510_v48  ;;  %v2549_v55 = vadd.f32 %v2539_v25, %v2511_v60  ;;  %v6335_v4 = vld [vmem:[#allocation7_spill] sm:$0xff]  ;;  %v2694_v48 = vsel %vm1151_vm6, %v5618_v7, %v5616_v14 }
 0x7bb   : > { %v2588_v52 = vmul.f32 %v6331_v24, %v2583_v5 }
 0x7bc   : > { %v2569_v29 = vpop.permute.xlu1 %2568  ;;  %v2567_v3 = vpop.permute.xlu0 %2566 }
 0x7bd   : > { %v2574_v37 = vsel %vm1234_vm1, %v2565_v35, %v2567_v3  ;;  %v2575_v49 = vsel %vm1234_vm1, %v2567_v3, %v2569_v29  ;;  %2598 = vrot.lane.b32.xlu1 %v2588_v52, %s3671_s13 }
 0x7be   : > { %v2584_v45 = vadd.f32 %v2574_v37, %v2546_v32  ;;  %v2585_v39 = vadd.f32 %v2575_v49, %v2547_v10  ;;  %v2626_v10 = vmul.f32 0.0, %v5557_v23  ;;  %v2627_v37 = vmul.f32 %v5557_v23, %v4963_v33 }
 0x7bf   : > { %v2628_v49 = vmul.f32 %v5557_v23, %v4974_v18 }
 0x7c0   : > { %v2589_v16 = vmul.f32 %v2584_v45, %v6332_v2  ;;  %v2590_v57 = vmul.f32 %v2585_v39, %v6333_v13  ;;  %v2573_v22 = vpop.permute.xlu1 %2572  ;;  %v2571_v41 = vpop.permute.xlu0 %2570  ;;  %v2670_v45 = vadd.f32 %v5580_v30, %v2627_v37  ;;  %v2696_v30 = vsel %vm1151_vm6, %v5624_v43, %v5622_v46 }
 0x7c1   : > { %v2576_v40 = vsel %vm1234_vm1, %v2569_v29, %v2571_v41  ;;  %v2577_v44 = vsel %vm1234_vm1, %v2571_v41, %v2573_v22  ;;  %v2669_v29 = vadd.f32 %v5571_v63, %v2626_v10  ;;  %v2695_v63 = vsel %vm1151_vm6, %v5616_v14, %v5624_v43 }
 0x7c2   : > { %v2586_v54 = vadd.f32 %v2576_v40, %v2548_v38  ;;  %v2587_v1 = vadd.f32 %v2577_v44, %v2549_v55  ;;  %2602 = vrot.lane.b32.xlu1 %v2590_v57, %s3671_s13  ;;  %2600 = vrot.lane.b32.xlu0 %v2589_v16, %s3671_s13  ;;  %v2671_v39 = vadd.f32 %v5583_v27, %v2628_v49  ;;  %v6336_v27 = vld [vmem:[#allocation70_spill] sm:$0xff]  ;;  %v6338_v49 = vld [vmem:[#allocation47_spill] sm:$0xff] }
 0x7c3   : > { %v2702_v25 = vadd.f32 %v5618_v7, %v2669_v29  ;;  %v2629_v7 = vmul.f32 %v5557_v23, %v4992_v50  ;;  %v2630_v57 = vmul.f32 %v5557_v23, %v6264_v17  ;;  %v2703_v14 = vadd.f32 %v2694_v48, %v2670_v45 }
 0x7c4   : > { %v2591_v35 = vmul.f32 %v2586_v54, %v6334_v26  ;;  %v2592_v6 = vmul.f32 %v6335_v4, %v2587_v1  ;;  %v2724_v58 = vpop.permute.xlu1 %2723  ;;  %v2722_v5 = vpop.permute.xlu0 %2721  ;;  %v2704_v22 = vadd.f32 %v2695_v63, %v2671_v39 }
 0x7c5   : > { %v2740_v60 = vadd.f32 %v2722_v5, %v2702_v25  ;;  %v2731_v2 = vsel %vm1195_vm3, %v2722_v5, %v2724_v58  ;;  %v2672_v40 = vadd.f32 %v5594_v34, %v2629_v7  ;;  %v2673_v44 = vadd.f32 %v5587_v8, %v2630_v57  ;;  %v6337_v25 = vld [vmem:[#allocation73_spill] sm:$0xff] }
 0x7c6   : > { %2606 = vrot.lane.b32.xlu1 %v2592_v6, %s3671_s13  ;;  %2604 = vrot.lane.b32.xlu0 %v2591_v35, %s3671_s13  ;;  %v2741_v54 = vadd.f32 %v2731_v2, %v2703_v14 }
 0x7c7   : > { %v2706_v43 = vadd.f32 %v5622_v46, %v2673_v44  ;;  %v2705_v5 = vadd.f32 %v2696_v30, %v2672_v40  ;;  %v6339_v46 = vld [vmem:[#allocation50_spill] sm:$0xff] }
 0x7c8   : > { %v2728_v53 = vpop.permute.xlu1 %2727  ;;  %v2726_v42 = vpop.permute.xlu0 %2725 }
 0x7c9   : > { %v2732_v16 = vsel %vm1195_vm3, %v2724_v58, %v2726_v42  ;;  %v2733_v4 = vsel %vm1195_vm3, %v2726_v42, %v2728_v53 }
 0x7ca   : > { %v2742_v1 = vadd.f32 %v2732_v16, %v2704_v22  ;;  %v2743_v8 = vadd.f32 %v2733_v4, %v2705_v5 }
 0x7cc   : > { %v5707_v62 = vpop.permute.xlu1 %2883  ;;  %v2730_v47 = vpop.permute.xlu0 %2729 }
 0x7cd   : > { %v2734_v23 = vsel %vm1195_vm3, %v2728_v53, %v2730_v47 }
 0x7ce   : > { %v2744_v29 = vadd.f32 %v2734_v23, %v2706_v43 }
 0x7d0   : > { %v5709_v36 = vpop.permute.xlu1 %2887  ;;  %v5711_v24 = vpop.permute.xlu0 %2885 }
 0x7d4   : > { %v5713_v52 = vpop.permute.xlu1 %2891  ;;  %v5715_v21 = vpop.permute.xlu0 %2889 }
 0x7d5   : > { %v2895_v4 = vsel %vm1151_vm6, %v5709_v36, %v5715_v21 }
 0x7d8   : > { %v5717_v12 = vpop.permute.xlu1 %3047  ;;  %v5719_v32 = vpop.permute.xlu0 %3045 }
 0x7dc   : > { %v5723_v3 = vpop.permute.xlu1 %3051  ;;  %v5725_v56 = vpop.permute.xlu0 %3049 }
 0x7e0   : > { %v2760_v38 = vpop.permute.xlu1 %2759  ;;  %v5740_v55 = vpop.permute.xlu0 %3053 }
 0x7e1   : > { %v2778_v13 = vadd.f32 %v2760_v38, %v2740_v60 }
 0x7e3   : > { %v2783_v41 = vmul.f32 %v6336_v27, %v2778_v13 }
 0x7e4   : > { %v2764_v26 = vpop.permute.xlu1 %2763  ;;  %v2762_v35 = vpop.permute.xlu0 %2761 }
 0x7e5   : > { %v2769_v6 = vsel %vm1234_vm1, %v2760_v38, %v2762_v35  ;;  %v2770_v58 = vsel %vm1234_vm1, %v2762_v35, %v2764_v26  ;;  %2793 = vrot.lane.b32.xlu0 %v2783_v41, %s3672_s14  ;;  %v6340_v38 = vld [vmem:[#allocation49_spill] sm:$0xff]  ;;  %v2893_v41 = vsel %vm1151_vm6, %v5707_v62, %v5711_v24  ;;  %v2894_v35 = vsel %vm1151_vm6, %v5711_v24, %v5709_v36 }
 0x7e6   : > { %v2779_v34 = vadd.f32 %v2769_v6, %v2741_v54  ;;  %v2780_v10 = vadd.f32 %v2770_v58, %v2742_v1  ;;  %v2902_v54 = vadd.f32 %v5707_v62, %v5635_v61  ;;  %v2896_v36 = vsel %vm1151_vm6, %v5715_v21, %v5713_v52 }
 0x7e8   : > { %v2784_v37 = vmul.f32 %v2779_v34, %v6337_v25  ;;  %v2785_v48 = vmul.f32 %v2780_v10, %v6338_v49  ;;  %v2768_v42 = vpop.permute.xlu1 %2767  ;;  %v2766_v63 = vpop.permute.xlu0 %2765  ;;  %v2905_v10 = vadd.f32 %v2895_v4, %v5680_v0  ;;  %v6342_v49 = vld [vmem:[#allocation74_spill] sm:$0xff]  ;;  %v2906_v0 = vadd.f32 %v2896_v36, %v5676_v59 }
 0x7e9   : > { %v2771_v53 = vsel %vm1234_vm1, %v2764_v26, %v2766_v63  ;;  %v2772_v47 = vsel %vm1234_vm1, %v2766_v63, %v2768_v42  ;;  %v2903_v26 = vadd.f32 %v2893_v41, %v5655_v11  ;;  %v2904_v11 = vadd.f32 %v2894_v35, %v5657_v15 }
 0x7ea   : > { %v2781_v60 = vadd.f32 %v2771_v53, %v2743_v8  ;;  %v2782_v45 = vadd.f32 %v2772_v47, %v2744_v29  ;;  %2797 = vrot.lane.b32.xlu0 %v2785_v48, %s3672_s14  ;;  %2795 = vrot.lane.b32.xlu1 %v2784_v37, %s3672_s14  ;;  %v6341_v8 = vld [vmem:[#allocation72_spill] sm:$0xff]  ;;  %v3055_v59 = vsel %vm1112_vm0, %v5719_v32, %v5717_v12 }
 0x7eb   : > { %v3022_v35 = vmul.f32 %v5559_v9, %v4963_v33 }
 0x7ec   : > { %v2786_v39 = vmul.f32 %v2781_v60, %v6339_v46  ;;  %v2787_v2 = vmul.f32 %v6340_v38, %v2782_v45  ;;  %v2924_v16 = vpop.permute.xlu1 %2923  ;;  %v2922_v13 = vpop.permute.xlu0 %2921  ;;  %v6343_v45 = vld [vmem:[#allocation10_spill] sm:$0xff] }
 0x7ed   : > { %v2931_v1 = vsel %vm1195_vm3, %v2922_v13, %v2924_v16  ;;  %v2940_v23 = vadd.f32 %v2922_v13, %v2902_v54 }
 0x7ee   : > { %2801 = vrot.lane.b32.xlu0 %v2787_v2, %s3672_s14  ;;  %2799 = vrot.lane.b32.xlu1 %v2786_v39, %s3672_s14  ;;  %v2941_v6 = vadd.f32 %v2931_v1, %v2903_v26  ;;  %v6344_v39 = vld [vmem:[#allocation53_spill] sm:$0xff]  ;;  %v3021_v1 = vmul.f32 0.0, %v5559_v9  ;;  %v3056_v26 = vsel %vm1112_vm0, %v5717_v12, %v5725_v56  ;;  %v3058_v12 = vsel %vm1112_vm0, %v5723_v3, %v5740_v55 }
 0x7f0   : > { %v2928_v7 = vpop.permute.xlu1 %2927  ;;  %v2926_v57 = vpop.permute.xlu0 %2925  ;;  %v3064_v4 = vadd.f32 %v3055_v59, %v3021_v1  ;;  %v6349_v59 = vld [vmem:[#allocation46_spill] sm:$0xff]  ;;  %v6350_v1 = vld [vmem:[#allocation45_spill] sm:$0xff] }
 0x7f1   : > { %v2932_v5 = vsel %vm1195_vm3, %v2924_v16, %v2926_v57  ;;  %v2933_v61 = vsel %vm1195_vm3, %v2926_v57, %v2928_v7  ;;  %v6345_v57 = vld [vmem:[#allocation54_spill] sm:$0xff] }
 0x7f2   : > { %v2942_v25 = vadd.f32 %v2932_v5, %v2904_v11  ;;  %v2943_v37 = vadd.f32 %v2933_v61, %v2905_v10 }
 0x7f4   : > { %v5770_v14 = vpop.permute.xlu1 %3083  ;;  %v2930_v22 = vpop.permute.xlu0 %2929 }
 0x7f5   : > { %v2934_v53 = vsel %vm1195_vm3, %v2928_v7, %v2930_v22  ;;  %v3102_v5 = vadd.f32 %v5770_v14, %v3064_v4 }
 0x7f6   : > { %v2944_v21 = vadd.f32 %v2934_v53, %v2906_v0 }
 0x7f8   : > { %v5772_v30 = vpop.permute.xlu1 %3087  ;;  %v5774_v27 = vpop.permute.xlu0 %3085 }
 0x7f9   : > { %v3093_v32 = vsel %vm1151_vm6, %v5770_v14, %v5774_v27  ;;  %v3094_v10 = vsel %vm1151_vm6, %v5774_v27, %v5772_v30  ;;  %v3025_v27 = vmul.f32 %v5559_v9, %v6264_v17 }
 0x7fb   : > { %v3068_v0 = vadd.f32 %v5740_v55, %v3025_v27 }
 0x7fc   : > { %v5779_v40 = vpop.permute.xlu1 %3091  ;;  %v5781_v44 = vpop.permute.xlu0 %3089 }
 0x800   : > { %v2962_v58 = vpop.permute.xlu1 %2961  ;;  %v2960_v43 = vpop.permute.xlu0 %2959 }
 0x801   : > { %v2969_v62 = vsel %vm1234_vm1, %v2960_v43, %v2962_v58  ;;  %v2978_v34 = vadd.f32 %v2960_v43, %v2940_v23  ;;  %v3065_v23 = vadd.f32 %v3056_v26, %v3022_v35  ;;  %v3057_v43 = vsel %vm1112_vm0, %v5725_v56, %v5723_v3 }
 0x802   : > { %v2979_v24 = vadd.f32 %v2969_v62, %v2941_v6  ;;  %v3023_v62 = vmul.f32 %v5559_v9, %v4974_v18  ;;  %v3095_v56 = vsel %vm1151_vm6, %v5772_v30, %v5781_v44  ;;  %v3096_v30 = vsel %vm1151_vm6, %v5781_v44, %v5779_v40 }
 0x803   : > { %v2983_v29 = vmul.f32 %v6341_v8, %v2978_v34  ;;  %v3024_v34 = vmul.f32 %v5559_v9, %v4992_v50  ;;  %v3103_v11 = vadd.f32 %v3093_v32, %v3065_v23 }
 0x804   : > { %v2984_v48 = vmul.f32 %v2979_v24, %v6342_v49  ;;  %v2966_v42 = vpop.permute.xlu1 %2965  ;;  %v2964_v63 = vpop.permute.xlu0 %2963  ;;  %v3066_v24 = vadd.f32 %v3057_v43, %v3023_v62 }
 0x805   : > { %v2970_v47 = vsel %vm1234_vm1, %v2962_v58, %v2964_v63  ;;  %v2971_v15 = vsel %vm1234_vm1, %v2964_v63, %v2966_v42  ;;  %2993 = vrot.lane.b32.xlu1 %v2983_v29, %s3673_s15  ;;  %v3067_v14 = vadd.f32 %v3058_v12, %v3024_v34  ;;  %v6352_v34 = vld [vmem:[#allocation25_spill] sm:$0xff] }
 0x806   : > { %v2980_v60 = vadd.f32 %v2970_v47, %v2942_v25  ;;  %v2981_v52 = vadd.f32 %v2971_v15, %v2943_v37  ;;  %2995 = vrot.lane.b32.xlu0 %v2984_v48, %s3673_s15  ;;  %v6346_v47 = vld [vmem:[#allocation75_spill] sm:$0xff] }
 0x807   : > { %v3105_v63 = vadd.f32 %v3095_v56, %v3067_v14  ;;  %v6354_v56 = vld [vmem:[#allocation29_spill] sm:$0xff] }
 0x808   : > { %v2985_v46 = vmul.f32 %v2980_v60, %v6343_v45  ;;  %v2986_v38 = vmul.f32 %v2981_v52, %v6344_v39  ;;  %v3122_v2 = vpop.permute.xlu1 %3121  ;;  %v2968_v16 = vpop.permute.xlu0 %2967 }
 0x809   : > { %v2972_v13 = vsel %vm1234_vm1, %v2966_v42, %v2968_v16  ;;  %v3140_v3 = vadd.f32 %v3122_v2, %v3102_v5  ;;  %v3104_v42 = vadd.f32 %v3094_v10, %v3066_v24  ;;  %v3106_v16 = vadd.f32 %v3096_v30, %v3068_v0  ;;  %v6351_v5 = vld [vmem:[#allocation52_spill] sm:$0xff] }
 0x80a   : > { %v2982_v7 = vadd.f32 %v2972_v13, %v2944_v21  ;;  %2999 = vrot.lane.b32.xlu0 %v2986_v38, %s3673_s15  ;;  %2997 = vrot.lane.b32.xlu1 %v2985_v46, %s3673_s15  ;;  %v6347_v21 = vld [vmem:[#allocation44_spill] sm:$0xff]  ;;  %v2247_v27 = vmul.f32 %v6351_v5, %v4974_v18 }
 0x80b   : > { %v6348_v13 = vld [vmem:[#allocation48_spill] sm:$0xff] }
 0x80c   : > { %v2987_v22 = vmul.f32 %v6345_v57, %v2982_v7  ;;  %v3126_v41 = vpop.permute.xlu1 %3125  ;;  %v3124_v54 = vpop.permute.xlu0 %3123 }
 0x80d   : > { %v3131_v61 = vsel %vm1195_vm3, %v3122_v2, %v3124_v54  ;;  %v3132_v25 = vsel %vm1195_vm3, %v3124_v54, %v3126_v41 }
 0x80e   : > { %3001 = vrot.lane.b32.xlu1 %v2987_v22, %s3673_s15  ;;  %v3141_v36 = vadd.f32 %v3131_v61, %v3103_v11  ;;  %v3142_v60 = vadd.f32 %v3132_v25, %v3104_v42  ;;  %v2245_v61 = vmul.f32 0.0, %v6351_v5  ;;  %v6353_v11 = vld [vmem:[#allocation58_spill] sm:$0xff]  ;;  %v6357_v25 = vld [vmem:[#allocation27_spill] sm:$0xff] }
 0x80f   : > { %v2279_v10 = vsel %vm1112_vm0, %v6353_v11, %v6352_v34 }
 0x810   : > { %v3130_v6 = vpop.permute.xlu1 %3129  ;;  %v3128_v58 = vpop.permute.xlu0 %3127  ;;  %v2288_v14 = vadd.f32 %v2279_v10, %v2245_v61 }
 0x811   : > { %v3133_v37 = vsel %vm1195_vm3, %v3126_v41, %v3128_v58  ;;  %v3134_v38 = vsel %vm1195_vm3, %v3128_v58, %v3130_v6 }
 0x812   : > { %v3143_v52 = vadd.f32 %v3133_v37, %v3105_v63  ;;  %v3144_v55 = vadd.f32 %v3134_v38, %v3106_v16  ;;  %v2249_v63 = vmul.f32 %v6351_v5, %v6264_v17  ;;  %v6363_v38 = vld [vmem:[#allocation31_spill] sm:$0xff] }
 0x814   : > { %v3162_v8 = vpop.permute.xlu1 %3161  ;;  %v3160_v29 = vpop.permute.xlu0 %3159 }
 0x815   : > { %v3169_v49 = vsel %vm1234_vm1, %v3160_v29, %v3162_v8  ;;  %v3178_v48 = vadd.f32 %v3160_v29, %v3140_v3  ;;  %v6355_v3 = vld [vmem:[#allocation59_spill] sm:$0xff] }
 0x816   : > { %v3179_v53 = vadd.f32 %v3169_v49, %v3141_v36  ;;  %v2317_v24 = vsel %vm1151_vm6, %v6355_v3, %v6354_v56  ;;  %v6370_v3 = vld [vmem:[#allocation67_spill] sm:$0xff] }
 0x817   : > { %v3183_v15 = vmul.f32 %v6346_v47, %v3178_v48  ;;  %v2246_v48 = vmul.f32 %v6351_v5, %v4963_v33  ;;  %v2326_v42 = vadd.f32 %v2317_v24, %v2288_v14  ;;  %v6359_v47 = vld [vmem:[#allocation30_spill] sm:$0xff]  ;;  %v6371_v24 = vld [vmem:[#allocation68_spill] sm:$0xff] }
 0x818   : > { %v3184_v45 = vmul.f32 %v3179_v53, %v6347_v21  ;;  %v3166_v46 = vpop.permute.xlu1 %3165  ;;  %v3164_v39 = vpop.permute.xlu0 %3163  ;;  %v6358_v53 = vld [vmem:[#allocation61_spill] sm:$0xff]  ;;  %v6361_v21 = vld [vmem:[#allocation62_spill] sm:$0xff]  ;;  %v2401_v14 = vsel %vm1234_vm1, %v6371_v24, %v6370_v3 }
 0x819   : > { %v3170_v9 = vsel %vm1234_vm1, %v3162_v8, %v3164_v39  ;;  %v3171_v2 = vsel %vm1234_vm1, %v3164_v39, %v3166_v46  ;;  %3193 = vrot.lane.b32.xlu0 %v3183_v15, %s3674_s16  ;;  %v6356_v8 = vld [vmem:[#allocation57_spill] sm:$0xff]  ;;  %v2318_v30 = vsel %vm1151_vm6, %v6354_v56, %v6358_v53  ;;  %v2319_v15 = vsel %vm1151_vm6, %v6358_v53, %v6359_v47 }
 0x81a   : > { %v3180_v40 = vadd.f32 %v3170_v9, %v3142_v60  ;;  %v3181_v44 = vadd.f32 %v3171_v2, %v3143_v52  ;;  %3195 = vrot.lane.b32.xlu1 %v3184_v45, %s3674_s16  ;;  %v2280_v29 = vsel %vm1112_vm0, %v6352_v34, %v6356_v8  ;;  %v2281_v37 = vsel %vm1112_vm0, %v6356_v8, %v6357_v25  ;;  %v6360_v52 = vld [vmem:[#allocation60_spill] sm:$0xff] }
 0x81b   : > { %v2289_v0 = vadd.f32 %v2280_v29, %v2246_v48  ;;  %v2290_v60 = vadd.f32 %v2281_v37, %v2247_v27  ;;  %v2282_v33 = vsel %vm1112_vm0, %v6357_v25, %v6360_v52  ;;  %v2369_v18 = vadd.f32 %v6361_v21, %v2326_v42 }
 0x81c   : > { %v3185_v7 = vmul.f32 %v3180_v40, %v6348_v13  ;;  %v3186_v57 = vmul.f32 %v3181_v44, %v6349_v59  ;;  %v3168_v22 = vpop.permute.xlu0 %3167  ;;  %v2248_v45 = vmul.f32 %v6351_v5, %v4992_v50  ;;  %v2292_v17 = vadd.f32 %v6360_v52, %v2249_v63  ;;  %v6364_v44 = vld [vmem:[#allocation63_spill] sm:$0xff]  ;;  %v6365_v13 = vld [vmem:[#allocation32_spill] sm:$0xff] }
 0x81d   : > { %v3172_v41 = vsel %vm1234_vm1, %v3166_v46, %v3168_v22  ;;  %v6362_v46 = vld [vmem:[#allocation22_spill] sm:$0xff]  ;;  %v2327_v16 = vadd.f32 %v2318_v30, %v2289_v0  ;;  %v2328_v40 = vadd.f32 %v2319_v15, %v2290_v60  ;;  %v6367_v22 = vld [vmem:[#allocation56_spill] sm:$0xff] }
 0x81e   : > { %v3182_v54 = vadd.f32 %v3172_v41, %v3144_v55  ;;  %3199 = vrot.lane.b32.xlu1 %v3186_v57, %s3674_s16  ;;  %3197 = vrot.lane.b32.xlu0 %v3185_v7, %s3674_s16  ;;  %v2360_v39 = vsel %vm1195_vm3, %v6361_v21, %v6362_v46  ;;  %v2361_v9 = vsel %vm1195_vm3, %v6362_v46, %v6363_v38  ;;  %v6366_v57 = vld [vmem:[#allocation64_spill] sm:$0xff] }
 0x81f   : > { %v2320_v55 = vsel %vm1151_vm6, %v6359_v47, %v6364_v44  ;;  %v2407_v7 = vadd.f32 %v6365_v13, %v2369_v18  ;;  %v2291_v59 = vadd.f32 %v2282_v33, %v2248_v45  ;;  %v2363_v41 = vsel %vm1195_vm3, %v6367_v22, %v6366_v57 }
 0x820   : > { %v3187_v26 = vmul.f32 %v6350_v1, %v3182_v54  ;;  %v6368_v54 = vld [vmem:[#allocation66_spill] sm:$0xff]  ;;  %v2330_v61 = vadd.f32 %v6364_v44, %v2292_v17  ;;  %v2370_v34 = vadd.f32 %v2360_v39, %v2327_v16  ;;  %v2371_v11 = vadd.f32 %v2361_v9, %v2328_v40 }
 0x821   : > { %v2398_v1 = vsel %vm1234_vm1, %v6365_v13, %v6368_v54  ;;  %v2329_v10 = vadd.f32 %v2320_v55, %v2291_v59  ;;  %v2362_v56 = vsel %vm1195_vm3, %v6363_v38, %v6367_v22  ;;  %v2412_v48 = vmul.f32 %v5223_v20, %v2407_v7 }
 0x822   : > { %3201 = vrot.lane.b32.xlu0 %v3187_v26, %s3674_s16  ;;  %v6369_v26 = vld [vmem:[#allocation65_spill] sm:$0xff]  ;;  %v2373_v29 = vadd.f32 %v2363_v41, %v2330_v61  ;;  %v2408_v25 = vadd.f32 %v2398_v1, %v2370_v34 }
 0x823   : > { %v2399_v5 = vsel %vm1234_vm1, %v6368_v54, %v6369_v26  ;;  %v2400_v27 = vsel %vm1234_vm1, %v6369_v26, %v6371_v24  ;;  %v2372_v53 = vadd.f32 %v2362_v56, %v2329_v10 }
 0x824   : > { %v2409_v37 = vadd.f32 %v2399_v5, %v2371_v11  ;;  %v2411_v30 = vadd.f32 %v2401_v14, %v2373_v29  ;;  %v2413_v20 = vmul.f32 %v2408_v25, %v5334_v31 }
 0x825   : > { %v2410_v52 = vadd.f32 %v2400_v27, %v2372_v53 }
 0x826   : > { %v2414_v33 = vmul.f32 %v2409_v37, %v5272_v19 }
 0x827   : > { %v2415_v38 = vmul.f32 %v2410_v52, %v5354_v28 }
 0x82f   : > { %v2599_v35 = vpop.permute.xlu1 %2598 }
 0x834   : > { %v2601_v4 = vpop.permute.xlu0 %2600  ;;  %v2603_v32 = vpop.permute.xlu1 %2602 }
 0x835   : > { %v2608_v8 = vsel %vm1487_vm8, %v2599_v35, %v2601_v4  ;;  %v2609_v0 = vsel %vm1487_vm8, %v2601_v4, %v2603_v32  ;;  %v2416_v4 = vmul.f32 %v5259_v51, %v2411_v30 }
 0x836   : > { %v2617_v47 = vadd.f32 %v2608_v8, %v2412_v48  ;;  %v2618_v17 = vadd.f32 %v2609_v0, %v2413_v20 }
 0x838   : > { %v5869_v23 = vpop.permute.xlu0 %2604  ;;  %v5871_v6 = vpop.permute.xlu1 %2606 }
 0x839   : > { %v2610_v35 = vsel %vm1487_vm8, %v2603_v32, %v5869_v23  ;;  %v2621_v51 = vadd.f32 %v5871_v6, %v2416_v4 }
 0x83a   : > { %v2619_v46 = vadd.f32 %v2610_v35, %v2414_v33 }
 0x857   : > { %v2794_v58 = vpop.permute.xlu0 %2793 }
 0x85c   : > { %v2796_v43 = vpop.permute.xlu1 %2795  ;;  %v2798_v12 = vpop.permute.xlu0 %2797 }
 0x85d   : > { %v2803_v42 = vsel %vm1703_vm9, %v2794_v58, %v2796_v43  ;;  %v2804_v58 = vsel %vm1703_vm9, %v2796_v43, %v2798_v12 }
 0x85e   : > { %v2812_v21 = vadd.f32 %v2803_v42, %v2617_v47 }
 0x860   : > { %v5874_v62 = vpop.permute.xlu1 %2799  ;;  %v5888_v49 = vpop.permute.xlu0 %2801 }
 0x861   : > { %v2805_v18 = vsel %vm1703_vm9, %v2798_v12, %v5874_v62  ;;  %v2813_v12 = vadd.f32 %v2804_v58, %v2618_v17  ;;  %v2806_v40 = vsel %vm1703_vm9, %v5874_v62, %v5888_v49  ;;  %v2816_v7 = vadd.f32 %v5888_v49, %v2621_v51 }
 0x862   : > { %v2814_v9 = vadd.f32 %v2805_v18, %v2619_v46 }
 0x877   : > { %v2994_v36 = vpop.permute.xlu1 %2993 }
 0x878   : > { %v2996_v2 = vpop.permute.xlu0 %2995 }
 0x879   : > { %v3003_v60 = vsel %vm1925_vm10, %v2994_v36, %v2996_v2  ;;  %v2611_v36 = vsel %vm1487_vm8, %v5869_v23, %v5871_v6 }
 0x87a   : > { %v3012_v39 = vadd.f32 %v3003_v60, %v2812_v21  ;;  %v2620_v44 = vadd.f32 %v2611_v36, %v2415_v38 }
 0x87c   : > { %v2998_v50 = vpop.permute.xlu1 %2997  ;;  %v3000_v63 = vpop.permute.xlu0 %2999  ;;  %v2815_v6 = vadd.f32 %v2806_v40, %v2620_v44 }
 0x87d   : > { %v3004_v31 = vsel %vm1925_vm10, %v2996_v2, %v2998_v50  ;;  %v3005_v19 = vsel %vm1925_vm10, %v2998_v50, %v3000_v63 }
 0x87e   : > { %v3013_v55 = vadd.f32 %v3004_v31, %v2813_v12  ;;  %v3014_v23 = vadd.f32 %v3005_v19, %v2814_v9 }
 0x880   : > { %v3002_v15 = vpop.permute.xlu1 %3001 }
 0x881   : > { %v3006_v28 = vsel %vm1925_vm10, %v3000_v63, %v3002_v15  ;;  %v3016_v62 = vadd.f32 %v3002_v15, %v2816_v7 }
 0x882   : > { %v3015_v41 = vadd.f32 %v3006_v28, %v2815_v6 }
 0x88b   : > { %v3194_v45 = vpop.permute.xlu0 %3193 }
 0x88c   : > { %v3196_v32 = vpop.permute.xlu1 %3195 }
 0x88d   : > { %v3203_v43 = vsel %vm2147_vm11, %v3194_v45, %v3196_v32 }
 0x88e   : > { %v3212_v16 = vadd.f32 %v3203_v43, %v3012_v39 }
 0x890   : > { %v3200_v13 = vpop.permute.xlu1 %3199  ;;  %3222 = vrot.lane.b32.xlu1 %v3212_v16, %s3675_s17  ;;  %v3198_v2 = vpop.permute.xlu0 %3197 }
 0x891   : > { %v3204_v50 = vsel %vm2147_vm11, %v3196_v32, %v3198_v2  ;;  %v3205_v59 = vsel %vm2147_vm11, %v3198_v2, %v3200_v13 }
 0x892   : > { %v3213_v57 = vadd.f32 %v3204_v50, %v3013_v55  ;;  %v3214_v22 = vadd.f32 %v3205_v59, %v3014_v23 }
 0x894   : > { %3224 = vrot.lane.b32.xlu0 %v3213_v57, %s3675_s17  ;;  %v3202_v54 = vpop.permute.xlu0 %3201  ;;  %3226 = vrot.lane.b32.xlu1 %v3214_v22, %s3675_s17 }
 0x895   : > { %v3206_v49 = vsel %vm2147_vm11, %v3200_v13, %v3202_v54  ;;  %v3216_v1 = vadd.f32 %v3202_v54, %v3016_v62 }
 0x896   : > { %v3215_v26 = vadd.f32 %v3206_v49, %v3015_v41 }
 0x898   : > { %3228 = vrot.lane.b32.xlu0 %v3215_v26, %s3675_s17  ;;  %3230 = vrot.lane.b32.xlu1 %v3216_v1, %s3675_s17 }
 0x902   : > { %v3223_v5 = vpop.permute.xlu1 %3222 }
 0x906   : > { %v3225_v61 = vpop.permute.xlu0 %3224  ;;  %v3227_v34 = vpop.permute.xlu1 %3226 }
 0x907   : > { %v3232_v11 = vsel %vm2177_vm14, %v3223_v5, %v3225_v61  ;;  %v3233_v10 = vsel %vm2177_vm14, %v3225_v61, %v3227_v34 }
 0x908   : > { %3418 = vst [vmem:[%s4078_s11 + $0xa0] sm:$0xff] %v3232_v11  ;;  %3419 = vst [vmem:[%s4078_s11 + $0xa8] sm:$0xff] %v3233_v10 }
 0x90a   : > { %v3229_v56 = vpop.permute.xlu0 %3228  ;;  %v3231_v3 = vpop.permute.xlu1 %3230 }
 0x90b   : > { %v3234_v24 = vsel %vm2177_vm14, %v3227_v34, %v3229_v56  ;;  %v3235_v14 = vsel %vm2177_vm14, %v3229_v56, %v3231_v3 }
 0x90c   : > { %3420 = vst [vmem:[%s4078_s11 + $0xb0] sm:$0xff] %v3234_v24  ;;  %3421 = vst [vmem:[%s4078_s11 + $0xb8] sm:$0xff] %v3235_v14 }
 0x90d PF: > { %s16_s21 = sadd.s32 1, %s3635_s21  }
 0x90e   : > { %p13_p5 = scmp.ge.s32.totalorder %s16_s21, 4  }
 0x910   :  { %15 = sbr.rel (!%p13_p5) target bundleno = 1 (0x1), region = 83 }

</bundles_post_ra>
